<compile_context>
chip_gen: v7x
topology: tpu7x:2x2x1
jax: 0.10.0
libtpu: 0.0.40
codegen_flags: <defaults>
</compile_context>

<pallas_src>
import functools

import jax
import jax.numpy as jnp
from jax import lax
from jax.experimental import pallas as pl
from jax.experimental.pallas import tpu as pltpu

_P = 128          # lane-padded feature width
_ROW_ALIGN = 16   # bf16 sublane-tile alignment for rows inside the packed weight slab
_NEG = -1e9       # softmax mask value for padded lanes


def _round_rows(x):
    return ((x + _ROW_ALIGN - 1) // _ROW_ALIGN) * _ROW_ALIGN


def _slab_offsets(n_nodes, p=_P):
    """Static row offsets of each weight inside the packed (rows, 128) bf16 slab."""
    off, cur = {}, 0
    off["gc2"] = cur;  cur += p                    # (h0->128, E->128)
    off["fc1a"] = cur; cur += _round_rows(n_nodes)  # (N, h0->128)
    off["fc1b"] = cur; cur += p                    # (E->128, h0->128)
    off["fc2"] = cur;  cur += p
    off["fc3"] = cur;  cur += p
    off["fc4"] = cur;  cur += p
    return off, cur


# ----------------------------------------------------------------------------
# Pallas kernel: batched GraphEndNetwork forward (TB instances per grid step)
# ----------------------------------------------------------------------------
def _graph_end_kernel(starts_ref,   # VMEM (TB, 1) int32
                      state_ref,    # VMEM (TB, N, N) f32
                      vecs_ref,     # VMEM (8, 128) f32  : gc1_w, 6 biases, softmax mask
                      wslab_ref,    # VMEM (R, 128) bf16 : packed weight matrices
                      out_ref,      # VMEM (TB, 128) f32
                      *, off):
    f32, bf16 = jnp.float32, jnp.bfloat16
    TB, N, _ = state_ref.shape
    P = vecs_ref.shape[-1]

    state = state_ref[...]                       # (TB, N, N)
    starts = starts_ref[...]                     # (TB, 1) int32

    vecs = vecs_ref[...]                         # (8, P)
    gc1_w, gc1_b = vecs[0:1, :], vecs[1:2, :]
    gc2_b, fc1_b = vecs[2:3, :], vecs[3:4, :]
    fc2_b, fc3_b = vecs[4:5, :], vecs[5:6, :]
    fc4_b, smask = vecs[6:7, :], vecs[7:8, :]

    def mm(a, name, rows):
        """bf16 MXU matmul against a static slab slice, f32 accumulate."""
        w = wslab_ref[off[name]:off[name] + rows, :]           # bf16 slab slice
        return jnp.dot(a.astype(bf16), w, preferred_element_type=f32)

    # ---- diag(state) reduced ONCE; adj is never materialized -------------------
    eye = (lax.broadcasted_iota(jnp.int32, (N, N), 0)
           == lax.broadcasted_iota(jnp.int32, (N, N), 1)).astype(f32)   # (N, N)
    diag = jnp.sum(state * eye[None], axis=-1)                 # (TB, N): state[b,i,i]
    deg = jnp.sum(state * diag[:, None, :], axis=-1)           # (TB, N): sum_j state*diag
    a1 = (deg - diag * diag)[:, :, None]                       # (TB, N, 1) == adj @ diag(state)

    # ---- gc1: h = relu(a1 (outer) gc1_w + gc1_b)  (in_features==1 -> pure VPU) --
    h = jnp.maximum(a1 * gc1_w[None] + gc1_b[None], 0.0)       # (TB, N, P) f32
    # TODO(synk): gc1 dropout (p=0.5) is training-only; eval mode = identity.

    # ---- start-row gather via one-hot mask + sublane reduce (no M=1 matmuls) ----
    col_n = lax.broadcasted_iota(jnp.int32, (TB, N), 1)
    oh = (col_n == starts).astype(f32)                         # (TB, N)
    start_feat = jnp.sum(state * oh[:, :, None], axis=1)       # (TB, N) = state[b, start_b, :]
    adj_start = start_feat * (1.0 - oh)                        # zero its diagonal entry

    # ---- gc2 reassociated: g = (adj[start,:] @ h) @ W + b  (start row ONLY) -----
    v = jnp.sum(h * adj_start[:, :, None], axis=1)             # (TB, P) f32, VPU + XLU
    g = jnp.maximum(mm(v, "gc2", P) + gc2_b, 0.0)              # (TB, P)
    # TODO(synk): verify vs. original GraphEndNetwork whether relu precedes log_softmax.

    # ---- log_softmax over valid embedding lanes (padded lanes of g are exactly 0
    #      because padded gc2 weight cols / bias lanes are zero; smask = -1e9 there)
    gm = g + smask
    m = jnp.max(gm, axis=-1, keepdims=True)
    z = gm - m
    lse = jnp.log(jnp.sum(jnp.exp(z), axis=-1, keepdims=True))
    log_soft = z - lse                                          # (TB, P)

    # ---- MLP head; fc1 split over (state row, embedding) avoids the concat ------
    z1 = jnp.maximum(mm(start_feat, "fc1a", N) + mm(log_soft, "fc1b", P) + fc1_b, 0.0)
    z2 = jnp.maximum(mm(z1, "fc2", P) + fc2_b, 0.0)
    # TODO(synk): fc dropout (p=0.5) is training-only; eval mode = identity.
    z3 = jnp.maximum(mm(z2, "fc3", P) + fc3_b, 0.0)
    q = jnp.maximum(mm(z3, "fc4", P) + fc4_b, 0.0)
    # TODO(synk): original head may not relu the final Q layer; kept to match reference.

    out_ref[...] = q                                            # full-lane (TB,128) store


# ----------------------------------------------------------------------------
# Wrapper
# ----------------------------------------------------------------------------
def _default_block_b(batch):
    """Batch tile: fill the MXU M dim (target 256), keep >=2 grid steps when possible
    (v7x two-TC sharding via dimension_semantics=('parallel',)), 8-sublane aligned."""
    target = min(batch, 256)
    if batch >= 16:
        target = min(target, batch // 2)
    tb = (target // 8) * 8
    while tb >= 8 and batch % tb:
        tb -= 8
    return tb if tb >= 8 else batch


@functools.partial(jax.jit, static_argnames=("n_nodes", "action_size", "block_b"))
def graph_end_network(states, starts, vecs, wslab, *, n_nodes, action_size, block_b=None):
    """Batched forward. states:(B,N,N) f32, starts:(B,) int32 -> (B, action_size) f32."""
    B = states.shape[0]
    N = n_nodes
    TB = block_b if block_b is not None else _default_block_b(B)
    assert B % TB == 0, (B, TB)
    off, total = _slab_offsets(N)
    assert vecs.shape == (8, _P) and vecs.dtype == jnp.float32
    assert wslab.shape == (total, _P) and wslab.dtype == jnp.bfloat16

    states = states.astype(jnp.float32)
    starts2d = starts.astype(jnp.int32).reshape(B, 1)

    kernel = functools.partial(_graph_end_kernel, off=off)
    out = pl.pallas_call(
        kernel,
        out_shape=jax.ShapeDtypeStruct((B, _P), jnp.float32),
        grid=(B // TB,),
        in_specs=[
            pl.BlockSpec((TB, 1), lambda g: (g, 0)),            # start indices
            pl.BlockSpec((TB, N, N), lambda g: (g, 0, 0)),      # state tiles
            pl.BlockSpec((8, _P), lambda g: (0, 0)),            # row-vector slab (constant)
            pl.BlockSpec((total, _P), lambda g: (0, 0)),        # bf16 weight slab (constant)
        ],
        out_specs=pl.BlockSpec((TB, _P), lambda g: (g, 0)),
        compiler_params=pltpu.CompilerParams(
            dimension_semantics=("parallel",)),
    )(starts2d, states, vecs, wslab)
    return out[:, :action_size]


# ----------------------------------------------------------------------------
# Host-side parameter packing into two lane-dense slabs
# ----------------------------------------------------------------------------
def pack_params(params, n_nodes, embedding_size, n_neurons, action_size):
    h0, h1, h2 = n_neurons
    N, E, A = n_nodes, embedding_size, action_size
    f32 = jnp.float32
    off, total = _slab_offsets(N)

    vecs = jnp.zeros((8, _P), f32)
    vecs = vecs.at[0, :h0].set(params["gc1_w"].reshape(-1))
    vecs = vecs.at[1, :h0].set(params["gc1_b"].reshape(-1))
    vecs = vecs.at[2, :E].set(params["gc2_b"].reshape(-1))
    vecs = vecs.at[3, :h0].set(params["fc1_b"].reshape(-1))
    vecs = vecs.at[4, :h1].set(params["fc2_b"].reshape(-1))
    vecs = vecs.at[5, :h2].set(params["fc3_b"].reshape(-1))
    vecs = vecs.at[6, :A].set(params["fc4_b"].reshape(-1))
    vecs = vecs.at[7, E:].set(_NEG)                 # log_softmax lane mask (0 on valid lanes)

    # INVARIANT: padded slab rows/cols stay exactly zero (softmax mask + concat split rely on it).
    wslab = jnp.zeros((total, _P), f32)

    def put(slab, name, w):
        w = jnp.asarray(w, f32)
        r0 = off[name]
        return slab.at[r0:r0 + w.shape[0], :w.shape[1]].set(w)

    wslab = put(wslab, "gc2", params["gc2_w"])
    wslab = put(wslab, "fc1a", params["fc1_wT"][:N])
    wslab = put(wslab, "fc1b", params["fc1_wT"][N:])
    wslab = put(wslab, "fc2", params["fc2_wT"])
    wslab = put(wslab, "fc3", params["fc3_wT"])
    wslab = put(wslab, "fc4", params["fc4_wT"])
    return vecs, wslab.astype(jnp.bfloat16)         # MXU-native operand dtype


# ----------------------------------------------------------------------------
# Parameter init (mirrors the module shapes / init style) and pure-JAX reference
# ----------------------------------------------------------------------------
def init_params(key, n_nodes, embedding_size, n_neurons, action_size):
    h0, h1, h2 = n_neurons
    input_size = n_nodes + embedding_size
    keys = jax.random.split(key, 12)
    f32 = jnp.float32

    def unif(k, shape, bound):
        return jax.random.uniform(k, shape, f32, -bound, bound)

    def xavier(k, fan_in, fan_out):
        bound = (6.0 / (fan_in + fan_out)) ** 0.5
        return jax.random.uniform(k, (fan_in, fan_out), f32, -bound, bound)

    stdv1 = 1.0 / (h0 ** 0.5)
    stdv2 = 1.0 / (embedding_size ** 0.5)
    return {
        # GraphConvolution: weight (in_features, out_features), uniform(+-1/sqrt(out))
        "gc1_w": unif(keys[0], (1, h0), stdv1),
        "gc1_b": unif(keys[1], (1, h0), stdv1),
        "gc2_w": unif(keys[2], (h0, embedding_size), stdv2),
        "gc2_b": unif(keys[3], (1, embedding_size), stdv2),
        # Linear layers stored pre-transposed as (in, out)
        "fc1_wT": xavier(keys[4], input_size, h0),
        "fc1_b": unif(keys[5], (1, h0), 1.0 / (input_size ** 0.5)),
        "fc2_wT": xavier(keys[6], h0, h1),
        "fc2_b": unif(keys[7], (1, h1), 1.0 / (h0 ** 0.5)),
        "fc3_wT": xavier(keys[8], h1, h2),
        "fc3_b": unif(keys[9], (1, h2), 1.0 / (h1 ** 0.5)),
        "fc4_wT": xavier(keys[10], h2, action_size),
        "fc4_b": unif(keys[11], (1, action_size), 1.0 / (h2 ** 0.5)),
    }


def _reference_forward(state, start, params):
    """Unbatched pure-JAX f32 forward with the module's exact semantics (for validation)."""
    n = state.shape[0]
    eye = jnp.eye(n, dtype=state.dtype)
    x = jnp.sum(state * eye, axis=1, keepdims=True)          # diag(state) as (N,1)
    adj = state * (1.0 - eye)
    h = jax.nn.relu(adj @ (x * params["gc1_w"]) + params["gc1_b"])
    g = jax.nn.relu(adj @ (h @ params["gc2_w"]) + params["gc2_b"])
    log_soft = jax.nn.log_softmax(g, axis=1)
    feat = jnp.concatenate([state[start], log_soft[start]])[None, :]
    z1 = jax.nn.relu(feat @ params["fc1_wT"] + params["fc1_b"])
    z2 = jax.nn.relu(z1 @ params["fc2_wT"] + params["fc2_b"])
    z3 = jax.nn.relu(z2 @ params["fc3_wT"] + params["fc3_b"])
    q = jax.nn.relu(z3 @ params["fc4_wT"] + params["fc4_b"])
    return q[0]


if __name__ == "__main__":
    N_NODES = 16
    EMBEDDING = 8
    N_NEURONS = [32, 32, 32]
    ACTION_SIZE = N_NODES
    BATCH = 64                      # -> default TB=32, 2 grid steps (2-TC shardable)

    key = jax.random.PRNGKey(0)
    k_state, k_start, k_params = jax.random.split(key, 3)

    states = jax.random.uniform(k_state, (BATCH, N_NODES, N_NODES), jnp.float32)
    starts = jax.random.randint(k_start, (BATCH,), 0, N_NODES, jnp.int32)
    params = init_params(k_params, N_NODES, EMBEDDING, N_NEURONS, ACTION_SIZE)
    vecs, wslab = pack_params(params, N_NODES, EMBEDDING, N_NEURONS, ACTION_SIZE)

    q = graph_end_network(states, starts, vecs, wslab,
                          n_nodes=N_NODES, action_size=ACTION_SIZE)
    q = jax.block_until_ready(q)

    assert q.shape == (BATCH, ACTION_SIZE)
    assert bool(jnp.all(jnp.isfinite(q)))

    # Kernel uses bf16 MXU operands (weights + activations at each dot, f32 accumulate);
    # the reference is all-f32, so expect O(1e-2) absolute differences on O(1) Q-values.
    ref = jax.vmap(lambda s, st: _reference_forward(s, st, params))(states, starts)
    assert bool(jnp.allclose(q, ref, rtol=1e-1, atol=1e-1)), \
        float(jnp.max(jnp.abs(q - ref)))

    print("KERNEL_OK")
</pallas_src>

<mosaic_0001>
module attributes {stable_mosaic.version = 11 : i64} {
  func.func @_graph_end_kernel(%arg0: i32, %arg1: memref<32x1xi32, #tpu.memory_space<vmem>>, %arg2: memref<32x16x16xf32, #tpu.memory_space<vmem>>, %arg3: memref<8x128xf32, #tpu.memory_space<vmem>>, %arg4: memref<656x128xbf16, #tpu.memory_space<vmem>>, %arg5: memref<32x128xf32, #tpu.memory_space<vmem>>) attributes {dimension_semantics = [#tpu.dimension_semantics<parallel>], iteration_bounds = array<i64: 2>, scalar_prefetch = 0 : i64, scratch_operands = 0 : i64, tpu.core_type = #tpu.core_type<tc>, window_params = [{transform_indices = @transform_0, window_bounds = array<i64: 32, 1>}, {transform_indices = @transform_1, window_bounds = array<i64: 32, 16, 16>}, {pipeline_mode = #tpu.pipeline_mode<synchronous>, transform_indices = @transform_2, window_bounds = array<i64: 8, 128>}, {pipeline_mode = #tpu.pipeline_mode<synchronous>, transform_indices = @transform_3, window_bounds = array<i64: 656, 128>}, {transform_indices = @transform_4, window_bounds = array<i64: 32, 128>}]} {
    %c0 = arith.constant 0 : index
    %c0_0 = arith.constant 0 : index
    %c0_1 = arith.constant 0 : index
    %0 = vector.load %arg2[%c0, %c0_0, %c0_1] : memref<32x16x16xf32, #tpu.memory_space<vmem>>, vector<32x16x16xf32>
    %c0_2 = arith.constant 0 : index
    %c0_3 = arith.constant 0 : index
    %1 = vector.load %arg1[%c0_2, %c0_3] : memref<32x1xi32, #tpu.memory_space<vmem>>, vector<32x1xi32>
    %c0_4 = arith.constant 0 : index
    %c0_5 = arith.constant 0 : index
    %2 = vector.load %arg3[%c0_4, %c0_5] : memref<8x128xf32, #tpu.memory_space<vmem>>, vector<8x128xf32>
    %3 = vector.extract_strided_slice %2 {offsets = [0, 0], sizes = [1, 128], strides = [1, 1]} : vector<8x128xf32> to vector<1x128xf32>
    %4 = vector.extract_strided_slice %2 {offsets = [1, 0], sizes = [1, 128], strides = [1, 1]} : vector<8x128xf32> to vector<1x128xf32>
    %5 = vector.extract_strided_slice %2 {offsets = [2, 0], sizes = [1, 128], strides = [1, 1]} : vector<8x128xf32> to vector<1x128xf32>
    %6 = vector.extract_strided_slice %2 {offsets = [3, 0], sizes = [1, 128], strides = [1, 1]} : vector<8x128xf32> to vector<1x128xf32>
    %7 = vector.extract_strided_slice %2 {offsets = [4, 0], sizes = [1, 128], strides = [1, 1]} : vector<8x128xf32> to vector<1x128xf32>
    %8 = vector.extract_strided_slice %2 {offsets = [5, 0], sizes = [1, 128], strides = [1, 1]} : vector<8x128xf32> to vector<1x128xf32>
    %9 = vector.extract_strided_slice %2 {offsets = [6, 0], sizes = [1, 128], strides = [1, 1]} : vector<8x128xf32> to vector<1x128xf32>
    %10 = vector.extract_strided_slice %2 {offsets = [7, 0], sizes = [1, 128], strides = [1, 1]} : vector<8x128xf32> to vector<1x128xf32>
    %11 = tpu.iota {dimensions = array<i32: 0>} : vector<16x16xi32>
    %12 = tpu.iota {dimensions = array<i32: 1>} : vector<16x16xi32>
    %13 = arith.cmpi eq, %11, %12 : vector<16x16xi32>
    %14 = arith.extui %13 : vector<16x16xi1> to vector<16x16xi32>
    %15 = arith.sitofp %14 : vector<16x16xi32> to vector<16x16xf32>
    %16 = vector.shape_cast %15 : vector<16x16xf32> to vector<1x16x16xf32>
    %17 = vector.broadcast %16 : vector<1x16x16xf32> to vector<32x16x16xf32>
    %18 = arith.mulf %0, %17 : vector<32x16x16xf32>
    %cst = arith.constant dense<0.000000e+00> : vector<32x16xf32>
    %19 = vector.multi_reduction <add>, %18, %cst [2] : vector<32x16x16xf32> to vector<32x16xf32>
    %20 = vector.shape_cast %19 : vector<32x16xf32> to vector<32x1x16xf32>
    %21 = vector.broadcast %20 : vector<32x1x16xf32> to vector<32x16x16xf32>
    %22 = arith.mulf %0, %21 : vector<32x16x16xf32>
    %cst_6 = arith.constant dense<0.000000e+00> : vector<32x16xf32>
    %23 = vector.multi_reduction <add>, %22, %cst_6 [2] : vector<32x16x16xf32> to vector<32x16xf32>
    %24 = arith.mulf %19, %19 : vector<32x16xf32>
    %25 = arith.subf %23, %24 : vector<32x16xf32>
    %26 = vector.shape_cast %25 : vector<32x16xf32> to vector<32x16x1xf32>
    %27 = vector.shape_cast %3 : vector<1x128xf32> to vector<1x1x128xf32>
    %28 = vector.broadcast %26 : vector<32x16x1xf32> to vector<32x16x128xf32>
    %29 = vector.broadcast %27 : vector<1x1x128xf32> to vector<32x16x128xf32>
    %30 = arith.mulf %28, %29 : vector<32x16x128xf32>
    %31 = vector.shape_cast %4 : vector<1x128xf32> to vector<1x1x128xf32>
    %32 = vector.broadcast %31 : vector<1x1x128xf32> to vector<32x16x128xf32>
    %33 = arith.addf %30, %32 : vector<32x16x128xf32>
    %cst_7 = arith.constant 0.000000e+00 : f32
    %34 = vector.broadcast %cst_7 : f32 to vector<32x16x128xf32>
    %35 = arith.maximumf %33, %34 : vector<32x16x128xf32>
    %36 = tpu.iota {dimensions = array<i32: 1>} : vector<32x16xi32>
    %37 = vector.broadcast %1 : vector<32x1xi32> to vector<32x16xi32>
    %38 = arith.cmpi eq, %36, %37 : vector<32x16xi32>
    %39 = arith.extui %38 : vector<32x16xi1> to vector<32x16xi32>
    %40 = arith.sitofp %39 : vector<32x16xi32> to vector<32x16xf32>
    %41 = vector.shape_cast %40 : vector<32x16xf32> to vector<32x16x1xf32>
    %42 = vector.broadcast %41 : vector<32x16x1xf32> to vector<32x16x16xf32>
    %43 = arith.mulf %0, %42 : vector<32x16x16xf32>
    %cst_8 = arith.constant dense<0.000000e+00> : vector<32x16xf32>
    %44 = vector.multi_reduction <add>, %43, %cst_8 [1] : vector<32x16x16xf32> to vector<32x16xf32>
    %cst_9 = arith.constant 1.000000e+00 : f32
    %45 = vector.broadcast %cst_9 : f32 to vector<32x16xf32>
    %46 = arith.subf %45, %40 : vector<32x16xf32>
    %47 = arith.mulf %44, %46 : vector<32x16xf32>
    %48 = vector.shape_cast %47 : vector<32x16xf32> to vector<32x16x1xf32>
    %49 = vector.broadcast %48 : vector<32x16x1xf32> to vector<32x16x128xf32>
    %50 = arith.mulf %35, %49 : vector<32x16x128xf32>
    %cst_10 = arith.constant dense<0.000000e+00> : vector<32x128xf32>
    %51 = vector.multi_reduction <add>, %50, %cst_10 [1] : vector<32x16x128xf32> to vector<32x128xf32>
    %c0_11 = arith.constant 0 : index
    %c0_12 = arith.constant 0 : index
    %52 = vector.load %arg4[%c0_11, %c0_12] : memref<656x128xbf16, #tpu.memory_space<vmem>>, vector<128x128xbf16>
    %53 = arith.truncf %51 : vector<32x128xf32> to vector<32x128xbf16>
    %cst_13 = arith.constant dense<0.000000e+00> : vector<32x128xf32>
    %54 = tpu.matmul %53, %52, %cst_13 {dimension_numbers = #tpu.dot_dimension_numbers<[1], [0], [0], [1], [0, 0, 1, 1], [], []>} : vector<32x128xbf16>, vector<128x128xbf16>, vector<32x128xf32> -> vector<32x128xf32>
    %55 = vector.broadcast %5 : vector<1x128xf32> to vector<32x128xf32>
    %56 = arith.addf %54, %55 : vector<32x128xf32>
    %cst_14 = arith.constant 0.000000e+00 : f32
    %57 = vector.broadcast %cst_14 : f32 to vector<32x128xf32>
    %58 = arith.maximumf %56, %57 : vector<32x128xf32>
    %59 = vector.broadcast %10 : vector<1x128xf32> to vector<32x128xf32>
    %60 = arith.addf %58, %59 : vector<32x128xf32>
    %cst_15 = arith.constant dense<0xFF800000> : vector<32xf32>
    %61 = vector.multi_reduction <maximumf>, %60, %cst_15 [1] : vector<32x128xf32> to vector<32xf32>
    %62 = vector.shape_cast %61 : vector<32xf32> to vector<32x1xf32>
    %63 = vector.broadcast %62 : vector<32x1xf32> to vector<32x128xf32>
    %64 = arith.subf %60, %63 : vector<32x128xf32>
    %65 = math.exp %64 : vector<32x128xf32>
    %cst_16 = arith.constant dense<0.000000e+00> : vector<32xf32>
    %66 = vector.multi_reduction <add>, %65, %cst_16 [1] : vector<32x128xf32> to vector<32xf32>
    %67 = vector.shape_cast %66 : vector<32xf32> to vector<32x1xf32>
    %68 = math.log %67 : vector<32x1xf32>
    %69 = vector.broadcast %68 : vector<32x1xf32> to vector<32x128xf32>
    %70 = arith.subf %64, %69 : vector<32x128xf32>
    %c128 = arith.constant 128 : index
    %c0_17 = arith.constant 0 : index
    %71 = vector.load %arg4[%c128, %c0_17] : memref<656x128xbf16, #tpu.memory_space<vmem>>, vector<16x128xbf16>
    %72 = arith.truncf %44 : vector<32x16xf32> to vector<32x16xbf16>
    %cst_18 = arith.constant dense<0.000000e+00> : vector<32x128xf32>
    %73 = tpu.matmul %72, %71, %cst_18 {dimension_numbers = #tpu.dot_dimension_numbers<[1], [0], [0], [1], [0, 0, 1, 1], [], []>} : vector<32x16xbf16>, vector<16x128xbf16>, vector<32x128xf32> -> vector<32x128xf32>
    %c144 = arith.constant 144 : index
    %c0_19 = arith.constant 0 : index
    %74 = vector.load %arg4[%c144, %c0_19] : memref<656x128xbf16, #tpu.memory_space<vmem>>, vector<128x128xbf16>
    %75 = arith.truncf %70 : vector<32x128xf32> to vector<32x128xbf16>
    %cst_20 = arith.constant dense<0.000000e+00> : vector<32x128xf32>
    %76 = tpu.matmul %75, %74, %cst_20 {dimension_numbers = #tpu.dot_dimension_numbers<[1], [0], [0], [1], [0, 0, 1, 1], [], []>} : vector<32x128xbf16>, vector<128x128xbf16>, vector<32x128xf32> -> vector<32x128xf32>
    %77 = arith.addf %73, %76 : vector<32x128xf32>
    %78 = vector.broadcast %6 : vector<1x128xf32> to vector<32x128xf32>
    %79 = arith.addf %77, %78 : vector<32x128xf32>
    %cst_21 = arith.constant 0.000000e+00 : f32
    %80 = vector.broadcast %cst_21 : f32 to vector<32x128xf32>
    %81 = arith.maximumf %79, %80 : vector<32x128xf32>
    %c272 = arith.constant 272 : index
    %c0_22 = arith.constant 0 : index
    %82 = vector.load %arg4[%c272, %c0_22] : memref<656x128xbf16, #tpu.memory_space<vmem>>, vector<128x128xbf16>
    %83 = arith.truncf %81 : vector<32x128xf32> to vector<32x128xbf16>
    %cst_23 = arith.constant dense<0.000000e+00> : vector<32x128xf32>
    %84 = tpu.matmul %83, %82, %cst_23 {dimension_numbers = #tpu.dot_dimension_numbers<[1], [0], [0], [1], [0, 0, 1, 1], [], []>} : vector<32x128xbf16>, vector<128x128xbf16>, vector<32x128xf32> -> vector<32x128xf32>
    %85 = vector.broadcast %7 : vector<1x128xf32> to vector<32x128xf32>
    %86 = arith.addf %84, %85 : vector<32x128xf32>
    %cst_24 = arith.constant 0.000000e+00 : f32
    %87 = vector.broadcast %cst_24 : f32 to vector<32x128xf32>
    %88 = arith.maximumf %86, %87 : vector<32x128xf32>
    %c400 = arith.constant 400 : index
    %c0_25 = arith.constant 0 : index
    %89 = vector.load %arg4[%c400, %c0_25] : memref<656x128xbf16, #tpu.memory_space<vmem>>, vector<128x128xbf16>
    %90 = arith.truncf %88 : vector<32x128xf32> to vector<32x128xbf16>
    %cst_26 = arith.constant dense<0.000000e+00> : vector<32x128xf32>
    %91 = tpu.matmul %90, %89, %cst_26 {dimension_numbers = #tpu.dot_dimension_numbers<[1], [0], [0], [1], [0, 0, 1, 1], [], []>} : vector<32x128xbf16>, vector<128x128xbf16>, vector<32x128xf32> -> vector<32x128xf32>
    %92 = vector.broadcast %8 : vector<1x128xf32> to vector<32x128xf32>
    %93 = arith.addf %91, %92 : vector<32x128xf32>
    %cst_27 = arith.constant 0.000000e+00 : f32
    %94 = vector.broadcast %cst_27 : f32 to vector<32x128xf32>
    %95 = arith.maximumf %93, %94 : vector<32x128xf32>
    %c528 = arith.constant 528 : index
    %c0_28 = arith.constant 0 : index
    %96 = vector.load %arg4[%c528, %c0_28] : memref<656x128xbf16, #tpu.memory_space<vmem>>, vector<128x128xbf16>
    %97 = arith.truncf %95 : vector<32x128xf32> to vector<32x128xbf16>
    %cst_29 = arith.constant dense<0.000000e+00> : vector<32x128xf32>
    %98 = tpu.matmul %97, %96, %cst_29 {dimension_numbers = #tpu.dot_dimension_numbers<[1], [0], [0], [1], [0, 0, 1, 1], [], []>} : vector<32x128xbf16>, vector<128x128xbf16>, vector<32x128xf32> -> vector<32x128xf32>
    %99 = vector.broadcast %9 : vector<1x128xf32> to vector<32x128xf32>
    %100 = arith.addf %98, %99 : vector<32x128xf32>
    %cst_30 = arith.constant 0.000000e+00 : f32
    %101 = vector.broadcast %cst_30 : f32 to vector<32x128xf32>
    %102 = arith.maximumf %100, %101 : vector<32x128xf32>
    %c0_31 = arith.constant 0 : index
    %c0_32 = arith.constant 0 : index
    %103 = vector.load %arg5[%c0_31, %c0_32] : memref<32x128xf32, #tpu.memory_space<vmem>>, vector<32x128xf32>
    tpu.vector_store %arg5[%c0_31, %c0_32], %102 {strides = array<i32>} : memref<32x128xf32, #tpu.memory_space<vmem>>, vector<32x128xf32>,
    return
  }
  func.func @transform_0(%arg0: i32) -> (i32, i32) {
    %c0_i32 = arith.constant 0 : i32
    %c0_i32_0 = arith.constant 0 : i32
    return %arg0, %c0_i32 : i32, i32
  }
  func.func @transform_1(%arg0: i32) -> (i32, i32, i32) {
    %c0_i32 = arith.constant 0 : i32
    %c0_i32_0 = arith.constant 0 : i32
    %c0_i32_1 = arith.constant 0 : i32
    return %arg0, %c0_i32, %c0_i32_0 : i32, i32, i32
  }
  func.func @transform_2(%arg0: i32) -> (i32, i32) {
    %c0_i32 = arith.constant 0 : i32
    %c0_i32_0 = arith.constant 0 : i32
    %c0_i32_1 = arith.constant 0 : i32
    return %c0_i32, %c0_i32_0 : i32, i32
  }
  func.func @transform_3(%arg0: i32) -> (i32, i32) {
    %c0_i32 = arith.constant 0 : i32
    %c0_i32_0 = arith.constant 0 : i32
    %c0_i32_1 = arith.constant 0 : i32
    return %c0_i32, %c0_i32_0 : i32, i32
  }
  func.func @transform_4(%arg0: i32) -> (i32, i32) {
    %c0_i32 = arith.constant 0 : i32
    %c0_i32_0 = arith.constant 0 : i32
    return %arg0, %c0_i32 : i32, i32
  }
}

</mosaic_0001>

<bundles_post_ra>
// kernel: graph_end_network.1
= control target key start
LH: loop header
LB: loop body
LE: loop exit
PB: predicated region body
PF: predicated region fallthrough
CT: control target
= control target key end

     0   :  { %s4651_s15 = smov 0   ;;  %s7455_s0 = inlined_call_operand.vmem [shape: s32[64,1], index: 0, kind: input, shape index: {}]   ;;  %s7456_s1 = inlined_call_operand.vmem [shape: f32[64,16,16], index: 1, kind: input, shape index: {}]   ;;  %s7457_s2 = inlined_call_operand.vmem [shape: f32[8,128], index: 2, kind: input, shape index: {}]   ;;  %s7458_s3 = inlined_call_operand.vmem [shape: bf16[656,128], index: 3, kind: input, shape index: {}]   ;;  %s7459_s4 = inlined_call_operand.vmem [shape: f32[64,128], index: 4, kind: output, shape index: {}]  }
   0x1 LB: > { %s4255_s16 = sadd.s32 4294967295, %s4622_s15   ;;  %p4259_p0 = scmp.ge.s32.totalorder %s4622_s15, 1  ;;  %s4622_s15 = sphi %s4651_s15, %s14_s15  }
   0x2   : > { %p175_p1 = scmp.lt.s32.totalorder %s4622_s15, 3 }
   0x4   : > { %p176_p2 = pnand %p4259_p0, %p175_p1 }
   0x6   : > { %179 = sbr.rel (%p176_p2) target bundleno = 2226 (0x8b2), region = 36 }
   0xd   : > { %s4260_s17 = sshll.u32 %s4255_s16, 2  ;;  %v4624_v0 = vmov 0   ;;  %s4262_s22 = sshll.u32 %s4255_s16, 5  ;;  %v296_v5 = vlaneseq  ;;  %v7460_v12 = vmov 0.0   ;;  %vm371_vm2 = vcmask 130048  }
   0xe   : > { %4493 = vset.pattern.permute.xlu1 %v4624_v0  ;;  %4492 = vset.pattern.permute.xlu0 %v4624_v0  ;;  %p208_p3 = scmp.lt.s32.totalorder %s4260_s17, 7  ;;  %p214_p4 = scmp.lt.s32.totalorder %s4262_s22, 63  ;;  %vm637_vm7 = vcmask 130112   ;;  %vm918_vm8 = vcmask 1041409   ;;  %vm919_vm9 = vcmask 1042434   ;;  %vm921_vm10 = vcmask 1043459  }
   0xf   : > { %v4667_v6 = vshrl.u32 %v296_v5, 7  ;;  %v4669_v7 = vand.u32 127, %v296_v5  ;;  %vm923_vm11 = vcmask 1044484   ;;  %vm925_vm12 = vcmask 1045509  }
  0x10   : > { %s8095_s17 = smov (!%p208_p3, %s4260_s17), 7  ;;  %s8097_s22 = smov (!%p214_p4, %s4262_s22), 63  ;;  %vm927_vm13 = vcmask 1046534   ;;  %vm929_vm14 = vcmask 1047559  }
  0x11   : > { %s4261_s18 = sshll.u32 %s8095_s17, 3  ;;  %s4318_s23 = sshll.u32 %s8097_s22, 4  ;;  %v298_v8 = vadd.s32 8, %v4667_v6  ;;  %vm301_vm0 = vcmp.eq.s32.totalorder %v4667_v6, %v4669_v7 }
  0x12   : > { %s211_s21 = scalar_lea.vmem %s7455_s0, %s4261_s18  ;;  %s4675_s26 = scalar_lea.vmem %s7456_s1, %s4318_s23  ;;  %v4690_v13 = vsel %vm301_vm0, 1.0, %v7460_v12 }
  0x13   : > { %v293_v1 = vld [vmem:[%s211_s21 + $0x10] sm:$0xff]  ;;  %v291_v2 = vld [vmem:[%s211_s21] sm:$0xff]  ;;  %v294_v3 = vld [vmem:[%s211_s21 + $0x18] sm:$0xff]  ;;  %vm302_vm1 = vcmp.eq.s32.totalorder %v298_v8, %v4669_v7  ;;  %s224_s23 = scalar_lea.vmem %s7459_s4, %s4261_s18 }
  0x14   : > { %1740 = vperm.xlu1 %4493, %v293_v1   ;;  %1734 = vperm.xlu0 %4492, %v291_v2   ;;  %v292_v4 = vld [vmem:[%s211_s21 + $0x8] sm:$0xff]  ;;  %v4680_v9 = vld [vmem:[%s4675_s26] sm:$0xff]  ;;  %v4684_v10 = vld [vmem:[%s4675_s26 + $0x10] sm:$0xff]  ;;  %v4699_v16 = vsel %vm302_vm1, 1.0, %v7460_v12 }
  0x15   : > { %v4687_v11 = vld [vmem:[%s4675_s26 + $0x8] sm:$0xff]  ;;  %v4693_v14 = vld [vmem:[%s4675_s26 + $0x18] sm:$0xff]  ;;  %v4696_v15 = vld [vmem:[%s4675_s26 + $0x80] sm:$0xff]  ;;  %v307_v19 = vmul.f32 %v4690_v13, %v4680_v9  ;;  %v309_v22 = vmul.f32 %v4690_v13, %v4684_v10 }
  0x16   : > { %v4702_v17 = vld [vmem:[%s4675_s26 + $0x88] sm:$0xff]  ;;  %v245_v18 = vld [vmem:[%s4675_s26 + $0x90] sm:$0xff]  ;;  %v246_v20 = vld [vmem:[%s4675_s26 + $0x98] sm:$0xff]  ;;  %v308_v23 = vmul.f32 %v4699_v16, %v4687_v11  ;;  %v310_v24 = vmul.f32 %v4699_v16, %v4693_v14  ;;  %v323_v25 = vmul.f32 %v4690_v13, %v4696_v15 }
  0x17   : > { %v231_v21 = vld [vmem:[%s4675_s26 + $0x20] sm:$0xff]  ;;  %v324_v26 = vmul.f32 %v4699_v16, %v4702_v17  ;;  %v325_v27 = vmul.f32 %v4690_v13, %v245_v18  ;;  %v326_v28 = vmul.f32 %v4699_v16, %v246_v20  ;;  %v372_v30 = vsel %vm371_vm2, %v307_v19, 0.0  ;;  %v4732_v39 = vld [vmem:[%s4675_s26 + $0x28] sm:$0xff]  ;;  %v4757_v50 = vld [vmem:[%s4675_s26 + $0x110] sm:$0xff] }
  0x18   : > { %1743 = vperm.xlu1 %4493, %v294_v3   ;;  %1737 = vperm.xlu0 %4492, %v292_v4   ;;  %v311_v29 = vmul.f32 %v4690_v13, %v231_v21  ;;  %v378_v31 = vsel %vm371_vm2, %v309_v22, 0.0  ;;  %v375_v32 = vsel %vm371_vm2, %v308_v23, 0.0  ;;  %v381_v33 = vsel %vm371_vm2, %v310_v24, 0.0  ;;  %v4735_v40 = vld [vmem:[%s4675_s26 + $0xa0] sm:$0xff]  ;;  %v4738_v41 = vld [vmem:[%s4675_s26 + $0xa8] sm:$0xff]  ;;  %v4766_v55 = vld [vmem:[%s4675_s26 + $0x118] sm:$0xff] }
  0x19   : > { %v420_v34 = vsel %vm371_vm2, %v323_v25, 0.0  ;;  %v423_v35 = vsel %vm371_vm2, %v324_v26, 0.0  ;;  %v426_v36 = vsel %vm371_vm2, %v325_v27, 0.0  ;;  %v429_v37 = vsel %vm371_vm2, %v326_v28, 0.0  ;;  %v4743_v43 = vld [vmem:[%s4675_s26 + $0x100] sm:$0xff]  ;;  %v4754_v49 = vld [vmem:[%s4675_s26 + $0x108] sm:$0xff] }
  0x1a   : > { %v384_v38 = vsel %vm371_vm2, %v311_v29, 0.0  ;;  %v312_v42 = vmul.f32 %v4699_v16, %v4732_v39  ;;  %v327_v44 = vmul.f32 %v4690_v13, %v4735_v40  ;;  %v328_v46 = vmul.f32 %v4699_v16, %v4738_v41  ;;  %v4769_v56 = vld [vmem:[%s4675_s26 + $0x180] sm:$0xff]  ;;  %v4778_v61 = vld [vmem:[%s4675_s26 + $0x188] sm:$0xff]  ;;  %v4781_v62 = vld [vmem:[%s4675_s26 + $0x190] sm:$0xff] }
  0x1b   : > { %v339_v48 = vmul.f32 %v4690_v13, %v4743_v43  ;;  %v340_v52 = vmul.f32 %v4699_v16, %v4754_v49  ;;  %v341_v54 = vmul.f32 %v4690_v13, %v4757_v50  ;;  %v342_v58 = vmul.f32 %v4699_v16, %v4766_v55  ;;  %v4790_v3 = vld [vmem:[%s4675_s26 + $0x198] sm:$0xff]  ;;  %v4793_v4 = vld [vmem:[%s4675_s26 + $0x30] sm:$0xff]  ;;  %v4817_v27 = vld [vmem:[%s4675_s26 + $0x120] sm:$0xff] }
  0x1c   : > { %v387_v45 = vsel %vm371_vm2, %v312_v42, 0.0  ;;  %v432_v47 = vsel %vm371_vm2, %v327_v44, 0.0  ;;  %v435_v51 = vsel %vm371_vm2, %v328_v46, 0.0  ;;  %v355_v60 = vmul.f32 %v4690_v13, %v4769_v56  ;;  %v4802_v20 = vld [vmem:[%s4675_s26 + $0x38] sm:$0xff]  ;;  %v4805_v21 = vld [vmem:[%s4675_s26 + $0xb0] sm:$0xff]  ;;  %7588 = vst [vmem:[#allocation5_spill] sm:$0xff] %v4817_v27 }
  0x1d   : > { %v468_v53 = vsel %vm371_vm2, %v339_v48, 0.0  ;;  %v471_v57 = vsel %vm371_vm2, %v340_v52, 0.0  ;;  %v474_v59 = vsel %vm371_vm2, %v341_v54, 0.0  ;;  %v477_v63 = vsel %vm371_vm2, %v342_v58, 0.0  ;;  %7585 = vst [vmem:[#allocation2_spill] sm:$0xff] %v4802_v20  ;;  %7586 = vst [vmem:[#allocation3_spill] sm:$0xff] %v4805_v21 }
  0x1e   : > { %v356_v0 = vmul.f32 %v4699_v16, %v4778_v61  ;;  %v516_v1 = vsel %vm371_vm2, %v355_v60, 0.0  ;;  %v357_v2 = vmul.f32 %v4690_v13, %v4781_v62  ;;  %v358_v8 = vmul.f32 %v4699_v16, %v4790_v3  ;;  %v4814_v26 = vld [vmem:[%s4675_s26 + $0xb8] sm:$0xff]  ;;  %v4841_v42 = vld [vmem:[%s4675_s26 + $0x40] sm:$0xff]  ;;  %v4850_v48 = vld [vmem:[%s4675_s26 + $0x48] sm:$0xff] }
  0x1f   : > { %v313_v19 = vmul.f32 %v4690_v13, %v4793_v4  ;;  %v314_v23 = vmul.f32 %v4699_v16, %v4802_v20  ;;  %v329_v25 = vmul.f32 %v4690_v13, %v4805_v21  ;;  %7587 = vst [vmem:[#allocation4_spill] sm:$0xff] %v4814_v26  ;;  %v330_v29 = vmul.f32 %v4699_v16, %v4814_v26  ;;  %v4862_v58 = vld [vmem:[%s4675_s26 + $0xc8] sm:$0xff] }
  0x20   : > { %v519_v5 = vsel %vm371_vm2, %v356_v0, 0.0  ;;  %v522_v18 = vsel %vm371_vm2, %v357_v2, 0.0  ;;  %v525_v22 = vsel %vm371_vm2, %v358_v8, 0.0  ;;  %7592 = vst [vmem:[#allocation9_spill] sm:$0xff] %v4841_v42  ;;  %7593 = vst [vmem:[#allocation10_spill] sm:$0xff] %v4850_v48  ;;  %v4874_v2 = vld [vmem:[%s4675_s26 + $0x138] sm:$0xff] }
  0x21   : > { %v390_v24 = vsel %vm371_vm2, %v313_v19, 0.0  ;;  %v393_v28 = vsel %vm371_vm2, %v314_v23, 0.0  ;;  %7595 = vst [vmem:[#allocation12_spill] sm:$0xff] %v4862_v58  ;;  %7597 = vst [vmem:[#allocation14_spill] sm:$0xff] %v4874_v2  ;;  %v4886_v23 = vld [vmem:[%s4675_s26 + $0x1b8] sm:$0xff] }
  0x22   : > { %7599 = vst [vmem:[#allocation16_spill] sm:$0xff] %v4886_v23 }
  0x37   : > { %373 = vadd.xlane.f32.xlu0 %v372_v30  ;;  %v438_v30 = vsel %vm371_vm2, %v329_v25, 0.0 }
  0x3b   : > { %379 = vadd.xlane.f32.xlu0 %v378_v31  ;;  %v343_v31 = vmul.f32 %v4690_v13, %v4817_v27 }
  0x3c   : > { %376 = vadd.xlane.f32.xlu1 %v375_v32  ;;  %v4826_v32 = vld [vmem:[%s4675_s26 + $0x128] sm:$0xff] }
  0x3d   : > { %7589 = vst [vmem:[#allocation6_spill] sm:$0xff] %v4826_v32 }
  0x3f   : > { %382 = vadd.xlane.f32.xlu0 %v381_v33  ;;  %v4829_v33 = vld [vmem:[%s4675_s26 + $0x1a0] sm:$0xff] }
  0x40   : > { %421 = vadd.xlane.f32.xlu1 %v420_v34  ;;  %7590 = vst [vmem:[#allocation7_spill] sm:$0xff] %v4829_v33  ;;  %v441_v34 = vsel %vm371_vm2, %v330_v29, 0.0 }
  0x43   : > { %424 = vadd.xlane.f32.xlu0 %v423_v35  ;;  %v344_v35 = vmul.f32 %v4699_v16, %v4826_v32 }
  0x44   : > { %427 = vadd.xlane.f32.xlu1 %v426_v36  ;;  %v480_v36 = vsel %vm371_vm2, %v343_v31, 0.0  ;;  %v4898_v31 = vld [vmem:[%s4675_s26 + $0x58] sm:$0xff] }
  0x45   : > { %v483_v44 = vsel %vm371_vm2, %v344_v35, 0.0  ;;  %7601 = vst [vmem:[#allocation18_spill] sm:$0xff] %v4898_v31 }
  0x47   : > { %430 = vadd.xlane.f32.xlu0 %v429_v37  ;;  %v359_v37 = vmul.f32 %v4690_v13, %v4829_v33 }
  0x48   : > { %385 = vadd.xlane.f32.xlu1 %v384_v38  ;;  %v4838_v38 = vld [vmem:[%s4675_s26 + $0x1a8] sm:$0xff] }
  0x49   : > { %7591 = vst [vmem:[#allocation8_spill] sm:$0xff] %v4838_v38  ;;  %v528_v46 = vsel %vm371_vm2, %v359_v37, 0.0 }
  0x4b   : > { %388 = vadd.xlane.f32.xlu0 %v387_v45  ;;  %v360_v45 = vmul.f32 %v4699_v16, %v4838_v38 }
  0x4c   : > { %433 = vadd.xlane.f32.xlu1 %v432_v47  ;;  %v315_v47 = vmul.f32 %v4690_v13, %v4841_v42 }
  0x4d   : > { %v531_v52 = vsel %vm371_vm2, %v360_v45, 0.0  ;;  %v4910_v45 = vld [vmem:[%s4675_s26 + $0xd8] sm:$0xff] }
  0x4e   : > { %v396_v54 = vsel %vm371_vm2, %v315_v47, 0.0  ;;  %7603 = vst [vmem:[#allocation20_spill] sm:$0xff] %v4910_v45 }
  0x4f   : > { %436 = vadd.xlane.f32.xlu0 %v435_v51  ;;  %v4853_v51 = vld [vmem:[%s4675_s26 + $0xc0] sm:$0xff] }
  0x50   : > { %469 = vadd.xlane.f32.xlu1 %v468_v53  ;;  %7594 = vst [vmem:[#allocation11_spill] sm:$0xff] %v4853_v51  ;;  %v316_v53 = vmul.f32 %v4699_v16, %v4850_v48 }
  0x52   : > { %v399_v60 = vsel %vm371_vm2, %v316_v53, 0.0 }
  0x53   : > { %472 = vadd.xlane.f32.xlu0 %v471_v57  ;;  %v331_v57 = vmul.f32 %v4690_v13, %v4853_v51 }
  0x54   : > { %475 = vadd.xlane.f32.xlu1 %v474_v59  ;;  %v4865_v59 = vld [vmem:[%s4675_s26 + $0x130] sm:$0xff] }
  0x55   : > { %7596 = vst [vmem:[#allocation13_spill] sm:$0xff] %v4865_v59  ;;  %v444_v0 = vsel %vm371_vm2, %v331_v57, 0.0  ;;  %v268_v57 = vld [vmem:[%s4675_s26 + $0x148] sm:$0xff] }
  0x57   : > { %478 = vadd.xlane.f32.xlu0 %v477_v63  ;;  %v332_v63 = vmul.f32 %v4699_v16, %v4862_v58 }
  0x58   : > { %517 = vadd.xlane.f32.xlu1 %v516_v1  ;;  %v345_v1 = vmul.f32 %v4690_v13, %v4865_v59 }
  0x59   : > { %v447_v8 = vsel %vm371_vm2, %v332_v63, 0.0 }
  0x5a   : > { %v486_v19 = vsel %vm371_vm2, %v345_v1, 0.0 }
  0x5b   : > { %520 = vadd.xlane.f32.xlu0 %v519_v5  ;;  %v4877_v5 = vld [vmem:[%s4675_s26 + $0x1b0] sm:$0xff] }
  0x5c   : > { %523 = vadd.xlane.f32.xlu1 %v522_v18  ;;  %7598 = vst [vmem:[#allocation15_spill] sm:$0xff] %v4877_v5  ;;  %v346_v18 = vmul.f32 %v4699_v16, %v4874_v2 }
  0x5e   : > { %v489_v25 = vsel %vm371_vm2, %v346_v18, 0.0  ;;  %v284_v18 = vld [vmem:[%s4675_s26 + $0x1c8] sm:$0xff] }
  0x5f   : > { %526 = vadd.xlane.f32.xlu0 %v525_v22  ;;  %v361_v22 = vmul.f32 %v4690_v13, %v4877_v5 }
  0x60   : > { %391 = vadd.xlane.f32.xlu1 %v390_v24  ;;  %v4889_v24 = vld [vmem:[%s4675_s26 + $0x50] sm:$0xff] }
  0x61   : > { %7600 = vst [vmem:[#allocation17_spill] sm:$0xff] %v4889_v24  ;;  %v534_v29 = vsel %vm371_vm2, %v361_v22, 0.0 }
  0x63   : > { %394 = vadd.xlane.f32.xlu0 %v393_v28  ;;  %v362_v28 = vmul.f32 %v4699_v16, %v4886_v23 }
  0x64   : > { %439 = vadd.xlane.f32.xlu1 %v438_v30  ;;  %v317_v30 = vmul.f32 %v4690_v13, %v4889_v24 }
  0x65   : > { %v537_v35 = vsel %vm371_vm2, %v362_v28, 0.0 }
  0x66   : > { %v402_v37 = vsel %vm371_vm2, %v317_v30, 0.0  ;;  %v240_v30 = vld [vmem:[%s4675_s26 + $0x68] sm:$0xff] }
  0x67   : > { %442 = vadd.xlane.f32.xlu0 %v441_v34  ;;  %v4901_v34 = vld [vmem:[%s4675_s26 + $0xd0] sm:$0xff] }
  0x68   : > { %481 = vadd.xlane.f32.xlu1 %v480_v36  ;;  %7602 = vst [vmem:[#allocation19_spill] sm:$0xff] %v4901_v34  ;;  %v318_v36 = vmul.f32 %v4699_v16, %v4898_v31 }
  0x6a   : > { %v405_v47 = vsel %vm371_vm2, %v318_v36, 0.0 }
  0x6b   : > { %484 = vadd.xlane.f32.xlu0 %v483_v44  ;;  %v333_v44 = vmul.f32 %v4690_v13, %v4901_v34 }
  0x6c   : > { %529 = vadd.xlane.f32.xlu1 %v528_v46  ;;  %v267_v46 = vld [vmem:[%s4675_s26 + $0x140] sm:$0xff] }
  0x6d   : > { %v450_v53 = vsel %vm371_vm2, %v333_v44, 0.0 }
  0x6f   : > { %532 = vadd.xlane.f32.xlu0 %v531_v52  ;;  %v334_v52 = vmul.f32 %v4699_v16, %v4910_v45  ;;  %v7625_v45 = vmov 0.0  }
  0x70   : > { %397 = vadd.xlane.f32.xlu1 %v396_v54  ;;  %v347_v54 = vmul.f32 %v4690_v13, %v267_v46 }
  0x71   : > { %v453_v63 = vsel %vm371_vm2, %v334_v52, 0.0  ;;  %v269_v52 = vld [vmem:[%s4675_s26 + $0x150] sm:$0xff] }
  0x72   : > { %v492_v1 = vsel %vm371_vm2, %v347_v54, 0.0 }
  0x73   : > { %400 = vadd.xlane.f32.xlu0 %v399_v60  ;;  %v283_v60 = vld [vmem:[%s4675_s26 + $0x1c0] sm:$0xff] }
  0x74   : > { %445 = vadd.xlane.f32.xlu1 %v444_v0  ;;  %v348_v0 = vmul.f32 %v4699_v16, %v268_v57 }
  0x76   : > { %v495_v22 = vsel %vm371_vm2, %v348_v0, 0.0  ;;  %v285_v0 = vld [vmem:[%s4675_s26 + $0x1d0] sm:$0xff] }
  0x77   : > { %448 = vadd.xlane.f32.xlu0 %v447_v8  ;;  %v363_v8 = vmul.f32 %v4690_v13, %v283_v60  ;;  %v349_v60 = vmul.f32 %v4690_v13, %v269_v52 }
  0x78   : > { %487 = vadd.xlane.f32.xlu1 %v486_v19  ;;  %v239_v19 = vld [vmem:[%s4675_s26 + $0x60] sm:$0xff] }
  0x79   : > { %v540_v28 = vsel %vm371_vm2, %v363_v8, 0.0 }
  0x7b   : > { %490 = vadd.xlane.f32.xlu0 %v489_v25  ;;  %v364_v25 = vmul.f32 %v4699_v16, %v284_v18  ;;  %v498_v18 = vsel %vm371_vm2, %v349_v60, 0.0 }
  0x7c   : > { %535 = vadd.xlane.f32.xlu1 %v534_v29  ;;  %v319_v29 = vmul.f32 %v4690_v13, %v239_v19  ;;  %v365_v19 = vmul.f32 %v4690_v13, %v285_v0 }
  0x7d   : > { %v543_v36 = vsel %vm371_vm2, %v364_v25, 0.0  ;;  %v241_v25 = vld [vmem:[%s4675_s26 + $0x70] sm:$0xff] }
  0x7e   : > { %v408_v44 = vsel %vm371_vm2, %v319_v29, 0.0 }
  0x7f   : > { %538 = vadd.xlane.f32.xlu0 %v537_v35  ;;  %v255_v35 = vld [vmem:[%s4675_s26 + $0xe0] sm:$0xff] }
  0x80   : > { %403 = vadd.xlane.f32.xlu1 %v402_v37  ;;  %v320_v37 = vmul.f32 %v4699_v16, %v240_v30  ;;  %v335_v46 = vmul.f32 %v4690_v13, %v255_v35  ;;  %v546_v30 = vsel %vm371_vm2, %v365_v19, 0.0  ;;  %v321_v35 = vmul.f32 %v4690_v13, %v241_v25 }
  0x82   : > { %v456_v57 = vsel %vm371_vm2, %v335_v46, 0.0 }
  0x83   : > { %406 = vadd.xlane.f32.xlu0 %v405_v47  ;;  %v256_v47 = vld [vmem:[%s4675_s26 + $0xe8] sm:$0xff] }
  0x84   : > { %451 = vadd.xlane.f32.xlu1 %v450_v53  ;;  %v411_v53 = vsel %vm371_vm2, %v320_v37, 0.0  ;;  %v336_v54 = vmul.f32 %v4699_v16, %v256_v47  ;;  %v257_v37 = vld [vmem:[%s4675_s26 + $0xf0] sm:$0xff]  ;;  %v414_v47 = vsel %vm371_vm2, %v321_v35, 0.0 }
  0x85   : > { %v337_v52 = vmul.f32 %v4690_v13, %v257_v37 }
  0x87   : > { %454 = vadd.xlane.f32.xlu0 %v453_v63  ;;  %v270_v63 = vld [vmem:[%s4675_s26 + $0x158] sm:$0xff] }
  0x88   : > { %493 = vadd.xlane.f32.xlu1 %v492_v1  ;;  %v459_v1 = vsel %vm371_vm2, %v336_v54, 0.0  ;;  %v350_v8 = vmul.f32 %v4699_v16, %v270_v63  ;;  %v271_v54 = vld [vmem:[%s4675_s26 + $0x160] sm:$0xff]  ;;  %v462_v63 = vsel %vm371_vm2, %v337_v52, 0.0 }
  0x89   : > { %v351_v0 = vmul.f32 %v4690_v13, %v271_v54 }
  0x8b   : > { %496 = vadd.xlane.f32.xlu0 %v495_v22  ;;  %v286_v22 = vld [vmem:[%s4675_s26 + $0x1d8] sm:$0xff] }
  0x8c   : > { %541 = vadd.xlane.f32.xlu1 %v540_v28  ;;  %v501_v28 = vsel %vm371_vm2, %v350_v8, 0.0  ;;  %v366_v29 = vmul.f32 %v4699_v16, %v286_v22  ;;  %v287_v8 = vld [vmem:[%s4675_s26 + $0x1e0] sm:$0xff]  ;;  %v504_v22 = vsel %vm371_vm2, %v351_v0, 0.0 }
  0x8d   : > { %v367_v25 = vmul.f32 %v4690_v13, %v287_v8 }
  0x8f   : > { %544 = vadd.xlane.f32.xlu0 %v543_v36  ;;  %v242_v36 = vld [vmem:[%s4675_s26 + $0x78] sm:$0xff] }
  0x90   : > { %409 = vadd.xlane.f32.xlu1 %v408_v44  ;;  %v549_v44 = vsel %vm371_vm2, %v366_v29, 0.0  ;;  %v322_v46 = vmul.f32 %v4699_v16, %v242_v36  ;;  %v273_v29 = vld [vmem:[%s4675_s26 + $0x170] sm:$0xff]  ;;  %v552_v36 = vsel %vm371_vm2, %v367_v25, 0.0 }
  0x91   : > { %v353_v37 = vmul.f32 %v4690_v13, %v273_v29  ;;  %v5001_v29 = vsub.s32 1, %v4667_v6 }
  0x93   : > { %412 = vadd.xlane.f32.xlu0 %v411_v53  ;;  %v258_v53 = vld [vmem:[%s4675_s26 + $0xf8] sm:$0xff]  ;;  %v1735_v8 = vpop.permute.xlu0 %1734  ;;  %7607 = vst [vmem:[#allocation24_spill] sm:$0xff] %v5001_v29 }
  0x94   : > { %457 = vadd.xlane.f32.xlu1 %v456_v57  ;;  %v417_v57 = vsel %vm371_vm2, %v322_v46, 0.0  ;;  %v338_v60 = vmul.f32 %v4699_v16, %v258_v53  ;;  %v289_v46 = vld [vmem:[%s4675_s26 + $0x1f0] sm:$0xff]  ;;  %v510_v53 = vsel %vm371_vm2, %v353_v37, 0.0  ;;  %vm1745_vm3 = vcmp.eq.s32.totalorder %v4669_v7, %v1735_v8 }
  0x95   : > { %v369_v54 = vmul.f32 %v4690_v13, %v289_v46  ;;  %v4991_v13 = vsel %vm1745_vm3, 1.0, %v7460_v12 }
  0x96   : > { %7604 = vst [vmem:[#allocation21_spill] sm:$0xff] %v4991_v13 }
  0x97   : > { %460 = vadd.xlane.f32.xlu0 %v459_v1  ;;  %v272_v1 = vld [vmem:[%s4675_s26 + $0x168] sm:$0xff]  ;;  %v558_v0 = vsel %vm371_vm2, %v369_v54, 0.0 }
  0x98   : > { %499 = vadd.xlane.f32.xlu1 %v498_v18  ;;  %v465_v18 = vsel %vm371_vm2, %v338_v60, 0.0  ;;  %v352_v19 = vmul.f32 %v4699_v16, %v272_v1 }
  0x9b   : > { %502 = vadd.xlane.f32.xlu0 %v501_v28  ;;  %v288_v28 = vld [vmem:[%s4675_s26 + $0x1e8] sm:$0xff] }
  0x9c   : > { %547 = vadd.xlane.f32.xlu1 %v546_v30  ;;  %v507_v30 = vsel %vm371_vm2, %v352_v19, 0.0  ;;  %v368_v35 = vmul.f32 %v4699_v16, %v288_v28  ;;  %v1738_v19 = vpop.permute.xlu0 %1737 }
  0x9d   : > { %vm1746_vm4 = vcmp.eq.s32.totalorder %v4669_v7, %v1738_v19 }
  0x9e   : > { %v5011_v37 = vsel %vm1746_vm4, 1.0, %v7460_v12 }
  0x9f   : > { %550 = vadd.xlane.f32.xlu0 %v549_v44  ;;  %v274_v44 = vld [vmem:[%s4675_s26 + $0x178] sm:$0xff]  ;;  %7610 = vst [vmem:[#allocation27_spill] sm:$0xff] %v5011_v37  ;;  %v1859_v54 = vrot.slane %v5011_v37, %v5001_v29 }
  0xa0   : > { %415 = vadd.xlane.f32.xlu1 %v414_v47  ;;  %v555_v47 = vsel %vm371_vm2, %v368_v35, 0.0  ;;  %v354_v52 = vmul.f32 %v4699_v16, %v274_v44 }
  0xa2   : > { %v513_v60 = vsel %vm371_vm2, %v354_v52, 0.0 }
  0xa3   : > { %418 = vadd.xlane.f32.xlu0 %v417_v57  ;;  %v290_v57 = vld [vmem:[%s4675_s26 + $0x1f8] sm:$0xff] }
  0xa4   : > { %463 = vadd.xlane.f32.xlu1 %v462_v63  ;;  %v370_v63 = vmul.f32 %v4699_v16, %v290_v57 }
  0xa6   : > { %v561_v1 = vsel %vm371_vm2, %v370_v63, 0.0  ;;  %v5030_v63 = vsub.s32 2, %v4667_v6 }
  0xa7   : > { %466 = vadd.xlane.f32.xlu0 %v465_v18  ;;  %v1741_v18 = vpop.permute.xlu1 %1740 }
  0xa8   : > { %505 = vadd.xlane.f32.xlu1 %v504_v22  ;;  %v4994_v22 = vsub.s32 0, %v4667_v6  ;;  %7617 = vst [vmem:[#allocation34_spill] sm:$0xff] %v5030_v63  ;;  %vm1747_vm5 = vcmp.eq.s32.totalorder %v4669_v7, %v1741_v18  ;;  %v1870_v19 = vrot.slane %v5011_v37, %v5030_v63 }
  0xaa   : > { %7605 = vst [vmem:[#allocation22_spill] sm:$0xff] %v4994_v22  ;;  %v1760_v16 = vrot.slane %v4991_v13, %v4994_v22 }
  0xab   : > { %508 = vadd.xlane.f32.xlu0 %v507_v30  ;;  %v1744_v28 = vpop.permute.xlu1 %1743  ;;  %v1771_v30 = vrot.slane %v4991_v13, %v5001_v29 }
  0xac   : > { %553 = vadd.xlane.f32.xlu1 %v552_v36  ;;  %vm1748_vm6 = vcmp.eq.s32.totalorder %v4669_v7, %v1744_v28 }
  0xad   : > { %v5058_v34 = vsel %vm1748_vm6, 1.0, %v7625_v45 }
  0xae   : > { %7626 = vst [vmem:[#allocation42_spill] sm:$0xff] %v5058_v34  ;;  %v2024_v24 = vrot.slane %v5058_v34, %v4994_v22 }
  0xaf   : > { %556 = vadd.xlane.f32.xlu0 %v555_v47  ;;  %v1848_v47 = vrot.slane %v5011_v37, %v4994_v22 }
  0xb0   : > { %511 = vadd.xlane.f32.xlu1 %v510_v53 }
  0xb3   : > { %514 = vadd.xlane.f32.xlu0 %v513_v60 }
  0xb4   : > { %559 = vadd.xlane.f32.xlu1 %v558_v0  ;;  %v1782_v0 = vrot.slane %v4991_v13, %v5030_v63 }
  0xb7   : > { %562 = vadd.xlane.f32.xlu0 %v561_v1 }
  0xc4   : > { %v4998_v25 = vpop.xlane.xlu0 %373 }
  0xc5   : > { %7606 = vst [vmem:[#allocation23_spill] sm:$0xff] %v4998_v25  ;;  %1762 = vbcast.lane.b32.xlu1 %v1760_v16, 256 }
  0xc8   : > { %v5005_v35 = vpop.xlane.xlu0 %379 }
  0xc9   : > { %7608 = vst [vmem:[#allocation25_spill] sm:$0xff] %v5005_v35  ;;  %v5008_v36 = vpop.xlane.xlu1 %376  ;;  %1773 = vbcast.lane.b32.xlu1 %v1771_v30, 256 }
  0xca   : > { %7609 = vst [vmem:[#allocation26_spill] sm:$0xff] %v5008_v36 }
  0xcc   : > { %v5013_v44 = vpop.xlane.xlu0 %382 }
  0xcd   : > { %7611 = vst [vmem:[#allocation28_spill] sm:$0xff] %v5013_v44  ;;  %v5015_v46 = vpop.xlane.xlu1 %421  ;;  %1766 = vbcast.lane.b32.xlu0 %v1760_v16, 264  ;;  %1777 = vbcast.lane.b32.xlu1 %v1771_v30, 264  ;;  %v5042_v16 = vsel %vm1747_vm5, 1.0, %v7460_v12 }
  0xce   : > { %7612 = vst [vmem:[#allocation29_spill] sm:$0xff] %v5015_v46  ;;  %7620 = vst [vmem:[#allocation37_spill] sm:$0xff] %v5042_v16  ;;  %v1947_v12 = vrot.slane %v5042_v16, %v5001_v29 }
  0xd0   : > { %v5019_v52 = vpop.xlane.xlu0 %424 }
  0xd1   : > { %7613 = vst [vmem:[#allocation30_spill] sm:$0xff] %v5019_v52  ;;  %v5021_v53 = vpop.xlane.xlu1 %427  ;;  %1854 = vbcast.lane.b32.xlu1 %v1848_v47, 264  ;;  %1850 = vbcast.lane.b32.xlu0 %v1848_v47, 256 }
  0xd2   : > { %7614 = vst [vmem:[#allocation31_spill] sm:$0xff] %v5021_v53 }
  0xd4   : > { %v5025_v57 = vpop.xlane.xlu0 %430 }
  0xd5   : > { %7615 = vst [vmem:[#allocation32_spill] sm:$0xff] %v5025_v57  ;;  %v5027_v60 = vpop.xlane.xlu1 %385  ;;  %1865 = vbcast.lane.b32.xlu1 %v1859_v54, 264  ;;  %1861 = vbcast.lane.b32.xlu0 %v1859_v54, 256  ;;  %v1936_v54 = vrot.slane %v5042_v16, %v4994_v22 }
  0xd6   : > { %7616 = vst [vmem:[#allocation33_spill] sm:$0xff] %v5027_v60 }
  0xd8   : > { %v5034_v1 = vpop.xlane.xlu0 %388 }
  0xd9   : > { %7618 = vst [vmem:[#allocation35_spill] sm:$0xff] %v5034_v1  ;;  %v5037_v8 = vpop.xlane.xlu1 %433  ;;  %1788 = vbcast.lane.b32.xlu1 %v1782_v0, 264  ;;  %1784 = vbcast.lane.b32.xlu0 %v1782_v0, 256 }
  0xda   : > { %7619 = vst [vmem:[#allocation36_spill] sm:$0xff] %v5037_v8 }
  0xdc   : > { %v5044_v30 = vpop.xlane.xlu0 %436 }
  0xdd   : > { %7621 = vst [vmem:[#allocation38_spill] sm:$0xff] %v5044_v30  ;;  %v5046_v47 = vpop.xlane.xlu1 %469  ;;  %1876 = vbcast.lane.b32.xlu1 %v1870_v19, 264  ;;  %1872 = vbcast.lane.b32.xlu0 %v1870_v19, 256 }
  0xde   : > { %7622 = vst [vmem:[#allocation39_spill] sm:$0xff] %v5046_v47 }
  0xe0   : > { %v5050_v18 = vpop.xlane.xlu0 %472 }
  0xe1   : > { %7623 = vst [vmem:[#allocation40_spill] sm:$0xff] %v5050_v18  ;;  %v5053_v0 = vpop.xlane.xlu1 %475  ;;  %1942 = vbcast.lane.b32.xlu1 %v1936_v54, 264  ;;  %1938 = vbcast.lane.b32.xlu0 %v1936_v54, 256  ;;  %v2035_v54 = vrot.slane %v5058_v34, %v5001_v29 }
  0xe2   : > { %7624 = vst [vmem:[#allocation41_spill] sm:$0xff] %v5053_v0 }
  0xe4   : > { %v5060_v31 = vpop.xlane.xlu0 %478 }
  0xe5   : > { %7627 = vst [vmem:[#allocation43_spill] sm:$0xff] %v5060_v31  ;;  %v5062_v19 = vpop.xlane.xlu1 %517  ;;  %1953 = vbcast.lane.b32.xlu1 %v1947_v12, 264  ;;  %1949 = vbcast.lane.b32.xlu0 %v1947_v12, 256  ;;  %v5077_v12 = vsub.s32 3, %v4667_v6 }
  0xe6   : > { %7628 = vst [vmem:[#allocation44_spill] sm:$0xff] %v5062_v19 }
  0xe7   : > { %7633 = vst [vmem:[#allocation49_spill] sm:$0xff] %v5077_v12  ;;  %v1793_v22 = vrot.slane %v4991_v13, %v5077_v12 }
  0xe8   : > { %v5066_v28 = vpop.xlane.xlu0 %520 }
  0xe9   : > { %7629 = vst [vmem:[#allocation45_spill] sm:$0xff] %v5066_v28  ;;  %v5068_v23 = vpop.xlane.xlu1 %523  ;;  %2030 = vbcast.lane.b32.xlu1 %v2024_v24, 264  ;;  %2026 = vbcast.lane.b32.xlu0 %v2024_v24, 256  ;;  %v1881_v24 = vrot.slane %v5011_v37, %v5077_v12 }
  0xea   : > { %7630 = vst [vmem:[#allocation46_spill] sm:$0xff] %v5068_v23 }
  0xec   : > { %v5072_v45 = vpop.xlane.xlu0 %526 }
  0xed   : > { %7631 = vst [vmem:[#allocation47_spill] sm:$0xff] %v5072_v45  ;;  %v5074_v5 = vpop.xlane.xlu1 %391  ;;  %2041 = vbcast.lane.b32.xlu1 %v2035_v54, 264  ;;  %2037 = vbcast.lane.b32.xlu0 %v2035_v54, 256  ;;  %v1958_v54 = vrot.slane %v5042_v16, %v5030_v63 }
  0xee   : > { %7632 = vst [vmem:[#allocation48_spill] sm:$0xff] %v5074_v5 }
  0xf0   : > { %v5081_v2 = vpop.xlane.xlu0 %394 }
  0xf1   : > { %7634 = vst [vmem:[#allocation50_spill] sm:$0xff] %v5081_v2  ;;  %v5083_v59 = vpop.xlane.xlu1 %439  ;;  %1799 = vbcast.lane.b32.xlu1 %v1793_v22, 264  ;;  %1795 = vbcast.lane.b32.xlu0 %v1793_v22, 256  ;;  %v2046_v22 = vrot.slane %v5058_v34, %v5030_v63 }
  0xf2   : > { %7635 = vst [vmem:[#allocation51_spill] sm:$0xff] %v5083_v59 }
  0xf4   : > { %v5087_v29 = vpop.xlane.xlu0 %442 }
  0xf5   : > { %7636 = vst [vmem:[#allocation52_spill] sm:$0xff] %v5087_v29  ;;  %v5089_v58 = vpop.xlane.xlu1 %481  ;;  %1887 = vbcast.lane.b32.xlu1 %v1881_v24, 264  ;;  %1883 = vbcast.lane.b32.xlu0 %v1881_v24, 256  ;;  %v5104_v24 = vsub.s32 4, %v4667_v6 }
  0xf6   : > { %7637 = vst [vmem:[#allocation53_spill] sm:$0xff] %v5089_v58 }
  0xf7   : > { %7642 = vst [vmem:[#allocation58_spill] sm:$0xff] %v5104_v24  ;;  %v1804_v33 = vrot.slane %v4991_v13, %v5104_v24 }
  0xf8   : > { %v5093_v51 = vpop.xlane.xlu0 %484 }
  0xf9   : > { %7638 = vst [vmem:[#allocation54_spill] sm:$0xff] %v5093_v51  ;;  %v5095_v48 = vpop.xlane.xlu1 %529  ;;  %1964 = vbcast.lane.b32.xlu1 %v1958_v54, 264  ;;  %1960 = vbcast.lane.b32.xlu0 %v1958_v54, 256  ;;  %v1892_v54 = vrot.slane %v5011_v37, %v5104_v24 }
  0xfa   : > { %7639 = vst [vmem:[#allocation55_spill] sm:$0xff] %v5095_v48 }
  0xfc   : > { %v5099_v42 = vpop.xlane.xlu0 %532 }
  0xfd   : > { %7640 = vst [vmem:[#allocation56_spill] sm:$0xff] %v5099_v42  ;;  %v5101_v38 = vpop.xlane.xlu1 %397  ;;  %2052 = vbcast.lane.b32.xlu1 %v2046_v22, 264  ;;  %2048 = vbcast.lane.b32.xlu0 %v2046_v22, 256  ;;  %v1969_v22 = vrot.slane %v5042_v16, %v5077_v12 }
  0xfe   : > { %7641 = vst [vmem:[#allocation57_spill] sm:$0xff] %v5101_v38 }
 0x100   : > { %v5108_v32 = vpop.xlane.xlu0 %400 }
 0x101   : > { %7643 = vst [vmem:[#allocation59_spill] sm:$0xff] %v5108_v32  ;;  %v5110_v27 = vpop.xlane.xlu1 %445  ;;  %1810 = vbcast.lane.b32.xlu1 %v1804_v33, 264  ;;  %1806 = vbcast.lane.b32.xlu0 %v1804_v33, 256  ;;  %v2057_v33 = vrot.slane %v5058_v34, %v5077_v12 }
 0x102   : > { %7644 = vst [vmem:[#allocation60_spill] sm:$0xff] %v5110_v27 }
 0x104   : > { %v5114_v63 = vpop.xlane.xlu0 %448 }
 0x105   : > { %7645 = vst [vmem:[#allocation61_spill] sm:$0xff] %v5114_v63  ;;  %v5116_v26 = vpop.xlane.xlu1 %487  ;;  %1898 = vbcast.lane.b32.xlu1 %v1892_v54, 264  ;;  %1894 = vbcast.lane.b32.xlu0 %v1892_v54, 256  ;;  %v5131_v54 = vsub.s32 5, %v4667_v6 }
 0x106   : > { %7646 = vst [vmem:[#allocation62_spill] sm:$0xff] %v5116_v26 }
 0x107   : > { %7651 = vst [vmem:[#allocation67_spill] sm:$0xff] %v5131_v54  ;;  %v1815_v26 = vrot.slane %v4991_v13, %v5131_v54 }
 0x108   : > { %v5120_v38 = vpop.xlane.xlu0 %490 }
 0x109   : > { %7647 = vst [vmem:[#allocation63_spill] sm:$0xff] %v5120_v38  ;;  %v5122_v21 = vpop.xlane.xlu1 %535  ;;  %1975 = vbcast.lane.b32.xlu1 %v1969_v22, 264  ;;  %1971 = vbcast.lane.b32.xlu0 %v1969_v22, 256  ;;  %v1903_v22 = vrot.slane %v5011_v37, %v5131_v54 }
 0x10a   : > { %7648 = vst [vmem:[#allocation64_spill] sm:$0xff] %v5122_v21 }
 0x10c   : > { %v5126_v27 = vpop.xlane.xlu0 %538 }
 0x10d   : > { %7649 = vst [vmem:[#allocation65_spill] sm:$0xff] %v5126_v27  ;;  %v5128_v20 = vpop.xlane.xlu1 %403  ;;  %2063 = vbcast.lane.b32.xlu1 %v2057_v33, 264  ;;  %2059 = vbcast.lane.b32.xlu0 %v2057_v33, 256  ;;  %v1980_v33 = vrot.slane %v5042_v16, %v5104_v24 }
 0x10e   : > { %7650 = vst [vmem:[#allocation66_spill] sm:$0xff] %v5128_v20 }
 0x110   : > { %v5135_v38 = vpop.xlane.xlu0 %406 }
 0x111   : > { %7652 = vst [vmem:[#allocation68_spill] sm:$0xff] %v5135_v38  ;;  %v5137_v21 = vpop.xlane.xlu1 %451  ;;  %1821 = vbcast.lane.b32.xlu1 %v1815_v26, 264  ;;  %1817 = vbcast.lane.b32.xlu0 %v1815_v26, 256  ;;  %v2068_v26 = vrot.slane %v5058_v34, %v5104_v24 }
 0x112   : > { %7653 = vst [vmem:[#allocation69_spill] sm:$0xff] %v5137_v21 }
 0x114   : > { %v5141_v12 = vpop.xlane.xlu0 %454 }
 0x115   : > { %7654 = vst [vmem:[#allocation70_spill] sm:$0xff] %v5141_v12  ;;  %v5143_v20 = vpop.xlane.xlu1 %493  ;;  %1909 = vbcast.lane.b32.xlu1 %v1903_v22, 264  ;;  %1905 = vbcast.lane.b32.xlu0 %v1903_v22, 256  ;;  %v5158_v22 = vsub.s32 6, %v4667_v6 }
 0x116   : > { %7655 = vst [vmem:[#allocation71_spill] sm:$0xff] %v5143_v20 }
 0x117   : > { %7660 = vst [vmem:[#allocation76_spill] sm:$0xff] %v5158_v22  ;;  %v1826_v20 = vrot.slane %v4991_v13, %v5158_v22  ;;  %v1914_v24 = vrot.slane %v5011_v37, %v5158_v22 }
 0x118   : > { %v5147_v27 = vpop.xlane.xlu0 %496 }
 0x119   : > { %7656 = vst [vmem:[#allocation72_spill] sm:$0xff] %v5147_v27  ;;  %v5149_v63 = vpop.xlane.xlu1 %541  ;;  %1986 = vbcast.lane.b32.xlu1 %v1980_v33, 264  ;;  %1982 = vbcast.lane.b32.xlu0 %v1980_v33, 256  ;;  %v632_v33 = vadd.s32 4294967288, %v4669_v7 }
 0x11a   : > { %7657 = vst [vmem:[#allocation73_spill] sm:$0xff] %v5149_v63 }
 0x11c   : > { %v5153_v21 = vpop.xlane.xlu0 %544 }
 0x11d   : > { %7658 = vst [vmem:[#allocation74_spill] sm:$0xff] %v5153_v21  ;;  %v5155_v38 = vpop.xlane.xlu1 %409  ;;  %2074 = vbcast.lane.b32.xlu1 %v2068_v26, 264  ;;  %2070 = vbcast.lane.b32.xlu0 %v2068_v26, 256  ;;  %v5175_v21 = vsub.s32 %v4669_v7, %v4667_v6  ;;  %v2079_v7 = vrot.slane %v5058_v34, %v5131_v54 }
 0x11e   : > { %7659 = vst [vmem:[#allocation75_spill] sm:$0xff] %v5155_v38 }
 0x120   : > { %v5162_v27 = vpop.xlane.xlu0 %412 }
 0x121   : > { %7661 = vst [vmem:[#allocation77_spill] sm:$0xff] %v5162_v27  ;;  %v5164_v63 = vpop.xlane.xlu1 %457  ;;  %1832 = vbcast.lane.b32.xlu1 %v1826_v20, 264  ;;  %1828 = vbcast.lane.b32.xlu0 %v1826_v20, 256  ;;  %v5178_v27 = vsub.s32 %v632_v33, %v4667_v6  ;;  %v1991_v20 = vrot.slane %v5042_v16, %v5131_v54 }
 0x122   : > { %7662 = vst [vmem:[#allocation78_spill] sm:$0xff] %v5164_v63 }
 0x124   : > { %v5169_v38 = vpop.xlane.xlu0 %460 }
 0x125   : > { %7663 = vst [vmem:[#allocation79_spill] sm:$0xff] %v5169_v38  ;;  %v5171_v26 = vpop.xlane.xlu1 %499  ;;  %1920 = vbcast.lane.b32.xlu1 %v1914_v24, 264  ;;  %1916 = vbcast.lane.b32.xlu0 %v1914_v24, 256  ;;  %v636_v24 = vrot.slane %v5008_v36, %v5178_v27  ;;  %v642_v38 = vrot.slane %v5005_v35, %v5175_v21 }
 0x126   : > { %7664 = vst [vmem:[#allocation80_spill] sm:$0xff] %v5171_v26  ;;  %v631_v26 = vrot.slane %v4998_v25, %v5175_v21  ;;  %v709_v36 = vrot.slane %v5019_v52, %v5178_v27  ;;  %v705_v35 = vrot.slane %v5015_v46, %v5175_v21  ;;  %v718_v52 = vrot.slane %v5025_v57, %v5178_v27 }
 0x128   : > { %v5182_v63 = vpop.xlane.xlu0 %502  ;;  %v638_v25 = vsel %vm637_vm7, %v636_v24, %v631_v26  ;;  %v2002_v26 = vrot.slane %v5042_v16, %v5158_v22  ;;  %v710_v46 = vsel %vm637_vm7, %v709_v36, %v705_v35 }
 0x129   : > { %7665 = vst [vmem:[#allocation81_spill] sm:$0xff] %v5182_v63  ;;  %v5184_v12 = vpop.xlane.xlu1 %547  ;;  %1997 = vbcast.lane.b32.xlu1 %v1991_v20, 264  ;;  %1993 = vbcast.lane.b32.xlu0 %v1991_v20, 256  ;;  %v5201_v20 = vsub.s32 7, %v4667_v6  ;;  %v1149_v24 = vmul.f32 %v638_v25, %v4680_v9  ;;  %v727_v9 = vrot.slane %v5044_v30, %v5178_v27 }
 0x12a   : > { %7666 = vst [vmem:[#allocation82_spill] sm:$0xff] %v5184_v12  ;;  %v646_v12 = vrot.slane %v5013_v44, %v5178_v27 }
 0x12b   : > { %7669 = vst [vmem:[#allocation85_spill] sm:$0xff] %v5201_v20  ;;  %v1837_v54 = vrot.slane %v4991_v13, %v5201_v20  ;;  %v1925_v6 = vrot.slane %v5011_v37, %v5201_v20  ;;  %v655_v13 = vrot.slane %v5034_v1, %v5178_v27  ;;  %v5229_v37 = vrot.slane %v5042_v16, %v5201_v20 }
 0x12c   : > { %v5192_v33 = vpop.xlane.xlu0 %550  ;;  %v781_v1 = vrot.slane %v5050_v18, %v5178_v27  ;;  %v777_v18 = vrot.slane %v5046_v47, %v5175_v21  ;;  %v862_v47 = vrot.slane %v5072_v45, %v5178_v27 }
 0x12d   : > { %7667 = vst [vmem:[#allocation83_spill] sm:$0xff] %v5192_v33  ;;  %v5198_v63 = vpop.xlane.xlu1 %415  ;;  %2085 = vbcast.lane.b32.xlu1 %v2079_v7, 264  ;;  %2081 = vbcast.lane.b32.xlu0 %v2079_v7, 256  ;;  %v647_v7 = vsel %vm637_vm7, %v646_v12, %v642_v38  ;;  %v1150_v38 = vmul.f32 %v638_v25, %v4687_v11 }
 0x12e   : > { %7668 = vst [vmem:[#allocation84_spill] sm:$0xff] %v5198_v63  ;;  %v714_v12 = vrot.slane %v5021_v53, %v5175_v21  ;;  %v1151_v35 = vmul.f32 %v647_v7, %v4684_v10  ;;  %v1152_v36 = vmul.f32 %v647_v7, %v4693_v14  ;;  %v1165_v11 = vmul.f32 %v710_v46, %v4696_v15 }
 0x12f   : > { %v723_v25 = vrot.slane %v5037_v8, %v5175_v21  ;;  %v5251_v10 = vrot.slane %v5058_v34, %v5201_v20  ;;  %v5254_v14 = vsel %vm371_vm2, %v1149_v24, 0.0  ;;  %v1166_v15 = vmul.f32 %v710_v46, %v4702_v17 }
 0x130   : > { %v5210_v33 = vpop.xlane.xlu0 %418  ;;  %v719_v7 = vsel %vm637_vm7, %v718_v52, %v714_v12  ;;  %v790_v20 = vrot.slane %v5060_v31, %v5178_v27  ;;  %v5269_v8 = vsel %vm371_vm2, %v1151_v35, 0.0  ;;  %v5272_v52 = vsel %vm371_vm2, %v1152_v36, 0.0 }
 0x131   : > { %7670 = vst [vmem:[#allocation86_spill] sm:$0xff] %v5210_v33  ;;  %v5212_v44 = vpop.xlane.xlu1 %463  ;;  %1843 = vbcast.lane.b32.xlu1 %v1837_v54, 264  ;;  %1839 = vbcast.lane.b32.xlu0 %v1837_v54, 256  ;;  %v2090_v54 = vrot.slane %v5058_v34, %v5158_v22  ;;  %v651_v22 = vrot.slane %v5027_v60, %v5175_v21 }
 0x132   : > { %7671 = vst [vmem:[#allocation87_spill] sm:$0xff] %v5212_v44  ;;  %v853_v17 = vrot.slane %v5066_v28, %v5178_v27  ;;  %v782_v35 = vsel %vm637_vm7, %v781_v1, %v777_v18  ;;  %v786_v36 = vrot.slane %v5053_v0, %v5175_v21  ;;  %v5294_v28 = vld [vmem:[%s4675_s26 + $0x20] sm:$0xff]  ;;  %v849_v31 = vrot.slane %v5062_v19, %v5175_v21 }
 0x133   : > { %v656_v30 = vsel %vm637_vm7, %v655_v13, %v651_v22  ;;  %v5280_v13 = vsel %vm371_vm2, %v1165_v11, 0.0  ;;  %v5283_v22 = vld [vmem:[%s4675_s26 + $0x90] sm:$0xff]  ;;  %v5303_v1 = vsel %vm371_vm2, %v1166_v15, 0.0  ;;  %v664_v19 = vrot.slane %v5081_v2, %v5178_v27  ;;  %v7690_v2 = vld [vmem:[#allocation63_spill] sm:$0xff] }
 0x134   : > { %v5236_v57 = vpop.xlane.xlu0 %466  ;;  %v1167_v12 = vmul.f32 %v5283_v22, %v719_v7  ;;  %v1154_v11 = vmul.f32 %v656_v30, %v4732_v39  ;;  %v1181_v39 = vmul.f32 %v782_v35, %v4743_v43  ;;  %v736_v15 = vrot.slane %v5087_v29, %v5178_v27 }
 0x135   : > { %7672 = vst [vmem:[#allocation88_spill] sm:$0xff] %v5236_v57  ;;  %v5244_v16 = vpop.xlane.xlu1 %505  ;;  %1931 = vbcast.lane.b32.xlu1 %v1925_v6, 264  ;;  %1927 = vbcast.lane.b32.xlu0 %v1925_v6, 256  ;;  %v5260_v6 = vsel %vm371_vm2, %v1150_v38, 0.0  ;;  %v728_v38 = vsel %vm637_vm7, %v727_v9, %v723_v25  ;;  %v5290_v9 = vld [vmem:[%s4675_s26 + $0x98] sm:$0xff] }
 0x136   : > { %7673 = vst [vmem:[#allocation89_spill] sm:$0xff] %v5244_v16  ;;  %v1168_v25 = vmul.f32 %v5290_v9, %v719_v7  ;;  %v1169_v18 = vmul.f32 %v728_v38, %v4735_v40  ;;  %v858_v7 = vrot.slane %v5068_v23, %v5175_v21  ;;  %v1170_v60 = vmul.f32 %v728_v38, %v4738_v41 }
 0x137   : > { %v5320_v40 = vsel %vm371_vm2, %v1167_v12, 0.0  ;;  %v854_v23 = vsel %vm637_vm7, %v853_v17, %v849_v31  ;;  %v1182_v38 = vmul.f32 %v782_v35, %v4754_v49 }
 0x138   : > { %v5266_v24 = vpop.xlane.xlu0 %508  ;;  %v5324_v41 = vsel %vm371_vm2, %v1168_v25, 0.0  ;;  %v863_v31 = vsel %vm637_vm7, %v862_v47, %v858_v7  ;;  %v5342_v25 = vsel %vm371_vm2, %v1169_v18, 0.0  ;;  %v1197_v35 = vmul.f32 %v854_v23, %v4769_v56 }
 0x139   : > { %7674 = vst [vmem:[#allocation90_spill] sm:$0xff] %v5266_v24  ;;  %v5277_v46 = vpop.xlane.xlu1 %553  ;;  %2008 = vbcast.lane.b32.xlu1 %v2002_v26, 264  ;;  %2004 = vbcast.lane.b32.xlu0 %v2002_v26, 256  ;;  %v1153_v26 = vmul.f32 %v5294_v28, %v656_v30  ;;  %v791_v30 = vsel %vm637_vm7, %v790_v20, %v786_v36  ;;  %v5330_v20 = vsel %vm371_vm2, %v1154_v11, 0.0  ;;  %v5363_v56 = vsel %vm371_vm2, %v1182_v38, 0.0  ;;  %v7700_v24 = vld [vmem:[#allocation14_spill] sm:$0xff] }
 0x13a   : > { %7675 = vst [vmem:[#allocation91_spill] sm:$0xff] %v5277_v46  ;;  %v660_v36 = vrot.slane %v5074_v5, %v5175_v21  ;;  %v1183_v12 = vmul.f32 %v791_v30, %v4757_v50  ;;  %v1184_v49 = vmul.f32 %v791_v30, %v4766_v55  ;;  %v799_v11 = vrot.slane %v5093_v51, %v5178_v27 }
 0x13b   : > { %v5327_v43 = vsel %vm371_vm2, %v1153_v26, 0.0  ;;  %v5345_v26 = vsel %vm371_vm2, %v1170_v60, 0.0  ;;  %v5356_v50 = vsel %vm371_vm2, %v1181_v39, 0.0  ;;  %v871_v55 = vrot.slane %v5099_v42, %v5178_v27  ;;  %v7683_v42 = vld [vmem:[#allocation57_spill] sm:$0xff] }
 0x13c   : > { %v5308_v0 = vpop.xlane.xlu0 %556  ;;  %v665_v47 = vsel %vm637_vm7, %v664_v19, %v660_v36  ;;  %v1198_v18 = vmul.f32 %v854_v23, %v4778_v61  ;;  %v1199_v7 = vmul.f32 %v863_v31, %v4781_v62  ;;  %v673_v39 = vrot.slane %v5108_v32, %v5178_v27  ;;  %v7681_v62 = vld [vmem:[#allocation2_spill] sm:$0xff]  ;;  %v7682_v36 = vld [vmem:[#allocation3_spill] sm:$0xff] }
 0x13d   : > { %7676 = vst [vmem:[#allocation92_spill] sm:$0xff] %v5308_v0  ;;  %v5317_v45 = vpop.xlane.xlu1 %511  ;;  %2096 = vbcast.lane.b32.xlu1 %v2090_v54, 264  ;;  %2092 = vbcast.lane.b32.xlu0 %v2090_v54, 256  ;;  %v732_v54 = vrot.slane %v5083_v59, %v5175_v21  ;;  %v5372_v19 = vsel %vm371_vm2, %v1183_v12, 0.0  ;;  %v1200_v30 = vmul.f32 %v863_v31, %v4790_v3  ;;  %v5387_v3 = vsel %vm371_vm2, %v1184_v49, 0.0  ;;  %v7689_v59 = vld [vmem:[#allocation7_spill] sm:$0xff] }
 0x13e   : > { %7677 = vst [vmem:[#allocation93_spill] sm:$0xff] %v5317_v45  ;;  %v1155_v61 = vmul.f32 %v665_v47, %v4793_v4  ;;  %v1156_v23 = vmul.f32 %v665_v47, %v7681_v62  ;;  %v669_v32 = vrot.slane %v7683_v42, %v5175_v21  ;;  %v5390_v12 = vsel %vm371_vm2, %v1197_v35, 0.0  ;;  %v7684_v62 = vld [vmem:[#allocation4_spill] sm:$0xff] }
 0x13f   : > { %v737_v60 = vsel %vm637_vm7, %v736_v15, %v732_v54  ;;  %v867_v15 = vrot.slane %v5095_v48, %v5175_v21  ;;  %v5394_v31 = vsel %vm371_vm2, %v1198_v18, 0.0  ;;  %v5397_v47 = vsel %vm371_vm2, %v1199_v7, 0.0  ;;  %v4554_v48 = vld [vmem:[%s4675_s26] sm:$0xff] }
 0x140   : > { %v5339_v17 = vpop.xlane.xlu0 %514  ;;  %v1171_v54 = vmul.f32 %v737_v60, %v7682_v36  ;;  %v1172_v36 = vmul.f32 %v737_v60, %v7684_v62  ;;  %v5405_v35 = vsel %vm371_vm2, %v1200_v30, 0.0  ;;  %v5409_v18 = vsel %vm371_vm2, %v1155_v61, 0.0  ;;  %v7687_v62 = vld [vmem:[#allocation60_spill] sm:$0xff] }
 0x141   : > { %7678 = vst [vmem:[#allocation94_spill] sm:$0xff] %v5339_v17  ;;  %v5351_v29 = vpop.xlane.xlu1 %559  ;;  %2019 = vbcast.lane.b32.xlu1 %v5229_v37, 264  ;;  %2015 = vbcast.lane.b32.xlu0 %v5229_v37, 256  ;;  %v795_v37 = vrot.slane %v5089_v58, %v5175_v21  ;;  %v872_v42 = vsel %vm637_vm7, %v871_v55, %v867_v15  ;;  %v5412_v7 = vsel %vm371_vm2, %v1156_v23, 0.0  ;;  %v7686_v55 = vld [vmem:[#allocation5_spill] sm:$0xff] }
 0x142   : > { %7679 = vst [vmem:[#allocation95_spill] sm:$0xff] %v5351_v29  ;;  %v5415_v60 = vsel %vm371_vm2, %v1171_v54, 0.0  ;;  %v1201_v61 = vmul.f32 %v872_v42, %v7689_v59  ;;  %v808_v23 = vrot.slane %v7690_v2, %v5178_v27  ;;  %v5426_v5 = vsel %vm371_vm2, %v1172_v36, 0.0  ;;  %v7691_v54 = vld [vmem:[#allocation8_spill] sm:$0xff] }
 0x143   : > { %v800_v4 = vsel %vm637_vm7, %v799_v11, %v795_v37  ;;  %v674_v11 = vsel %vm637_vm7, %v673_v39, %v669_v32  ;;  %v7688_v32 = vld [vmem:[#allocation6_spill] sm:$0xff]  ;;  %v1202_v53 = vmul.f32 %v872_v42, %v7691_v54  ;;  %v4556_v36 = vld [vmem:[%s4675_s26 + $0x10] sm:$0xff] }
 0x144   : > { %v5377_v38 = vpop.xlane.xlu0 %562  ;;  %v1185_v15 = vmul.f32 %v800_v4, %v7686_v55  ;;  %v1186_v39 = vmul.f32 %v800_v4, %v7688_v32  ;;  %v7692_v55 = vld [vmem:[#allocation9_spill] sm:$0xff]  ;;  %v7695_v54 = vld [vmem:[#allocation64_spill] sm:$0xff] }
 0x145   : > { %7680 = vst [vmem:[#allocation96_spill] sm:$0xff] %v5377_v38  ;;  %v1763_v51 = vpop.permute.xlu1 %1762  ;;  %2107 = vbcast.lane.b32.xlu1 %v5251_v10, 264  ;;  %2103 = vbcast.lane.b32.xlu0 %v5251_v10, 256  ;;  %v7685_v10 = vld [vmem:[#allocation61_spill] sm:$0xff]  ;;  %v1157_v34 = vmul.f32 %v674_v11, %v7692_v55  ;;  %v876_v55 = vrot.slane %v7695_v54, %v5175_v21  ;;  %v5454_v17 = vsel %vm371_vm2, %v1202_v53, 0.0 }
 0x146   : > { %v745_v49 = vrot.slane %v7685_v10, %v5178_v27  ;;  %v2109_v58 = vmul.f32 %v4554_v48, %v1763_v51  ;;  %v741_v48 = vrot.slane %v7687_v62, %v5175_v21  ;;  %v4555_v51 = vld [vmem:[%s4675_s26 + $0x8] sm:$0xff]  ;;  %v7693_v62 = vld [vmem:[#allocation65_spill] sm:$0xff]  ;;  %v5439_v42 = vsel %vm371_vm2, %v1185_v15, 0.0 }
 0x147   : > { %v880_v29 = vrot.slane %v7693_v62, %v5178_v27  ;;  %v5457_v54 = vsel %vm371_vm2, %v1157_v34, 0.0  ;;  %v7699_v34 = vld [vmem:[#allocation13_spill] sm:$0xff] }
 0x148   : > { %v1767_v37 = vpop.permute.xlu0 %1766  ;;  %v746_v59 = vsel %vm637_vm7, %v745_v49, %v741_v48  ;;  %v5447_v49 = vsel %vm371_vm2, %v1201_v61, 0.0  ;;  %v7696_v48 = vld [vmem:[#allocation10_spill] sm:$0xff] }
 0x149   : > { %v2110_v30 = vmul.f32 %v4555_v51, %v1767_v37  ;;  %v1774_v10 = vpop.permute.xlu1 %1773  ;;  %v2173_v37 = vsel %vm371_vm2, %v2109_v58, 0.0  ;;  %v7694_v51 = vld [vmem:[#allocation62_spill] sm:$0xff]  ;;  %v5444_v58 = vsel %vm371_vm2, %v1186_v39, 0.0  ;;  %v7698_v39 = vld [vmem:[#allocation12_spill] sm:$0xff]  ;;  %v881_v61 = vsel %vm637_vm7, %v880_v29, %v876_v55  ;;  %v4559_v55 = vld [vmem:[%s4675_s26 + $0x88] sm:$0xff] }
 0x14a   : > { %v804_v32 = vrot.slane %v7694_v51, %v5175_v21  ;;  %v2111_v38 = vmul.f32 %v4556_v36, %v1774_v10  ;;  %v7697_v36 = vld [vmem:[#allocation11_spill] sm:$0xff]  ;;  %v1174_v46 = vmul.f32 %v746_v59, %v7698_v39 }
 0x14b   : > { %v2174_v4 = vsel %vm371_vm2, %v2110_v30, 0.0  ;;  %v1158_v30 = vmul.f32 %v674_v11, %v7696_v48  ;;  %v1173_v51 = vmul.f32 %v746_v59, %v7697_v36  ;;  %v4558_v48 = vld [vmem:[%s4675_s26 + $0x80] sm:$0xff]  ;;  %v7701_v59 = vld [vmem:[#allocation68_spill] sm:$0xff] }
 0x14c   : > { %v2175_v2 = vadd.f32 %v2174_v4, %v2173_v37  ;;  %v1851_v45 = vpop.permute.xlu0 %1850  ;;  %v4557_v4 = vld [vmem:[%s4675_s26 + $0x18] sm:$0xff]  ;;  %v809_v15 = vsel %vm637_vm7, %v808_v23, %v804_v32  ;;  %v2182_v11 = vsel %vm371_vm2, %v2111_v38, 0.0  ;;  %v682_v29 = vrot.slane %v7701_v59, %v5178_v27 }
 0x14d   : > { %v1778_v62 = vpop.permute.xlu1 %1777  ;;  %v5465_v53 = vsel %vm371_vm2, %v1158_v30, 0.0  ;;  %v1187_v16 = vmul.f32 %v809_v15, %v7699_v34  ;;  %v1188_v57 = vmul.f32 %v809_v15, %v7700_v24  ;;  %v5478_v30 = vsel %vm371_vm2, %v1174_v46, 0.0 }
 0x14e   : > { %v2176_v37 = vrot.slane %v2175_v2, 4  ;;  %v2112_v10 = vmul.f32 %v4557_v4, %v1778_v62  ;;  %v2125_v62 = vmul.f32 %v4558_v48, %v1851_v45  ;;  %v5473_v45 = vsel %vm371_vm2, %v1173_v51, 0.0  ;;  %7703 = vst [vmem:[#allocation2_spill] sm:$0xff] %v5478_v30 }
 0x14f   : > { %v5485_v44 = vsel %vm371_vm2, %v1187_v16, 0.0  ;;  %v7710_v16 = vld [vmem:[#allocation70_spill] sm:$0xff] }
 0x150   : > { %v2177_v0 = vadd.f32 %v2176_v37, %v2175_v2  ;;  %v2183_v4 = vsel %vm371_vm2, %v2112_v10, 0.0  ;;  %v1862_v36 = vpop.permute.xlu0 %1861  ;;  %v7702_v37 = vld [vmem:[#allocation66_spill] sm:$0xff]  ;;  %v2245_v24 = vsel %vm371_vm2, %v2125_v62, 0.0  ;;  %7705 = vst [vmem:[#allocation3_spill] sm:$0xff] %v5485_v44 }
 0x151   : > { %v2184_v23 = vadd.f32 %v2183_v4, %v2182_v11  ;;  %v1855_v32 = vpop.permute.xlu1 %1854  ;;  %v678_v10 = vrot.slane %v7702_v37, %v5175_v21  ;;  %v7704_v11 = vld [vmem:[#allocation15_spill] sm:$0xff]  ;;  %v2127_v15 = vmul.f32 %v5283_v22, %v1862_v36  ;;  %v5488_v37 = vsel %vm371_vm2, %v1188_v57, 0.0  ;;  %v7708_v22 = vld [vmem:[#allocation69_spill] sm:$0xff] }
 0x152   : > { %v2178_v2 = vrot.slane %v2177_v0, 2  ;;  %v2126_v38 = vmul.f32 %v4559_v55, %v1855_v32  ;;  %v1203_v48 = vmul.f32 %v881_v61, %v7704_v11  ;;  %7706 = vst [vmem:[#allocation4_spill] sm:$0xff] %v5488_v37  ;;  %v7707_v11 = vld [vmem:[#allocation16_spill] sm:$0xff]  ;;  %v750_v36 = vrot.slane %v7708_v22, %v5175_v21  ;;  %v7711_v22 = vld [vmem:[#allocation17_spill] sm:$0xff] }
 0x153   : > { %v2185_v39 = vrot.slane %v2184_v23, 4  ;;  %v683_v62 = vsel %vm637_vm7, %v682_v29, %v678_v10  ;;  %v754_v57 = vrot.slane %v7710_v16, %v5178_v27  ;;  %v7713_v16 = vld [vmem:[#allocation18_spill] sm:$0xff] }
 0x154   : > { %v2179_v4 = vadd.f32 %v2178_v2, %v2177_v0  ;;  %v2246_v34 = vsel %vm371_vm2, %v2126_v38, 0.0  ;;  %v1785_v32 = vpop.permute.xlu0 %1784  ;;  %v1204_v0 = vmul.f32 %v881_v61, %v7707_v11  ;;  %v1159_v33 = vmul.f32 %v683_v62, %v7711_v22  ;;  %v4561_v22 = vld [vmem:[%s4675_s26 + $0xa0] sm:$0xff] }
 0x155   : > { %v2186_v55 = vadd.f32 %v2185_v39, %v2184_v23  ;;  %v2247_v51 = vadd.f32 %v2246_v34, %v2245_v24  ;;  %v1866_v59 = vpop.permute.xlu1 %1865  ;;  %v5496_v39 = vsel %vm371_vm2, %v1203_v48, 0.0  ;;  %v2254_v24 = vsel %vm371_vm2, %v2127_v15, 0.0  ;;  %v4560_v48 = vld [vmem:[%s4675_s26 + $0x28] sm:$0xff] }
 0x156   : > { %v2128_v46 = vmul.f32 %v5290_v9, %v1866_v59  ;;  %v2180_v2 = vrot.slane %v2179_v4, 1  ;;  %7709 = vst [vmem:[#allocation5_spill] sm:$0xff] %v5496_v39  ;;  %v2113_v9 = vmul.f32 %v5294_v28, %v1785_v32  ;;  %v5506_v63 = vsel %vm371_vm2, %v1204_v0, 0.0  ;;  %v7715_v28 = vld [vmem:[#allocation71_spill] sm:$0xff] }
 0x157   : > { %v2187_v23 = vrot.slane %v2186_v55, 2  ;;  %v2248_v38 = vrot.slane %v2247_v51, 4  ;;  %7712 = vst [vmem:[#allocation6_spill] sm:$0xff] %v5506_v63  ;;  %v1160_v15 = vmul.f32 %v683_v62, %v7713_v16  ;;  %v755_v0 = vsel %vm637_vm7, %v754_v57, %v750_v36 }
 0x158   : > { %v2255_v61 = vsel %vm371_vm2, %v2128_v46, 0.0  ;;  %v1873_v59 = vpop.permute.xlu0 %1872  ;;  %v5509_v37 = vadd.f32 %v2180_v2, %v2179_v4 }
 0x159   : > { %v2188_v29 = vadd.f32 %v2187_v23, %v2186_v55  ;;  %v2249_v10 = vadd.f32 %v2248_v38, %v2247_v51  ;;  %v2256_v34 = vadd.f32 %v2255_v61, %v2254_v24  ;;  %v1789_v11 = vpop.permute.xlu1 %1788  ;;  %v2191_v23 = vsel %vm371_vm2, %v2113_v9, 0.0 }
 0x15a   : > { %v2114_v39 = vmul.f32 %v4560_v48, %v1789_v11  ;;  %7714 = vst [vmem:[#allocation7_spill] sm:$0xff] %v5509_v37  ;;  %v2129_v38 = vmul.f32 %v4561_v22, %v1873_v59  ;;  %v5518_v11 = vsel %vm371_vm2, %v1159_v33, 0.0  ;;  %v4562_v48 = vld [vmem:[%s4675_s26 + $0xa8] sm:$0xff]  ;;  %v5522_v63 = vsel %vm371_vm2, %v1160_v15, 0.0  ;;  %v4563_v33 = vld [vmem:[%s4675_s26 + $0x100] sm:$0xff] }
 0x15b   : > { %v2250_v55 = vrot.slane %v2249_v10, 2  ;;  %v2257_v51 = vrot.slane %v2256_v34, 4  ;;  %v2189_v46 = vrot.slane %v2188_v29, 1  ;;  %7716 = vst [vmem:[#allocation8_spill] sm:$0xff] %v5518_v11  ;;  %7717 = vst [vmem:[#allocation9_spill] sm:$0xff] %v5522_v63  ;;  %v3500_v9 = vpack.c.bf16 %v5509_v37, %v5509_v37  ;;  %v7719_v59 = vld [vmem:[#allocation19_spill] sm:$0xff] }
 0x15c   : > { %v2192_v24 = vsel %vm371_vm2, %v2114_v39, 0.0  ;;  %v1939_v61 = vpop.permute.xlu0 %1938  ;;  %v4564_v63 = vld [vmem:[%s4675_s26 + $0x108] sm:$0xff] }
 0x15d   : > { %v2251_v62 = vadd.f32 %v2250_v55, %v2249_v10  ;;  %v2258_v4 = vadd.f32 %v2257_v51, %v2256_v34  ;;  %v2193_v2 = vadd.f32 %v2192_v24, %v2191_v23  ;;  %v1877_v16 = vpop.permute.xlu1 %1876  ;;  %v5526_v39 = vadd.f32 %v2189_v46, %v2188_v29 }
 0x15e   : > { %v2130_v32 = vmul.f32 %v4562_v48, %v1877_v16  ;;  %v1175_v10 = vmul.f32 %v755_v0, %v7719_v59  ;;  %v2263_v55 = vsel %vm371_vm2, %v2129_v38, 0.0  ;;  %v2141_v51 = vmul.f32 %v4563_v33, %v1939_v61  ;;  %v7720_v48 = vld [vmem:[#allocation20_spill] sm:$0xff] }
 0x15f   : > { %7718 = vst [vmem:[#allocation10_spill] sm:$0xff] %v5526_v39  ;;  %v2259_v36 = vrot.slane %v2258_v4, 2  ;;  %v2194_v57 = vrot.slane %v2193_v2, 4  ;;  %v2252_v34 = vrot.slane %v2251_v62, 1  ;;  %v3501_v15 = vpack.c.bf16 %v5526_v39, %v5526_v39  ;;  %v7721_v61 = vld [vmem:[#allocation72_spill] sm:$0xff] }
 0x160   : > { %v2264_v23 = vsel %vm371_vm2, %v2130_v32, 0.0  ;;  %v1950_v22 = vpop.permute.xlu0 %1949  ;;  %v1176_v37 = vmul.f32 %v755_v0, %v7720_v48  ;;  %v3679_v11 = vunpack.c.l.b16 %v3500_v9  ;;  %v817_v32 = vrot.slane %v7721_v61, %v5178_v27 }
 0x161   : > { %v2260_v24 = vadd.f32 %v2259_v36, %v2258_v4  ;;  %v2195_v29 = vadd.f32 %v2194_v57, %v2193_v2  ;;  %v2265_v46 = vadd.f32 %v2264_v23, %v2263_v55  ;;  %v1943_v16 = vpop.permute.xlu1 %1942  ;;  %v3680_v44 = vunpack.c.l.b16 %v3501_v15  ;;  %v4565_v2 = vld [vmem:[%s4675_s26 + $0x110] sm:$0xff] }
 0x162   : > { %v2142_v59 = vmul.f32 %v4564_v63, %v1943_v16  ;;  %v5536_v38 = vadd.f32 %v2252_v34, %v2251_v62  ;;  %v2317_v4 = vsel %vm371_vm2, %v2141_v51, 0.0  ;;  %v2143_v36 = vmul.f32 %v4565_v2, %v1950_v22  ;;  %v7722_v62 = vld [vmem:[#allocation73_spill] sm:$0xff] }
 0x163   : > { %v2196_v33 = vrot.slane %v2195_v29, 2  ;;  %v2266_v30 = vrot.slane %v2265_v46, 4  ;;  %v2261_v39 = vrot.slane %v2260_v24, 1  ;;  %v5545_v0 = vsel %vm918_vm8, %v3680_v44, %v3679_v11  ;;  %v4566_v51 = vld [vmem:[%s4675_s26 + $0x118] sm:$0xff] }
 0x164   : > { %v2318_v57 = vsel %vm371_vm2, %v2142_v59, 0.0  ;;  %1214 = vadd.xlane.f32.xlu0 %v5254_v14  ;;  %v2027_v63 = vpop.permute.xlu0 %2026  ;;  %v5551_v22 = vsel %vm371_vm2, %v1175_v10, 0.0  ;;  %v3508_v14 = vpack.c.bf16 %v5536_v38, %v5536_v38  ;;  %v5558_v59 = vsel %vm371_vm2, %v1176_v37, 0.0 }
 0x165   : > { %v2197_v34 = vadd.f32 %v2196_v33, %v2195_v29  ;;  %v2267_v55 = vadd.f32 %v2266_v30, %v2265_v46  ;;  %v2319_v23 = vadd.f32 %v2318_v57, %v2317_v4  ;;  %v1954_v15 = vpop.permute.xlu1 %1953  ;;  %v5555_v48 = vadd.f32 %v2261_v39, %v2260_v24  ;;  %v4567_v46 = vld [vmem:[%s4675_s26 + $0x180] sm:$0xff] }
 0x166   : > { %v2144_v16 = vmul.f32 %v4566_v51, %v1954_v15  ;;  %v2326_v29 = vsel %vm371_vm2, %v2143_v36, 0.0  ;;  %v2157_v33 = vmul.f32 %v4567_v46, %v2027_v63  ;;  %v7723_v37 = vrot.slane %v7715_v28, %v5175_v21  ;;  %v4568_v63 = vld [vmem:[%s4675_s26 + $0x188] sm:$0xff] }
 0x167   : > { %v2268_v44 = vrot.slane %v2267_v55, 2  ;;  %v2320_v11 = vrot.slane %v2319_v23, 4  ;;  %v2198_v30 = vrot.slane %v2197_v34, 1  ;;  %v3509_v39 = vpack.c.bf16 %v5555_v48, %v5555_v48 }
 0x168   : > { %v2327_v4 = vsel %vm371_vm2, %v2144_v16, 0.0  ;;  %1220 = vadd.xlane.f32.xlu0 %v5269_v8  ;;  %v2038_v10 = vpop.permute.xlu0 %2037  ;;  %v818_v36 = vsel %vm637_vm7, %v817_v32, %v7723_v37  ;;  %v3687_v16 = vunpack.c.l.b16 %v3508_v14  ;;  %v4571_v37 = vld [vmem:[%s4675_s26 + $0x198] sm:$0xff] }
 0x169   : > { %v2269_v24 = vadd.f32 %v2268_v44, %v2267_v55  ;;  %v2321_v2 = vadd.f32 %v2320_v11, %v2319_v23  ;;  %v2328_v57 = vadd.f32 %v2327_v4, %v2326_v29  ;;  %v2031_v15 = vpop.permute.xlu1 %2030  ;;  %1217 = vadd.xlane.f32.xlu1 %v5260_v6  ;;  %v3688_v8 = vunpack.c.l.b16 %v3509_v39  ;;  %v4569_v55 = vld [vmem:[%s4675_s26 + $0x190] sm:$0xff] }
 0x16a   : > { %v2158_v51 = vmul.f32 %v4568_v63, %v2031_v15  ;;  %v5572_v46 = vadd.f32 %v2198_v30, %v2197_v34  ;;  %v2159_v23 = vmul.f32 %v4569_v55, %v2038_v10  ;;  %v2389_v6 = vsel %vm371_vm2, %v2157_v33, 0.0  ;;  %v5583_v10 = vld [vmem:[%s4675_s26 + $0x140] sm:$0xff] }
 0x16b   : > { %v2322_v9 = vrot.slane %v2321_v2, 2  ;;  %v2329_v61 = vrot.slane %v2328_v57, 4  ;;  %v2270_v44 = vrot.slane %v2269_v24, 1  ;;  %v3718_v29 = vsel %vm918_vm8, %v3688_v8, %v3687_v16  ;;  %v7724_v15 = vld [vmem:[#allocation74_spill] sm:$0xff] }
 0x16c   : > { %v2390_v11 = vsel %vm371_vm2, %v2158_v51, 0.0  ;;  %1223 = vadd.xlane.f32.xlu0 %v5272_v52  ;;  %v1796_v32 = vpop.permute.xlu0 %1795  ;;  %v3502_v34 = vpack.c.bf16 %v5572_v46, %v5572_v46  ;;  %v1189_v33 = vmul.f32 %v5583_v10, %v818_v36  ;;  %v889_v52 = vrot.slane %v7724_v15, %v5178_v27 }
 0x16d   : > { %v2323_v14 = vadd.f32 %v2322_v9, %v2321_v2  ;;  %v2330_v30 = vadd.f32 %v2329_v61, %v2328_v57  ;;  %v2391_v4 = vadd.f32 %v2390_v11, %v2389_v6  ;;  %v2042_v39 = vpop.permute.xlu1 %2041  ;;  %1262 = vadd.xlane.f32.xlu1 %v5280_v13  ;;  %v5589_v16 = vadd.f32 %v2270_v44, %v2269_v24  ;;  %v4572_v13 = vld [vmem:[%s4675_s26 + $0x30] sm:$0xff] }
 0x16e   : > { %v2160_v63 = vmul.f32 %v4571_v37, %v2042_v39  ;;  %v3681_v51 = vunpack.c.l.b16 %v3502_v34  ;;  %v2398_v61 = vsel %vm371_vm2, %v2159_v23, 0.0  ;;  %v2115_v57 = vmul.f32 %v4572_v13, %v1796_v32  ;;  %v5603_v32 = vld [vmem:[%s4675_s26 + $0x148] sm:$0xff]  ;;  %v4574_v13 = vld [vmem:[%s4675_s26 + $0x38] sm:$0xff] }
 0x16f   : > { %v2331_v8 = vrot.slane %v2330_v30, 2  ;;  %v2392_v9 = vrot.slane %v2391_v4, 4  ;;  %v2324_v2 = vrot.slane %v2323_v14, 1  ;;  %v3510_v24 = vpack.c.bf16 %v5589_v16, %v5589_v16 }
 0x170   : > { %v2399_v55 = vsel %vm371_vm2, %v2160_v63, 0.0  ;;  %1265 = vadd.xlane.f32.xlu0 %v5303_v1  ;;  %v1884_v6 = vpop.permute.xlu0 %1883  ;;  %v5597_v11 = vsel %vm919_vm9, %v3681_v51, %v5545_v0  ;;  %v1190_v37 = vmul.f32 %v5603_v32, %v818_v36  ;;  %v7725_v1 = vld [vmem:[#allocation75_spill] sm:$0xff]  ;;  %v4575_v36 = vld [vmem:[%s4675_s26 + $0xb0] sm:$0xff] }
 0x171   : > { %v2332_v44 = vadd.f32 %v2331_v8, %v2330_v30  ;;  %v2393_v34 = vadd.f32 %v2392_v9, %v2391_v4  ;;  %v2400_v23 = vadd.f32 %v2399_v55, %v2398_v61  ;;  %v1800_v39 = vpop.permute.xlu1 %1799  ;;  %1268 = vadd.xlane.f32.xlu1 %v5320_v40  ;;  %v3689_v51 = vunpack.c.l.b16 %v3510_v24 }
 0x172   : > { %v2116_v0 = vmul.f32 %v4574_v13, %v1800_v39  ;;  %v5609_v15 = vadd.f32 %v2324_v2, %v2323_v14  ;;  %v7727_v4 = vrot.slane %v7722_v62, %v5175_v21  ;;  %v2200_v61 = vsel %vm371_vm2, %v2115_v57, 0.0  ;;  %v4576_v57 = vld [vmem:[%s4675_s26 + $0xb8] sm:$0xff] }
 0x173   : > { %v2394_v28 = vrot.slane %v2393_v34, 2  ;;  %v2401_v30 = vrot.slane %v2400_v23, 4  ;;  %v2333_v8 = vrot.slane %v2332_v44, 1  ;;  %v2131_v9 = vmul.f32 %v4575_v36, %v1884_v6 }
 0x174   : > { %7726 = vst [vmem:[#allocation11_spill] sm:$0xff] %v5609_v15  ;;  %v890_v40 = vsel %vm637_vm7, %v889_v52, %v7727_v4  ;;  %v2201_v55 = vsel %vm371_vm2, %v2116_v0, 0.0  ;;  %1271 = vadd.xlane.f32.xlu0 %v5324_v41  ;;  %v1961_v14 = vpop.permute.xlu0 %1960  ;;  %v5620_v2 = vsel %vm919_vm9, %v3689_v51, %v3718_v29  ;;  %v5624_v52 = vsel %vm371_vm2, %v1189_v33, 0.0 }
 0x175   : > { %v2395_v24 = vadd.f32 %v2394_v28, %v2393_v34  ;;  %v2402_v39 = vadd.f32 %v2401_v30, %v2400_v23  ;;  %v2202_v13 = vadd.f32 %v2201_v55, %v2200_v61  ;;  %v1888_v63 = vpop.permute.xlu1 %1887  ;;  %1226 = vadd.xlane.f32.xlu1 %v5327_v43  ;;  %v5628_v0 = vsel %vm371_vm2, %v1190_v37, 0.0  ;;  %v5635_v23 = vld [vmem:[%s4675_s26 + $0x1c0] sm:$0xff] }
 0x176   : > { %v2132_v6 = vmul.f32 %v4576_v57, %v1888_v63  ;;  %v3516_v41 = vpack.c.bf16 %v5609_v15, %v5609_v15  ;;  %v5632_v29 = vadd.f32 %v2333_v8, %v2332_v44  ;;  %v1205_v43 = vmul.f32 %v5635_v23, %v890_v40  ;;  %v4578_v63 = vld [vmem:[%s4675_s26 + $0x120] sm:$0xff]  ;;  %v5646_v57 = vld [vmem:[%s4675_s26 + $0x1c8] sm:$0xff]  ;;  %v7730_v15 = vld [vmem:[#allocation77_spill] sm:$0xff] }
 0x177   : > { %v2403_v28 = vrot.slane %v2402_v39, 2  ;;  %v2203_v34 = vrot.slane %v2202_v13, 4  ;;  %v2396_v33 = vrot.slane %v2395_v24, 1  ;;  %v2272_v51 = vsel %vm371_vm2, %v2131_v9, 0.0 }
 0x178   : > { %7728 = vst [vmem:[#allocation12_spill] sm:$0xff] %v5632_v29  ;;  %v2145_v30 = vmul.f32 %v4578_v63, %v1961_v14  ;;  %v2273_v37 = vsel %vm371_vm2, %v2132_v6, 0.0  ;;  %1229 = vadd.xlane.f32.xlu0 %v5330_v20  ;;  %v2049_v4 = vpop.permute.xlu0 %2048  ;;  %v3517_v44 = vpack.c.bf16 %v5632_v29, %v5632_v29  ;;  %v1206_v9 = vmul.f32 %v5646_v57, %v890_v40  ;;  %v4580_v14 = vld [vmem:[%s4675_s26 + $0x128] sm:$0xff] }
 0x179   : > { %v2404_v8 = vadd.f32 %v2403_v28, %v2402_v39  ;;  %v2204_v61 = vadd.f32 %v2203_v34, %v2202_v13  ;;  %v2274_v36 = vadd.f32 %v2273_v37, %v2272_v51  ;;  %v1965_v55 = vpop.permute.xlu1 %1964  ;;  %1274 = vadd.xlane.f32.xlu1 %v5342_v25  ;;  %v3695_v6 = vunpack.c.l.b16 %v3516_v41  ;;  %v4581_v25 = vld [vmem:[%s4675_s26 + $0x1a0] sm:$0xff] }
 0x17a   : > { %v2146_v63 = vmul.f32 %v4580_v14, %v1965_v55  ;;  %v3696_v62 = vunpack.c.l.b16 %v3517_v44  ;;  %v5650_v20 = vadd.f32 %v2396_v33, %v2395_v24  ;;  %v691_v29 = vrot.slane %v7730_v15, %v5178_v27  ;;  %v7731_v41 = vld [vmem:[#allocation78_spill] sm:$0xff] }
 0x17b   : > { %v2205_v39 = vrot.slane %v2204_v61, 2  ;;  %v2275_v13 = vrot.slane %v2274_v36, 4  ;;  %v2405_v28 = vrot.slane %v2404_v8, 1  ;;  %v2335_v34 = vsel %vm371_vm2, %v2145_v30, 0.0  ;;  %v4582_v30 = vld [vmem:[%s4675_s26 + $0x1a8] sm:$0xff] }
 0x17c   : > { %7729 = vst [vmem:[#allocation13_spill] sm:$0xff] %v5650_v20  ;;  %v2161_v51 = vmul.f32 %v4581_v25, %v2049_v4  ;;  %v2336_v37 = vsel %vm371_vm2, %v2146_v63, 0.0  ;;  %1277 = vadd.xlane.f32.xlu0 %v5345_v26  ;;  %v1807_v40 = vpop.permute.xlu0 %1806  ;;  %v5659_v24 = vsel %vm918_vm8, %v3696_v62, %v3695_v6  ;;  %v5666_v63 = vsel %vm371_vm2, %v1205_v43, 0.0 }
 0x17d   : > { %v2206_v44 = vadd.f32 %v2205_v39, %v2204_v61  ;;  %v2276_v55 = vadd.f32 %v2275_v13, %v2274_v36  ;;  %v2337_v14 = vadd.f32 %v2336_v37, %v2335_v34  ;;  %v2053_v15 = vpop.permute.xlu1 %2052  ;;  %1310 = vadd.xlane.f32.xlu1 %v5356_v50  ;;  %v3524_v26 = vpack.c.bf16 %v5650_v20, %v5650_v20  ;;  %v4583_v61 = vld [vmem:[%s4675_s26 + $0x40] sm:$0xff] }
 0x17e   : > { %v2162_v4 = vmul.f32 %v4582_v30, %v2053_v15  ;;  %v5670_v62 = vadd.f32 %v2405_v28, %v2404_v8  ;;  %v2117_v36 = vmul.f32 %v4583_v61, %v1807_v40  ;;  %v2407_v13 = vsel %vm371_vm2, %v2161_v51, 0.0 }
 0x17f   : > { %v2277_v6 = vrot.slane %v2276_v55, 2  ;;  %v2338_v25 = vrot.slane %v2337_v14, 4  ;;  %v2207_v39 = vrot.slane %v2206_v44, 1  ;;  %v5677_v43 = vsel %vm371_vm2, %v1206_v9, 0.0 }
 0x180   : > { %7732 = vst [vmem:[#allocation14_spill] sm:$0xff] %v5670_v62  ;;  %v2408_v50 = vsel %vm371_vm2, %v2162_v4, 0.0  ;;  %1313 = vadd.xlane.f32.xlu0 %v5363_v56  ;;  %v1895_v15 = vpop.permute.xlu0 %1894  ;;  %v3525_v8 = vpack.c.bf16 %v5670_v62, %v5670_v62  ;;  %v7733_v51 = vrot.slane %v7725_v1, %v5175_v21  ;;  %v4584_v56 = vld [vmem:[%s4675_s26 + $0x48] sm:$0xff]  ;;  %v3703_v61 = vunpack.c.l.b16 %v3524_v26 }
 0x181   : > { %v2278_v28 = vadd.f32 %v2277_v6, %v2276_v55  ;;  %v2339_v34 = vadd.f32 %v2338_v25, %v2337_v14  ;;  %v2409_v37 = vadd.f32 %v2408_v50, %v2407_v13  ;;  %v1811_v30 = vpop.permute.xlu1 %1810  ;;  %1316 = vadd.xlane.f32.xlu1 %v5372_v19  ;;  %v5687_v33 = vadd.f32 %v2207_v39, %v2206_v44  ;;  %v4585_v25 = vld [vmem:[%s4675_s26 + $0xc0] sm:$0xff] }
 0x182   : > { %v692_v40 = vsel %vm637_vm7, %v691_v29, %v7733_v51  ;;  %v2118_v4 = vmul.f32 %v4584_v56, %v1811_v30  ;;  %v3704_v9 = vunpack.c.l.b16 %v3525_v8  ;;  %v2209_v55 = vsel %vm371_vm2, %v2117_v36, 0.0  ;;  %v5700_v30 = vld [vmem:[%s4675_s26 + $0x60] sm:$0xff]  ;;  %v4587_v51 = vld [vmem:[%s4675_s26 + $0xc8] sm:$0xff] }
 0x183   : > { %7734 = vst [vmem:[#allocation15_spill] sm:$0xff] %v5687_v33  ;;  %v2340_v20 = vrot.slane %v2339_v34, 2  ;;  %v2410_v14 = vrot.slane %v2409_v37, 4  ;;  %v2279_v6 = vrot.slane %v2278_v28, 1  ;;  %v2133_v19 = vmul.f32 %v4585_v25, %v1895_v15  ;;  %v5705_v56 = vld [vmem:[%s4675_s26 + $0x68] sm:$0xff] }
 0x184   : > { %v2210_v13 = vsel %vm371_vm2, %v2118_v4, 0.0  ;;  %1319 = vadd.xlane.f32.xlu0 %v5387_v3  ;;  %v1972_v29 = vpop.permute.xlu0 %1971  ;;  %v5694_v26 = vsel %vm918_vm8, %v3704_v9, %v3703_v61  ;;  %v3503_v44 = vpack.c.bf16 %v5687_v33, %v5687_v33  ;;  %v1161_v15 = vmul.f32 %v5700_v30, %v692_v40 }
 0x185   : > { %v2341_v39 = vadd.f32 %v2340_v20, %v2339_v34  ;;  %v2411_v36 = vadd.f32 %v2410_v14, %v2409_v37  ;;  %v2211_v50 = vadd.f32 %v2210_v13, %v2209_v55  ;;  %v1899_v8 = vpop.permute.xlu1 %1898  ;;  %1358 = vadd.xlane.f32.xlu1 %v5390_v12  ;;  %v5708_v4 = vmul.f32 %v5705_v56, %v692_v40  ;;  %v4589_v37 = vld [vmem:[%s4675_s26 + $0x130] sm:$0xff] }
 0x186   : > { %v2134_v3 = vmul.f32 %v4587_v51, %v1899_v8  ;;  %v3682_v61 = vunpack.c.l.b16 %v3503_v44  ;;  %v5710_v9 = vadd.f32 %v2279_v6, %v2278_v28  ;;  %v2147_v55 = vmul.f32 %v4589_v37, %v1972_v29  ;;  %v7736_v6 = vld [vmem:[#allocation79_spill] sm:$0xff]  ;;  %v4590_v37 = vld [vmem:[%s4675_s26 + $0x138] sm:$0xff] }
 0x187   : > { %v2412_v20 = vrot.slane %v2411_v36, 2  ;;  %v2212_v34 = vrot.slane %v2211_v50, 4  ;;  %v2342_v12 = vrot.slane %v2341_v39, 1  ;;  %v2281_v14 = vsel %vm371_vm2, %v2133_v19, 0.0 }
 0x188   : > { %7735 = vst [vmem:[#allocation16_spill] sm:$0xff] %v5710_v9  ;;  %v2282_v25 = vsel %vm371_vm2, %v2134_v3, 0.0  ;;  %1361 = vadd.xlane.f32.xlu0 %v5394_v31  ;;  %v2060_v13 = vpop.permute.xlu0 %2059  ;;  %v5718_v40 = vsel %vm921_vm10, %v3682_v61, %v5597_v11  ;;  %v3511_v28 = vpack.c.bf16 %v5710_v9, %v5710_v9  ;;  %v763_v44 = vrot.slane %v7736_v6, %v5178_v27  ;;  %v7737_v31 = vld [vmem:[#allocation80_spill] sm:$0xff] }
 0x189   : > { %v2413_v29 = vadd.f32 %v2412_v20, %v2411_v36  ;;  %v2213_v8 = vadd.f32 %v2212_v34, %v2211_v50  ;;  %v2283_v51 = vadd.f32 %v2282_v25, %v2281_v14  ;;  %v1976_v19 = vpop.permute.xlu1 %1975  ;;  %1364 = vadd.xlane.f32.xlu1 %v5397_v47  ;;  %v5728_v61 = vadd.f32 %v2342_v12, %v2341_v39  ;;  %v4591_v36 = vld [vmem:[%s4675_s26 + $0x1b0] sm:$0xff] }
 0x18a   : > { %v2148_v1 = vmul.f32 %v4590_v37, %v1976_v19  ;;  %v3690_v11 = vunpack.c.l.b16 %v3511_v28  ;;  %v2344_v9 = vsel %vm371_vm2, %v2147_v55, 0.0  ;;  %v2163_v50 = vmul.f32 %v4591_v36, %v2060_v13 }
 0x18b   : > { %v2214_v33 = vrot.slane %v2213_v8, 2  ;;  %v2284_v62 = vrot.slane %v2283_v51, 4  ;;  %v2414_v6 = vrot.slane %v2413_v29, 1  ;;  %v3518_v39 = vpack.c.bf16 %v5728_v61, %v5728_v61 }
 0x18c   : > { %v2345_v20 = vsel %vm371_vm2, %v2148_v1, 0.0  ;;  %1367 = vadd.xlane.f32.xlu0 %v5405_v35  ;;  %v1818_v47 = vpop.permute.xlu0 %1817  ;;  %v5736_v34 = vsel %vm921_vm10, %v3690_v11, %v5620_v2  ;;  %v5742_v13 = vsel %vm371_vm2, %v1161_v15, 0.0  ;;  %v4592_v35 = vld [vmem:[%s4675_s26 + $0x1b8] sm:$0xff]  ;;  %v7738_v2 = vrot.slane %v7731_v41, %v5175_v21 }
 0x18d   : > { %v2215_v12 = vadd.f32 %v2214_v33, %v2213_v8  ;;  %v2285_v55 = vadd.f32 %v2284_v62, %v2283_v51  ;;  %v2346_v14 = vadd.f32 %v2345_v20, %v2344_v9  ;;  %v2064_v25 = vpop.permute.xlu1 %2063  ;;  %1232 = vadd.xlane.f32.xlu1 %v5409_v18  ;;  %v3697_v19 = vunpack.c.l.b16 %v3518_v39  ;;  %v4593_v9 = vld [vmem:[%s4675_s26 + $0x50] sm:$0xff] }
 0x18e   : > { %v2164_v1 = vmul.f32 %v4592_v35, %v2064_v25  ;;  %v764_v28 = vsel %vm637_vm7, %v763_v44, %v7738_v2  ;;  %v5749_v37 = vadd.f32 %v2414_v6, %v2413_v29  ;;  %v2119_v8 = vmul.f32 %v4593_v9, %v1818_v47  ;;  %v5768_v25 = vld [vmem:[%s4675_s26 + $0xe0] sm:$0xff] }
 0x18f   : > { %v2286_v33 = vrot.slane %v2285_v55, 2  ;;  %v2347_v62 = vrot.slane %v2346_v14, 4  ;;  %v2216_v18 = vrot.slane %v2215_v12, 1  ;;  %v2416_v15 = vsel %vm371_vm2, %v2163_v50, 0.0 }
 0x190   : > { %v2417_v51 = vsel %vm371_vm2, %v2164_v1, 0.0  ;;  %1235 = vadd.xlane.f32.xlu0 %v5412_v7  ;;  %v1906_v11 = vpop.permute.xlu0 %1905  ;;  %v5757_v44 = vsel %vm919_vm9, %v3697_v19, %v5659_v24  ;;  %v3526_v6 = vpack.c.bf16 %v5749_v37, %v5749_v37  ;;  %v5764_v50 = vsel %vm371_vm2, %v5708_v4, 0.0  ;;  %v4594_v7 = vld [vmem:[%s4675_s26 + $0x58] sm:$0xff] }
 0x191   : > { %v2287_v29 = vadd.f32 %v2286_v33, %v2285_v55  ;;  %v2348_v36 = vadd.f32 %v2347_v62, %v2346_v14  ;;  %v2418_v20 = vadd.f32 %v2417_v51, %v2416_v15  ;;  %v1822_v47 = vpop.permute.xlu1 %1821  ;;  %1280 = vadd.xlane.f32.xlu1 %v5415_v60  ;;  %v1177_v24 = vmul.f32 %v5768_v25, %v764_v28  ;;  %v4596_v60 = vld [vmem:[%s4675_s26 + $0xd0] sm:$0xff] }
 0x192   : > { %v2120_v39 = vmul.f32 %v4594_v7, %v1822_v47  ;;  %v3705_v35 = vunpack.c.l.b16 %v3526_v6  ;;  %v5771_v1 = vadd.f32 %v2216_v18, %v2215_v12  ;;  %v2218_v14 = vsel %vm371_vm2, %v2119_v8, 0.0  ;;  %v5785_v6 = vld [vmem:[%s4675_s26 + $0xe8] sm:$0xff]  ;;  %v4598_v7 = vld [vmem:[%s4675_s26 + $0xd8] sm:$0xff] }
 0x193   : > { %v2349_v55 = vrot.slane %v2348_v36, 2  ;;  %v2419_v2 = vrot.slane %v2418_v20, 4  ;;  %v2288_v19 = vrot.slane %v2287_v29, 1  ;;  %v2135_v33 = vmul.f32 %v4596_v60, %v1906_v11 }
 0x194   : > { %v2219_v4 = vsel %vm371_vm2, %v2120_v39, 0.0  ;;  %1283 = vadd.xlane.f32.xlu0 %v5426_v5  ;;  %v1983_v62 = vpop.permute.xlu0 %1982  ;;  %v5779_v9 = vsel %vm919_vm9, %v3705_v35, %v5694_v26  ;;  %v3504_v12 = vpack.c.bf16 %v5771_v1, %v5771_v1  ;;  %v1178_v11 = vmul.f32 %v5785_v6, %v764_v28  ;;  %v7739_v5 = vld [vmem:[#allocation81_spill] sm:$0xff] }
 0x195   : > { %v2350_v18 = vadd.f32 %v2349_v55, %v2348_v36  ;;  %v2420_v15 = vadd.f32 %v2419_v2, %v2418_v20  ;;  %v2220_v8 = vadd.f32 %v2219_v4, %v2218_v14  ;;  %v1910_v51 = vpop.permute.xlu1 %1909  ;;  %1322 = vadd.xlane.f32.xlu1 %v5439_v42  ;;  %v826_v47 = vrot.slane %v7739_v5, %v5178_v27  ;;  %v7740_v2 = vld [vmem:[#allocation82_spill] sm:$0xff] }
 0x196   : > { %v2136_v39 = vmul.f32 %v4598_v7, %v1910_v51  ;;  %v3683_v26 = vunpack.c.l.b16 %v3504_v12  ;;  %v5791_v35 = vadd.f32 %v2288_v19, %v2287_v29  ;;  %v2149_v36 = vmul.f32 %v5583_v10, %v1983_v62 }
 0x197   : > { %v2421_v60 = vrot.slane %v2420_v15, 2  ;;  %v2221_v3 = vrot.slane %v2220_v8, 4  ;;  %v2351_v20 = vrot.slane %v2350_v18, 1  ;;  %v2290_v55 = vsel %vm371_vm2, %v2135_v33, 0.0 }
 0x198   : > { %v2291_v42 = vsel %vm371_vm2, %v2136_v39, 0.0  ;;  %1325 = vadd.xlane.f32.xlu0 %v5444_v58  ;;  %v2071_v28 = vpop.permute.xlu0 %2070  ;;  %v5799_v14 = vsel %vm923_vm11, %v3683_v26, %v5718_v40  ;;  %v3512_v29 = vpack.c.bf16 %v5791_v35, %v5791_v35  ;;  %v894_v19 = vrot.slane %v7740_v2, %v5175_v21 }
 0x199   : > { %v2422_v4 = vadd.f32 %v2421_v60, %v2420_v15  ;;  %v2222_v10 = vadd.f32 %v2221_v3, %v2220_v8  ;;  %v2292_v62 = vadd.f32 %v2291_v42, %v2290_v55  ;;  %v1987_v12 = vpop.permute.xlu1 %1986  ;;  %1370 = vadd.xlane.f32.xlu1 %v5447_v49  ;;  %v5808_v58 = vsel %vm371_vm2, %v1177_v24, 0.0 }
 0x19a   : > { %v2150_v33 = vmul.f32 %v5603_v32, %v1987_v12  ;;  %v3691_v51 = vunpack.c.l.b16 %v3512_v29  ;;  %v5810_v40 = vadd.f32 %v2351_v20, %v2350_v18  ;;  %v2353_v39 = vsel %vm371_vm2, %v2149_v36, 0.0 }
 0x19b   : > { %v2223_v7 = vrot.slane %v2222_v10, 2  ;;  %v2293_v26 = vrot.slane %v2292_v62, 4  ;;  %v2423_v5 = vrot.slane %v2422_v4, 1  ;;  %v2165_v15 = vmul.f32 %v5635_v23, %v2071_v28 }
 0x19c   : > { %v2354_v3 = vsel %vm371_vm2, %v2150_v33, 0.0  ;;  %1373 = vadd.xlane.f32.xlu0 %v5454_v17  ;;  %v1829_v49 = vpop.permute.xlu0 %1828  ;;  %v5818_v32 = vsel %vm923_vm11, %v3691_v51, %v5736_v34  ;;  %v3519_v24 = vpack.c.bf16 %v5810_v40, %v5810_v40  ;;  %v5824_v23 = vsel %vm371_vm2, %v1178_v11, 0.0  ;;  %v4599_v51 = vld [vmem:[%s4675_s26 + $0x150] sm:$0xff] }
 0x19d   : > { %v2224_v18 = vadd.f32 %v2223_v7, %v2222_v10  ;;  %v2294_v8 = vadd.f32 %v2293_v26, %v2292_v62  ;;  %v2355_v60 = vadd.f32 %v2354_v3, %v2353_v39  ;;  %v2075_v36 = vpop.permute.xlu1 %2074  ;;  %1238 = vadd.xlane.f32.xlu1 %v5457_v54  ;;  %v7741_v17 = vrot.slane %v7737_v31, %v5175_v21  ;;  %v4600_v26 = vld [vmem:[%s4675_s26 + $0x158] sm:$0xff] }
 0x19e   : > { %v2166_v20 = vmul.f32 %v5646_v57, %v2075_v36  ;;  %v3698_v55 = vunpack.c.l.b16 %v3519_v24  ;;  %v5831_v42 = vadd.f32 %v2423_v5, %v2422_v4  ;;  %v2121_v10 = vmul.f32 %v5700_v30, %v1829_v49 }
 0x19f   : > { %v827_v34 = vsel %vm637_vm7, %v826_v47, %v7741_v17  ;;  %v2295_v28 = vrot.slane %v2294_v8, 2  ;;  %v2356_v29 = vrot.slane %v2355_v60, 4  ;;  %v2225_v54 = vrot.slane %v2224_v18, 1 }
 0x1a0   : > { %v2425_v11 = vsel %vm371_vm2, %v2165_v15, 0.0  ;;  %v2426_v62 = vsel %vm371_vm2, %v2166_v20, 0.0  ;;  %1241 = vadd.xlane.f32.xlu0 %v5465_v53  ;;  %v1917_v57 = vpop.permute.xlu0 %1916  ;;  %v5839_v47 = vsel %vm921_vm10, %v3698_v55, %v5757_v44  ;;  %v3527_v5 = vpack.c.bf16 %v5831_v42, %v5831_v42  ;;  %v7742_v20 = vld [vmem:[#allocation2_spill] sm:$0xff] }
 0x1a1   : > { %v2296_v4 = vadd.f32 %v2295_v28, %v2294_v8  ;;  %v2357_v12 = vadd.f32 %v2356_v29, %v2355_v60  ;;  %v2427_v33 = vadd.f32 %v2426_v62, %v2425_v11  ;;  %v1833_v30 = vpop.permute.xlu1 %1832  ;;  %1286 = vadd.xlane.f32.xlu1 %v5473_v45  ;;  %v1191_v7 = vmul.f32 %v4599_v51, %v827_v34  ;;  %v7743_v29 = vld [vmem:[#allocation3_spill] sm:$0xff] }
 0x1a2   : > { %v2122_v39 = vmul.f32 %v5705_v56, %v1833_v30  ;;  %v1192_v53 = vmul.f32 %v4600_v26, %v827_v34  ;;  %v3706_v15 = vunpack.c.l.b16 %v3527_v5  ;;  %v5847_v3 = vadd.f32 %v2225_v54, %v2224_v18 }
 0x1a3   : > { %v2358_v44 = vrot.slane %v2357_v12, 2  ;;  %v2227_v49 = vsel %vm371_vm2, %v2121_v10, 0.0  ;;  %v2428_v24 = vrot.slane %v2427_v33, 4  ;;  %v2297_v36 = vrot.slane %v2296_v4, 1 }
 0x1a4   : > { %v2137_v8 = vmul.f32 %v5768_v25, %v1917_v57  ;;  %v2228_v60 = vsel %vm371_vm2, %v2122_v39, 0.0  ;;  %1289 = vadd.xlane.f32.xlu0 %v7742_v20  ;;  %v1994_v45 = vpop.permute.xlu0 %1993  ;;  %v5855_v56 = vsel %vm921_vm10, %v3706_v15, %v5779_v9  ;;  %v3505_v18 = vpack.c.bf16 %v5847_v3, %v5847_v3  ;;  %v7744_v25 = vld [vmem:[#allocation83_spill] sm:$0xff]  ;;  %v7745_v39 = vld [vmem:[#allocation4_spill] sm:$0xff] }
 0x1a5   : > { %v2359_v17 = vadd.f32 %v2358_v44, %v2357_v12  ;;  %v2429_v34 = vadd.f32 %v2428_v24, %v2427_v33  ;;  %v2229_v55 = vadd.f32 %v2228_v60, %v2227_v49  ;;  %v1921_v28 = vpop.permute.xlu1 %1920  ;;  %1328 = vadd.xlane.f32.xlu1 %v7743_v29  ;;  %v898_v10 = vrot.slane %v7744_v25, %v5178_v27  ;;  %v7747_v60 = vld [vmem:[#allocation5_spill] sm:$0xff] }
 0x1a6   : > { %v2138_v54 = vmul.f32 %v5785_v6, %v1921_v28  ;;  %v3684_v11 = vunpack.c.l.b16 %v3505_v18  ;;  %v5863_v62 = vadd.f32 %v2297_v36, %v2296_v4  ;;  %v2151_v5 = vmul.f32 %v4599_v51, %v1994_v45  ;;  %v7746_v4 = vld [vmem:[#allocation84_spill] sm:$0xff] }
 0x1a7   : > { %v2430_v9 = vrot.slane %v2429_v34, 2  ;;  %v2230_v57 = vrot.slane %v2229_v55, 4  ;;  %v2360_v30 = vrot.slane %v2359_v17, 1  ;;  %v2299_v12 = vsel %vm371_vm2, %v2137_v8, 0.0 }
 0x1a8   : > { %v2300_v33 = vsel %vm371_vm2, %v2138_v54, 0.0  ;;  %1331 = vadd.xlane.f32.xlu0 %v7745_v39  ;;  %v2082_v15 = vpop.permute.xlu0 %2081  ;;  %v3513_v44 = vpack.c.bf16 %v5863_v62, %v5863_v62  ;;  %v5872_v6 = vsel %vm925_vm12, %v3684_v11, %v5799_v14  ;;  %v5878_v45 = vsel %vm371_vm2, %v1191_v7, 0.0  ;;  %v4601_v39 = vld [vmem:[%s4675_s26 + $0x1d0] sm:$0xff] }
 0x1a9   : > { %v2431_v51 = vadd.f32 %v2430_v9, %v2429_v34  ;;  %v2231_v24 = vadd.f32 %v2230_v57, %v2229_v55  ;;  %v2301_v36 = vadd.f32 %v2300_v33, %v2299_v12  ;;  %v1998_v8 = vpop.permute.xlu1 %1997  ;;  %1376 = vadd.xlane.f32.xlu1 %v7747_v60  ;;  %v5880_v28 = vadd.f32 %v2360_v30, %v2359_v17  ;;  %v7748_v9 = vld [vmem:[#allocation6_spill] sm:$0xff]  ;;  %v7749_v33 = vld [vmem:[#allocation8_spill] sm:$0xff] }
 0x1aa   : > { %v2152_v20 = vmul.f32 %v4600_v26, %v1998_v8  ;;  %v3692_v18 = vunpack.c.l.b16 %v3513_v44  ;;  %v2362_v14 = vsel %vm371_vm2, %v2151_v5, 0.0  ;;  %v2167_v34 = vmul.f32 %v4601_v39, %v2082_v15  ;;  %v4602_v44 = vld [vmem:[%s4675_s26 + $0x1d8] sm:$0xff] }
 0x1ab   : > { %v2232_v29 = vrot.slane %v2231_v24, 2  ;;  %v2302_v54 = vrot.slane %v2301_v36, 4  ;;  %v2432_v11 = vrot.slane %v2431_v51, 1  ;;  %v3520_v7 = vpack.c.bf16 %v5880_v28, %v5880_v28 }
 0x1ac   : > { %v2363_v55 = vsel %vm371_vm2, %v2152_v20, 0.0  ;;  %1379 = vadd.xlane.f32.xlu0 %v7748_v9  ;;  %v1840_v57 = vpop.permute.xlu0 %1839  ;;  %v5890_v26 = vsel %vm925_vm12, %v3692_v18, %v5818_v32  ;;  %v5894_v15 = vsel %vm371_vm2, %v1192_v53, 0.0  ;;  %v899_v60 = vsel %vm637_vm7, %v898_v10, %v894_v19 }
 0x1ad   : > { %v2233_v17 = vadd.f32 %v2232_v29, %v2231_v24  ;;  %v2303_v5 = vadd.f32 %v2302_v54, %v2301_v36  ;;  %v2364_v30 = vadd.f32 %v2363_v55, %v2362_v14  ;;  %v2086_v12 = vpop.permute.xlu1 %2085  ;;  %1244 = vadd.xlane.f32.xlu1 %v7749_v33  ;;  %v3699_v20 = vunpack.c.l.b16 %v3520_v7  ;;  %v5904_v36 = vld [vmem:[%s4675_s26 + $0x70] sm:$0xff]  ;;  %v7750_v54 = vld [vmem:[#allocation9_spill] sm:$0xff] }
 0x1ae   : > { %v2168_v8 = vmul.f32 %v4602_v44, %v2086_v12  ;;  %v5901_v9 = vadd.f32 %v2432_v11, %v2431_v51  ;;  %v2123_v18 = vmul.f32 %v5904_v36, %v1840_v57  ;;  %v2434_v53 = vsel %vm371_vm2, %v2167_v34, 0.0  ;;  %v5918_v12 = vld [vmem:[%s4675_s26 + $0x78] sm:$0xff] }
 0x1af   : > { %v2304_v32 = vrot.slane %v2303_v5, 2  ;;  %v2365_v24 = vrot.slane %v2364_v30, 4  ;;  %v2234_v29 = vrot.slane %v2233_v17, 1  ;;  %v5912_v19 = vsel %vm923_vm11, %v3699_v20, %v5839_v47 }
 0x1b0   : > { %v2435_v14 = vsel %vm371_vm2, %v2168_v8, 0.0  ;;  %1247 = vadd.xlane.f32.xlu0 %v7750_v54  ;;  %v1928_v55 = vpop.permute.xlu0 %1927  ;;  %v3528_v10 = vpack.c.bf16 %v5901_v9, %v5901_v9  ;;  %v1207_v34 = vmul.f32 %v4601_v39, %v899_v60  ;;  %v5921_v8 = vmul.f32 %v4602_v44, %v899_v60 }
 0x1b1   : > { %v2305_v51 = vadd.f32 %v2304_v32, %v2303_v5  ;;  %v2366_v11 = vadd.f32 %v2365_v24, %v2364_v30  ;;  %v2436_v7 = vadd.f32 %v2435_v14, %v2434_v53  ;;  %v1844_v57 = vpop.permute.xlu1 %1843  ;;  %1292 = vadd.xlane.f32.xlu1 %v5551_v22  ;;  %v5923_v47 = vadd.f32 %v2234_v29, %v2233_v17  ;;  %v5927_v30 = vld [vmem:[%s4675_s26 + $0xf0] sm:$0xff]  ;;  %v7751_v53 = vld [vmem:[#allocation86_spill] sm:$0xff] }
 0x1b2   : > { %v2124_v33 = vmul.f32 %v5918_v12, %v1844_v57  ;;  %v3707_v54 = vunpack.c.l.b16 %v3528_v10  ;;  %v2236_v49 = vsel %vm371_vm2, %v2123_v18, 0.0  ;;  %v2139_v22 = vmul.f32 %v5927_v30, %v1928_v55 }
 0x1b3   : > { %v2367_v20 = vrot.slane %v2366_v11, 2  ;;  %v2437_v25 = vrot.slane %v2436_v7, 4  ;;  %v2306_v5 = vrot.slane %v2305_v51, 1  ;;  %v3506_v44 = vpack.c.bf16 %v5923_v47, %v5923_v47 }
 0x1b4   : > { %v2237_v39 = vsel %vm371_vm2, %v2124_v33, 0.0  ;;  %1295 = vadd.xlane.f32.xlu0 %v5558_v59  ;;  %v2005_v32 = vpop.permute.xlu0 %2004  ;;  %v5934_v17 = vsel %vm923_vm11, %v3707_v54, %v5855_v56  ;;  %v700_v14 = vrot.slane %v7751_v53, %v5178_v27  ;;  %v5942_v59 = vld [vmem:[%s4675_s26 + $0xf8] sm:$0xff]  ;;  %v5968_v53 = vsel %vm371_vm2, %v1207_v34, 0.0 }
 0x1b5   : > { %v2368_v60 = vadd.f32 %v2367_v20, %v2366_v11  ;;  %v2438_v24 = vadd.f32 %v2437_v25, %v2436_v7  ;;  %v2238_v18 = vadd.f32 %v2237_v39, %v2236_v49  ;;  %v1932_v29 = vpop.permute.xlu1 %1931  ;;  %1334 = vadd.xlane.f32.xlu1 %v5624_v52  ;;  %v3685_v10 = vunpack.c.l.b16 %v3506_v44  ;;  %v5948_v11 = vld [vmem:[%s4675_s26 + $0x160] sm:$0xff] }
 0x1b6   : > { %v2140_v55 = vmul.f32 %v5942_v59, %v1932_v29  ;;  %v5945_v56 = vadd.f32 %v2306_v5, %v2305_v51  ;;  %v2153_v25 = vmul.f32 %v5948_v11, %v2005_v32  ;;  %v2308_v52 = vsel %vm371_vm2, %v2139_v22, 0.0  ;;  %v7752_v5 = vld [vmem:[#allocation87_spill] sm:$0xff] }
 0x1b7   : > { %v2439_v57 = vrot.slane %v2438_v24, 2  ;;  %v2239_v33 = vrot.slane %v2238_v18, 4  ;;  %v2369_v49 = vrot.slane %v2368_v60, 1  ;;  %v5958_v51 = vsel %vm927_vm13, %v3685_v10, %v5872_v6 }
 0x1b8   : > { %v2309_v7 = vsel %vm371_vm2, %v2140_v55, 0.0  ;;  %1337 = vadd.xlane.f32.xlu0 %v5628_v0  ;;  %v2093_v54 = vpop.permute.xlu0 %2092  ;;  %v3514_v20 = vpack.c.bf16 %v5945_v56, %v5945_v56  ;;  %v5964_v55 = vld [vmem:[%s4675_s26 + $0x168] sm:$0xff]  ;;  %v2371_v31 = vsel %vm371_vm2, %v2153_v25, 0.0 }
 0x1b9   : > { %v2440_v32 = vadd.f32 %v2439_v57, %v2438_v24  ;;  %v2240_v44 = vadd.f32 %v2239_v33, %v2238_v18  ;;  %v2310_v29 = vadd.f32 %v2309_v7, %v2308_v52  ;;  %v2009_v22 = vpop.permute.xlu1 %2008  ;;  %1382 = vadd.xlane.f32.xlu1 %v5666_v63  ;;  %v5970_v6 = vadd.f32 %v2369_v49, %v2368_v60  ;;  %v5974_v57 = vld [vmem:[%s4675_s26 + $0x1e0] sm:$0xff] }
 0x1ba   : > { %v2154_v0 = vmul.f32 %v5964_v55, %v2009_v22  ;;  %v3693_v2 = vunpack.c.l.b16 %v3514_v20  ;;  %v2169_v63 = vmul.f32 %v5974_v57, %v2093_v54  ;;  %v5988_v54 = vsel %vm371_vm2, %v5921_v8, 0.0 }
 0x1bb   : > { %v2241_v10 = vrot.slane %v2240_v44, 2  ;;  %v2311_v24 = vrot.slane %v2310_v29, 4  ;;  %v2441_v18 = vrot.slane %v2440_v32, 1  ;;  %v3521_v34 = vpack.c.bf16 %v5970_v6, %v5970_v6 }
 0x1bc   : > { %v2372_v33 = vsel %vm371_vm2, %v2154_v0, 0.0  ;;  %1385 = vadd.xlane.f32.xlu0 %v5677_v43  ;;  %v2016_v52 = vpop.permute.xlu0 %2015  ;;  %v5983_v60 = vsel %vm927_vm13, %v3693_v2, %v5890_v26  ;;  %v5991_v43 = vld [vmem:[%s4675_s26 + $0x1e8] sm:$0xff]  ;;  %v7753_v0 = vrot.slane %v7746_v4, %v5175_v21 }
 0x1bd   : > { %v2242_v25 = vadd.f32 %v2241_v10, %v2240_v44  ;;  %v2312_v49 = vadd.f32 %v2311_v24, %v2310_v29  ;;  %v2373_v7 = vadd.f32 %v2372_v33, %v2371_v31  ;;  %v2097_v20 = vpop.permute.xlu1 %2096  ;;  %1250 = vadd.xlane.f32.xlu1 %v5742_v13  ;;  %v3700_v26 = vunpack.c.l.b16 %v3521_v34  ;;  %v6001_v13 = vld [vmem:[%s4675_s26 + $0x170] sm:$0xff] }
 0x1be   : > { %v2170_v22 = vmul.f32 %v5991_v43, %v2097_v20  ;;  %v701_v2 = vsel %vm637_vm7, %v700_v14, %v7753_v0  ;;  %v5998_v44 = vadd.f32 %v2441_v18, %v2440_v32  ;;  %v2155_v8 = vmul.f32 %v6001_v13, %v2016_v52  ;;  %v7755_v18 = vld [vmem:[#allocation88_spill] sm:$0xff] }
 0x1bf   : > { %v2313_v31 = vrot.slane %v2312_v49, 2  ;;  %v2374_v29 = vrot.slane %v2373_v7, 4  ;;  %v2243_v10 = vrot.slane %v2242_v25, 1  ;;  %v2443_v24 = vsel %vm371_vm2, %v2169_v63, 0.0 }
 0x1c0   : > { %7754 = vst [vmem:[#allocation17_spill] sm:$0xff] %v5998_v44  ;;  %v2444_v33 = vsel %vm371_vm2, %v2170_v22, 0.0  ;;  %1253 = vadd.xlane.f32.xlu0 %v5764_v50  ;;  %v6009_v14 = vsel %vm925_vm12, %v3700_v26, %v5912_v19  ;;  %v3529_v32 = vpack.c.bf16 %v5998_v44, %v5998_v44  ;;  %v772_v34 = vrot.slane %v7755_v18, %v5178_v27  ;;  %v2104_v39 = vpop.permute.xlu0 %2103  ;;  %v6017_v22 = vld [vmem:[%s4675_s26 + $0x178] sm:$0xff] }
 0x1c1   : > { %v2314_v20 = vadd.f32 %v2313_v31, %v2312_v49  ;;  %v2375_v52 = vadd.f32 %v2374_v29, %v2373_v7  ;;  %v2445_v0 = vadd.f32 %v2444_v33, %v2443_v24  ;;  %v2020_v63 = vpop.permute.xlu1 %2019  ;;  %1298 = vadd.xlane.f32.xlu1 %v5808_v58  ;;  %v6020_v26 = vadd.f32 %v2243_v10, %v2242_v25  ;;  %v6024_v7 = vld [vmem:[%s4675_s26 + $0x1f0] sm:$0xff] }
 0x1c2   : > { %v2156_v50 = vmul.f32 %v6017_v22, %v2020_v63  ;;  %v3708_v19 = vunpack.c.l.b16 %v3529_v32  ;;  %v2380_v18 = vsel %vm371_vm2, %v2155_v8, 0.0  ;;  %v2171_v31 = vmul.f32 %v6024_v7, %v2104_v39  ;;  %v6039_v39 = vld [vmem:[%s4675_s26 + $0x1f8] sm:$0xff] }
 0x1c3   : > { %7756 = vst [vmem:[#allocation18_spill] sm:$0xff] %v6020_v26  ;;  %v2376_v44 = vrot.slane %v2375_v52, 2  ;;  %v2446_v4 = vrot.slane %v2445_v0, 4  ;;  %v2315_v49 = vrot.slane %v2314_v20, 1  ;;  %v3507_v25 = vpack.c.bf16 %v6020_v26, %v6020_v26 }
 0x1c4   : > { %v2381_v58 = vsel %vm371_vm2, %v2156_v50, 0.0  ;;  %1301 = vadd.xlane.f32.xlu0 %v5824_v23  ;;  %v6031_v29 = vsel %vm925_vm12, %v3708_v19, %v5934_v17  ;;  %v1163_v23 = vmul.f32 %v5904_v36, %v701_v2  ;;  %v7758_v17 = vrot.slane %v7752_v5, %v5175_v21 }
 0x1c5   : > { %v2377_v10 = vadd.f32 %v2376_v44, %v2375_v52  ;;  %v2447_v24 = vadd.f32 %v2446_v4, %v2445_v0  ;;  %v2382_v8 = vadd.f32 %v2381_v58, %v2380_v18  ;;  %v2108_v33 = vpop.permute.xlu1 %2107  ;;  %1340 = vadd.xlane.f32.xlu1 %v5878_v45  ;;  %v6036_v32 = vadd.f32 %v2315_v49, %v2314_v20  ;;  %v7759_v4 = vld [vmem:[#allocation90_spill] sm:$0xff] }
 0x1c6   : > { %v2172_v63 = vmul.f32 %v6039_v39, %v2108_v33  ;;  %v773_v50 = vsel %vm637_vm7, %v772_v34, %v7758_v17  ;;  %v3686_v19 = vunpack.c.l.b16 %v3507_v25  ;;  %v835_v44 = vrot.slane %v7759_v4, %v5178_v27  ;;  %v7761_v17 = vld [vmem:[#allocation89_spill] sm:$0xff] }
 0x1c7   : > { %7757 = vst [vmem:[#allocation19_spill] sm:$0xff] %v6036_v32  ;;  %v2448_v18 = vrot.slane %v2447_v24, 2  ;;  %v2383_v52 = vrot.slane %v2382_v8, 4  ;;  %v3515_v45 = vpack.c.bf16 %v6036_v32, %v6036_v32  ;;  %v2452_v20 = vsel %vm371_vm2, %v2171_v31, 0.0 }
 0x1c8   : > { %v2453_v0 = vsel %vm371_vm2, %v2172_v63, 0.0  ;;  %1343 = vadd.xlane.f32.xlu0 %v5894_v15  ;;  %v2378_v36 = vrot.slane %v2377_v10, 1  ;;  %v6056_v49 = vsel %vm929_vm14, %v3686_v19, %v5958_v51  ;;  %v1164_v33 = vmul.f32 %v5918_v12, %v701_v2 }
 0x1c9   : > { %7760 = vst [vmem:[#allocation20_spill] sm:$0xff] %v6056_v49  ;;  %v2449_v34 = vadd.f32 %v2448_v18, %v2447_v24  ;;  %v2384_v58 = vadd.f32 %v2383_v52, %v2382_v8  ;;  %v2454_v25 = vadd.f32 %v2453_v0, %v2452_v20  ;;  %1388 = vadd.xlane.f32.xlu1 %v5968_v53  ;;  %v1255_v31 = vsel %vm371_vm2, %v1163_v23, 0.0  ;;  %v7762_v24 = vld [vmem:[#allocation92_spill] sm:$0xff]  ;;  %v7764_v52 = vld [vmem:[#allocation91_spill] sm:$0xff] }
 0x1ca   : > { %v831_v32 = vrot.slane %v7761_v17, %v5175_v21  ;;  %v3694_v63 = vunpack.c.l.b16 %v3515_v45  ;;  %v6063_v4 = vadd.f32 %v2378_v36, %v2377_v10  ;;  %v1179_v51 = vmul.f32 %v5927_v30, %v773_v50 }
 0x1cb   : > { %v2385_v15 = vrot.slane %v2384_v58, 2  ;;  %v2455_v26 = vrot.slane %v2454_v25, 4  ;;  %v2450_v19 = vrot.slane %v2449_v34, 1  ;;  %v907_v8 = vrot.slane %v7762_v24, %v5178_v27 }
 0x1cc   : > { %1391 = vadd.xlane.f32.xlu0 %v5988_v54  ;;  %v836_v12 = vsel %vm637_vm7, %v835_v44, %v831_v32  ;;  %v3522_v53 = vpack.c.bf16 %v6063_v4, %v6063_v4  ;;  %v6074_v2 = vsel %vm929_vm14, %v3694_v63, %v5983_v60  ;;  %v903_v54 = vrot.slane %v7764_v52, %v5175_v21 }
 0x1cd   : > { %7763 = vst [vmem:[#allocation78_spill] sm:$0xff] %v6074_v2  ;;  %v2386_v10 = vadd.f32 %v2385_v15, %v2384_v58  ;;  %v2456_v23 = vadd.f32 %v2455_v26, %v2454_v25  ;;  %1256 = vadd.xlane.f32.xlu1 %v1255_v31  ;;  %v6076_v18 = vadd.f32 %v2450_v19, %v2449_v34  ;;  %v1258_v20 = vsel %vm371_vm2, %v1164_v33, 0.0 }
 0x1ce   : > { %v1180_v32 = vmul.f32 %v5942_v59, %v773_v50  ;;  %v3701_v44 = vunpack.c.l.b16 %v3522_v53  ;;  %v1303_v26 = vsel %vm371_vm2, %v1179_v51, 0.0  ;;  %v1193_v36 = vmul.f32 %v5948_v11, %v836_v12  ;;  %v7765_v59 = vld [vmem:[#allocation94_spill] sm:$0xff]  ;;  %v7766_v51 = vld [vmem:[#allocation93_spill] sm:$0xff] }
 0x1cf   : > { %v2457_v45 = vrot.slane %v2456_v23, 2  ;;  %v3530_v60 = vpack.c.bf16 %v6076_v18, %v6076_v18  ;;  %v2387_v0 = vrot.slane %v2386_v10, 1  ;;  %v908_v34 = vsel %vm637_vm7, %v907_v8, %v903_v54 }
 0x1d0   : > { %1259 = vadd.xlane.f32.xlu0 %v1258_v20  ;;  %v3730_v58 = vsel %vm927_vm13, %v3701_v44, %v6009_v14  ;;  %v844_v50 = vrot.slane %v7765_v59, %v5178_v27  ;;  %v1306_v63 = vsel %vm371_vm2, %v1180_v32, 0.0  ;;  %v1194_v15 = vmul.f32 %v5964_v55, %v836_v12  ;;  %v7768_v44 = vld [vmem:[#allocation95_spill] sm:$0xff] }
 0x1d1   : > { %v2458_v25 = vadd.f32 %v2457_v45, %v2456_v23  ;;  %1304 = vadd.xlane.f32.xlu1 %v1303_v26  ;;  %v3709_v33 = vunpack.c.l.b16 %v3530_v60  ;;  %v6093_v31 = vadd.f32 %v2387_v0, %v2386_v10  ;;  %v840_v11 = vrot.slane %v7766_v51, %v5175_v21  ;;  %v7767_v23 = vld [vmem:[#allocation96_spill] sm:$0xff] }
 0x1d2   : > { %v1345_v53 = vsel %vm371_vm2, %v1193_v36, 0.0  ;;  %v1209_v10 = vmul.f32 %v5974_v57, %v908_v34  ;;  %v916_v54 = vrot.slane %v7767_v23, %v5178_v27  ;;  %v912_v45 = vrot.slane %v7768_v44, %v5175_v21 }
 0x1d3   : > { %v3737_v19 = vsel %vm927_vm13, %v3709_v33, %v6031_v29  ;;  %v3523_v14 = vpack.c.bf16 %v6093_v31, %v6093_v31  ;;  %v2459_v8 = vrot.slane %v2458_v25, 1  ;;  %v845_v55 = vsel %vm637_vm7, %v844_v50, %v840_v11 }
 0x1d4   : > { %1307 = vadd.xlane.f32.xlu0 %v1306_v63  ;;  %v1348_v29 = vsel %vm371_vm2, %v1194_v15, 0.0  ;;  %v1210_v20 = vmul.f32 %v5991_v43, %v908_v34  ;;  %v1393_v27 = vsel %vm371_vm2, %v1209_v10, 0.0  ;;  %v1195_v0 = vmul.f32 %v6001_v13, %v845_v55  ;;  %v7771_v15 = vld [vmem:[#allocation21_spill] sm:$0xff]  ;;  %v7774_v10 = vld [vmem:[#allocation10_spill] sm:$0xff] }
 0x1d5   : > { %1346 = vadd.xlane.f32.xlu1 %v1345_v53  ;;  %v3702_v12 = vunpack.c.l.b16 %v3523_v14  ;;  %v6108_v32 = vadd.f32 %v2459_v8, %v2458_v25  ;;  %v917_v26 = vsel %vm637_vm7, %v916_v54, %v912_v45  ;;  %v1196_v21 = vmul.f32 %v6017_v22, %v845_v55  ;;  %v7773_v8 = vld [vmem:[#allocation22_spill] sm:$0xff]  ;;  %v7788_v25 = vld [vmem:[#allocation15_spill] sm:$0xff] }
 0x1d6   : > { %v1396_v50 = vsel %vm371_vm2, %v1210_v20, 0.0  ;;  %v1351_v34 = vsel %vm371_vm2, %v1195_v0, 0.0  ;;  %v1212_v33 = vmul.f32 %v6039_v39, %v917_v26  ;;  %v6136_v11 = vsub.f32 1.0, %v7771_v15 }
 0x1d7   : > { %v3531_v60 = vpack.c.bf16 %v6108_v32, %v6108_v32  ;;  %v6117_v57 = vsel %vm929_vm14, %v3702_v12, %v3730_v58  ;;  %v1211_v58 = vmul.f32 %v6024_v7, %v917_v26  ;;  %v1354_v13 = vsel %vm371_vm2, %v1196_v21, 0.0 }
 0x1d8   : > { %7769 = vst [vmem:[#allocation2_spill] sm:$0xff] %v6117_v57  ;;  %1349 = vadd.xlane.f32.xlu0 %v1348_v29  ;;  %v1402_v22 = vsel %vm371_vm2, %v1212_v33, 0.0  ;;  %v2469_v14 = vrot.slane %v6136_v11, 1  ;;  %v7775_v29 = vld [vmem:[#allocation27_spill] sm:$0xff] }
 0x1d9   : > { %1394 = vadd.xlane.f32.xlu1 %v1393_v27  ;;  %v3710_v36 = vunpack.c.l.b16 %v3531_v60  ;;  %v1399_v63 = vsel %vm371_vm2, %v1211_v58, 0.0  ;;  %v6149_v45 = vsub.f32 1.0, %v7775_v29 }
 0x1da   : > { %v2530_v54 = vmul.f32 %v2469_v14, %v7774_v10  ;;  %v7777_v10 = vld [vmem:[#allocation11_spill] sm:$0xff] }
 0x1db   : > { %v6125_v43 = vsel %vm929_vm14, %v3710_v36, %v3737_v19  ;;  %v7772_v19 = vld [vmem:[#allocation7_spill] sm:$0xff]  ;;  %v2537_v60 = vmul.f32 %v6149_v45, %v5536_v38  ;;  %v2476_v26 = vrot.slane %v6149_v45, 1  ;;  %v2470_v38 = vrot.slane %v6136_v11, 2 }
 0x1dc   : > { %7770 = vst [vmem:[#allocation3_spill] sm:$0xff] %v6125_v43  ;;  %1397 = vadd.xlane.f32.xlu0 %v1396_v50  ;;  %v2529_v7 = vmul.f32 %v6136_v11, %v7772_v19  ;;  %v2575_v55 = vrot.slane %v2530_v54, %v7773_v8 }
 0x1dd   : > { %1352 = vadd.xlane.f32.xlu1 %v1351_v34  ;;  %v2652_v36 = vrot.slane %v2537_v60, %v7773_v8  ;;  %v2538_v50 = vmul.f32 %v2476_v26, %v5555_v48  ;;  %v2477_v48 = vrot.slane %v6149_v45, 2  ;;  %v7778_v26 = vld [vmem:[#allocation12_spill] sm:$0xff] }
 0x1de   : > { %v2564_v53 = vrot.slane %v2529_v7, %v7773_v8  ;;  %v7776_v7 = vld [vmem:[#allocation37_spill] sm:$0xff] }
 0x1df   : > { %v2663_v58 = vrot.slane %v2538_v50, %v7773_v8  ;;  %v2539_v15 = vmul.f32 %v2477_v48, %v5589_v16  ;;  %v6179_v14 = vsub.f32 1.0, %v7776_v7 }
 0x1e0   : > { %1355 = vadd.xlane.f32.xlu0 %v1354_v13  ;;  %v2531_v13 = vmul.f32 %v2470_v38, %v5572_v46  ;;  %v7780_v38 = vld [vmem:[#allocation42_spill] sm:$0xff] }
 0x1e1   : > { %1400 = vadd.xlane.f32.xlu1 %v1399_v63  ;;  %v2674_v46 = vrot.slane %v2539_v15, %v7773_v8  ;;  %v2545_v54 = vmul.f32 %v6179_v14, %v7777_v10  ;;  %v2483_v16 = vrot.slane %v6179_v14, 1 }
 0x1e3   : > { %v2740_v60 = vrot.slane %v2545_v54, %v7773_v8 }
 0x1e4   : > { %1403 = vadd.xlane.f32.xlu0 %v1402_v22  ;;  %v2586_v22 = vrot.slane %v2531_v13, %v7773_v8 }
 0x1f1   : > { %v6143_v39 = vpop.xlane.xlu0 %1214 }
 0x1f2   : > { %2566 = vbcast.lane.b32.xlu1 %v2564_v53, 256 }
 0x1f5   : > { %v6146_v12 = vpop.xlane.xlu0 %1220 }
 0x1f6   : > { %v6151_v20 = vpop.xlane.xlu1 %1217  ;;  %2577 = vbcast.lane.b32.xlu1 %v2575_v55, 256 }
 0x1f9   : > { %v6155_v27 = vpop.xlane.xlu0 %1223 }
 0x1fa   : > { %v6157_v0 = vpop.xlane.xlu1 %1262  ;;  %2581 = vbcast.lane.b32.xlu1 %v2575_v55, 264  ;;  %2570 = vbcast.lane.b32.xlu0 %v2564_v53, 264 }
 0x1fd   : > { %v6162_v21 = vpop.xlane.xlu0 %1265 }
 0x1fe   : > { %v6164_v34 = vpop.xlane.xlu1 %1268  ;;  %2658 = vbcast.lane.b32.xlu1 %v2652_v36, 264  ;;  %2654 = vbcast.lane.b32.xlu0 %v2652_v36, 256  ;;  %v2546_v36 = vmul.f32 %v2483_v16, %v7778_v26  ;;  %v7785_v16 = vld [vmem:[#allocation14_spill] sm:$0xff] }
 0x200   : > { %v2751_v48 = vrot.slane %v2546_v36, %v7773_v8  ;;  %v2471_v36 = vrot.slane %v6136_v11, 3 }
 0x201   : > { %v6169_v33 = vpop.xlane.xlu0 %1271 }
 0x202   : > { %v6171_v63 = vpop.xlane.xlu1 %1226  ;;  %2669 = vbcast.lane.b32.xlu1 %v2663_v58, 264  ;;  %2665 = vbcast.lane.b32.xlu0 %v2663_v58, 256  ;;  %v6196_v58 = vsub.f32 1.0, %v7780_v38  ;;  %v2532_v30 = vmul.f32 %v2471_v36, %v7788_v25  ;;  %v2484_v25 = vrot.slane %v6179_v14, 2 }
 0x204   : > { %v2490_v10 = vrot.slane %v6196_v58, 1  ;;  %v2547_v36 = vmul.f32 %v2484_v25, %v5728_v61  ;;  %v2472_v61 = vrot.slane %v6136_v11, 4 }
 0x205   : > { %v6176_v19 = vpop.xlane.xlu0 %1229 }
 0x206   : > { %v6181_v53 = vpop.xlane.xlu1 %1274  ;;  %2592 = vbcast.lane.b32.xlu1 %v2586_v22, 264  ;;  %2588 = vbcast.lane.b32.xlu0 %v2586_v22, 256  ;;  %v7782_v22 = vld [vmem:[#allocation13_spill] sm:$0xff]  ;;  %v2554_v26 = vmul.f32 %v2490_v10, %v7785_v16  ;;  %v2597_v10 = vrot.slane %v2532_v30, %v7773_v8  ;;  %v7791_v16 = vld [vmem:[#allocation16_spill] sm:$0xff]  ;;  %v2491_v30 = vrot.slane %v6196_v58, 2  ;;  %v2533_v25 = vmul.f32 %v2472_v61, %v5771_v1 }
 0x207   : > { %v2553_v15 = vmul.f32 %v6196_v58, %v7782_v22  ;;  %v2485_v1 = vrot.slane %v6179_v14, 3 }
 0x208   : > { %v2839_v22 = vrot.slane %v2554_v26, %v7773_v8 }
 0x209   : > { %v6186_v55 = vpop.xlane.xlu0 %1277  ;;  %v2828_v54 = vrot.slane %v2553_v15, %v7773_v8  ;;  %v2478_v15 = vrot.slane %v6149_v45, 3  ;;  %v2548_v61 = vmul.f32 %v2485_v1, %v5810_v40  ;;  %v2473_v40 = vrot.slane %v6136_v11, 5 }
 0x20a   : > { %v6188_v29 = vpop.xlane.xlu1 %1310  ;;  %2680 = vbcast.lane.b32.xlu1 %v2674_v46, 264  ;;  %2676 = vbcast.lane.b32.xlu0 %v2674_v46, 256 }
 0x20b   : > { %v2540_v43 = vmul.f32 %v2478_v15, %v7791_v16  ;;  %v2762_v15 = vrot.slane %v2547_v36, %v7773_v8  ;;  %v2555_v16 = vmul.f32 %v2491_v30, %v5749_v37  ;;  %v2479_v37 = vrot.slane %v6149_v45, 4 }
 0x20c   : > { %v2608_v36 = vrot.slane %v2533_v25, %v7773_v8  ;;  %v2773_v25 = vrot.slane %v2548_v61, %v7773_v8  ;;  %v2534_v1 = vmul.f32 %v2473_v40, %v5847_v3  ;;  %v2486_v3 = vrot.slane %v6179_v14, 4 }
 0x20d   : > { %v6193_v50 = vpop.xlane.xlu0 %1313  ;;  %v2685_v26 = vrot.slane %v2540_v43, %v7773_v8  ;;  %v2850_v43 = vrot.slane %v2555_v16, %v7773_v8  ;;  %v2541_v30 = vmul.f32 %v2479_v37, %v5791_v35  ;;  %v2492_v35 = vrot.slane %v6196_v58, 3 }
 0x20e   : > { %7779 = vst [vmem:[#allocation4_spill] sm:$0xff] %v6193_v50  ;;  %v6198_v13 = vpop.xlane.xlu1 %1316  ;;  %2746 = vbcast.lane.b32.xlu1 %v2740_v60, 264  ;;  %2742 = vbcast.lane.b32.xlu0 %v2740_v60, 256  ;;  %v2619_v61 = vrot.slane %v2534_v1, %v7773_v8  ;;  %v2549_v40 = vmul.f32 %v2486_v3, %v5880_v28  ;;  %v2493_v1 = vrot.slane %v6196_v58, 4  ;;  %v2481_v28 = vrot.slane %v6149_v45, 6 }
 0x20f   : > { %7781 = vst [vmem:[#allocation5_spill] sm:$0xff] %v6198_v13  ;;  %v2696_v16 = vrot.slane %v2541_v30, %v7773_v8  ;;  %v2556_v37 = vmul.f32 %v2492_v35, %v5831_v42  ;;  %v2480_v42 = vrot.slane %v6149_v45, 5  ;;  %v7833_v13 = vld [vmem:[#allocation45_spill] sm:$0xff] }
 0x211   : > { %v6203_v7 = vpop.xlane.xlu0 %1319  ;;  %v2861_v30 = vrot.slane %v2556_v37, %v7773_v8  ;;  %v2542_v35 = vmul.f32 %v2480_v42, %v5863_v62  ;;  %v7812_v42 = vld [vmem:[#allocation24_spill] sm:$0xff] }
 0x212   : > { %7783 = vst [vmem:[#allocation6_spill] sm:$0xff] %v6203_v7  ;;  %v6205_v46 = vpop.xlane.xlu1 %1358  ;;  %2757 = vbcast.lane.b32.xlu1 %v2751_v48, 264  ;;  %2753 = vbcast.lane.b32.xlu0 %v2751_v48, 256  ;;  %v7832_v7 = vld [vmem:[#allocation44_spill] sm:$0xff] }
 0x213   : > { %7784 = vst [vmem:[#allocation8_spill] sm:$0xff] %v6205_v46  ;;  %v2707_v37 = vrot.slane %v2542_v35, %v7773_v8  ;;  %v2474_v35 = vrot.slane %v6136_v11, 6  ;;  %v7830_v46 = vld [vmem:[#allocation43_spill] sm:$0xff] }
 0x215   : > { %v6210_v38 = vpop.xlane.xlu0 %1361 }
 0x216   : > { %7786 = vst [vmem:[#allocation9_spill] sm:$0xff] %v6210_v38  ;;  %v6212_v60 = vpop.xlane.xlu1 %1364  ;;  %2834 = vbcast.lane.b32.xlu1 %v2828_v54, 264  ;;  %2830 = vbcast.lane.b32.xlu0 %v2828_v54, 256  ;;  %v7829_v38 = vld [vmem:[#allocation41_spill] sm:$0xff] }
 0x217   : > { %7787 = vst [vmem:[#allocation87_spill] sm:$0xff] %v6212_v60 }
 0x219   : > { %v6217_v57 = vpop.xlane.xlu0 %1367 }
 0x21a   : > { %7789 = vst [vmem:[#allocation89_spill] sm:$0xff] %v6217_v57  ;;  %v6219_v48 = vpop.xlane.xlu1 %1232  ;;  %2845 = vbcast.lane.b32.xlu1 %v2839_v22, 264  ;;  %2841 = vbcast.lane.b32.xlu0 %v2839_v22, 256 }
 0x21b   : > { %7790 = vst [vmem:[#allocation92_spill] sm:$0xff] %v6219_v48 }
 0x21d   : > { %v6224_v49 = vpop.xlane.xlu0 %1235 }
 0x21e   : > { %7792 = vst [vmem:[#allocation91_spill] sm:$0xff] %v6224_v49  ;;  %v6226_v54 = vpop.xlane.xlu1 %1280  ;;  %2603 = vbcast.lane.b32.xlu1 %v2597_v10, 264  ;;  %2599 = vbcast.lane.b32.xlu0 %v2597_v10, 256 }
 0x21f   : > { %7793 = vst [vmem:[#allocation94_spill] sm:$0xff] %v6226_v54 }
 0x221   : > { %v6231_v2 = vpop.xlane.xlu0 %1283 }
 0x222   : > { %7794 = vst [vmem:[#allocation93_spill] sm:$0xff] %v6231_v2  ;;  %v6233_v22 = vpop.xlane.xlu1 %1322  ;;  %2691 = vbcast.lane.b32.xlu1 %v2685_v26, 264  ;;  %2687 = vbcast.lane.b32.xlu0 %v2685_v26, 256  ;;  %v7823_v2 = vld [vmem:[#allocation33_spill] sm:$0xff] }
 0x223   : > { %7795 = vst [vmem:[#allocation96_spill] sm:$0xff] %v6233_v22 }
 0x225   : > { %v6238_v54 = vpop.xlane.xlu0 %1325 }
 0x226   : > { %7796 = vst [vmem:[#allocation95_spill] sm:$0xff] %v6238_v54  ;;  %v6240_v10 = vpop.xlane.xlu1 %1370  ;;  %2768 = vbcast.lane.b32.xlu1 %v2762_v15, 264  ;;  %2764 = vbcast.lane.b32.xlu0 %v2762_v15, 256 }
 0x227   : > { %7797 = vst [vmem:[#allocation21_spill] sm:$0xff] %v6240_v10 }
 0x229   : > { %v6245_v22 = vpop.xlane.xlu0 %1373 }
 0x22a   : > { %7798 = vst [vmem:[#allocation7_spill] sm:$0xff] %v6245_v22  ;;  %v6247_v26 = vpop.xlane.xlu1 %1238  ;;  %2856 = vbcast.lane.b32.xlu1 %v2850_v43, 264  ;;  %2852 = vbcast.lane.b32.xlu0 %v2850_v43, 256 }
 0x22b   : > { %7799 = vst [vmem:[#allocation22_spill] sm:$0xff] %v6247_v26 }
 0x22d   : > { %v6252_v10 = vpop.xlane.xlu0 %1241 }
 0x22e   : > { %7800 = vst [vmem:[#allocation10_spill] sm:$0xff] %v6252_v10  ;;  %v6254_v15 = vpop.xlane.xlu1 %1286  ;;  %2614 = vbcast.lane.b32.xlu1 %v2608_v36, 264  ;;  %2610 = vbcast.lane.b32.xlu0 %v2608_v36, 256  ;;  %v7816_v10 = vld [vmem:[#allocation28_spill] sm:$0xff] }
 0x22f   : > { %7801 = vst [vmem:[#allocation27_spill] sm:$0xff] %v6254_v15  ;;  %v6321_v3 = vmul.f32 %v7816_v10, %v7816_v10 }
 0x231   : > { %v6259_v26 = vpop.xlane.xlu0 %1289 }
 0x232   : > { %7802 = vst [vmem:[#allocation37_spill] sm:$0xff] %v6259_v26  ;;  %v6261_v43 = vpop.xlane.xlu1 %1328  ;;  %2702 = vbcast.lane.b32.xlu1 %v2696_v16, 264  ;;  %2698 = vbcast.lane.b32.xlu0 %v2696_v16, 256 }
 0x233   : > { %7803 = vst [vmem:[#allocation11_spill] sm:$0xff] %v6261_v43 }
 0x235   : > { %v6266_v15 = vpop.xlane.xlu0 %1331 }
 0x236   : > { %7804 = vst [vmem:[#allocation12_spill] sm:$0xff] %v6266_v15  ;;  %v6268_v36 = vpop.xlane.xlu1 %1376  ;;  %2779 = vbcast.lane.b32.xlu1 %v2773_v25, 264  ;;  %2775 = vbcast.lane.b32.xlu0 %v2773_v25, 256  ;;  %v7815_v15 = vld [vmem:[#allocation26_spill] sm:$0xff] }
 0x237   : > { %7805 = vst [vmem:[#allocation42_spill] sm:$0xff] %v6268_v36  ;;  %v6317_v26 = vmul.f32 %v7815_v15, %v7815_v15  ;;  %v7821_v15 = vld [vmem:[#allocation32_spill] sm:$0xff] }
 0x238   : > { %v6339_v54 = vmul.f32 %v7821_v15, %v7821_v15  ;;  %v7826_v15 = vld [vmem:[#allocation38_spill] sm:$0xff] }
 0x239   : > { %v6273_v43 = vpop.xlane.xlu0 %1379  ;;  %v6358_v57 = vmul.f32 %v7826_v15, %v7826_v15  ;;  %v6376_v15 = vmul.f32 %v7830_v46, %v7830_v46  ;;  %v7840_v46 = vld [vmem:[#allocation48_spill] sm:$0xff] }
 0x23a   : > { %7806 = vst [vmem:[#allocation13_spill] sm:$0xff] %v6273_v43  ;;  %v6275_v16 = vpop.xlane.xlu1 %1244  ;;  %2867 = vbcast.lane.b32.xlu1 %v2861_v30, 264  ;;  %2863 = vbcast.lane.b32.xlu0 %v2861_v30, 256  ;;  %v6292_v30 = vld [vmem:[%s7457_s2] sm:$0xff]  ;;  %v7814_v43 = vld [vmem:[#allocation25_spill] sm:$0xff] }
 0x23b   : > { %7807 = vst [vmem:[#allocation14_spill] sm:$0xff] %v6275_v16  ;;  %7831 = vst [vmem:[#allocation25_spill] sm:$0xff] %v6376_v15  ;;  %v6398_v15 = vmul.f32 %v7840_v46, %v7840_v46  ;;  %v7849_v46 = vld [vmem:[#allocation53_spill] sm:$0xff] }
 0x23d   : > { %v6280_v36 = vpop.xlane.xlu0 %1247 }
 0x23e   : > { %7808 = vst [vmem:[#allocation15_spill] sm:$0xff] %v6280_v36  ;;  %v6282_v25 = vpop.xlane.xlu1 %1292  ;;  %2625 = vbcast.lane.b32.xlu1 %v2619_v61, 264  ;;  %2621 = vbcast.lane.b32.xlu0 %v2619_v61, 256  ;;  %v6299_v61 = vrot.slane %v6292_v30, %v7812_v42  ;;  %v6313_v42 = vmul.f32 %v7814_v43, %v7814_v43  ;;  %v7820_v43 = vld [vmem:[#allocation31_spill] sm:$0xff] }
 0x23f   : > { %7809 = vst [vmem:[#allocation16_spill] sm:$0xff] %v6282_v25  ;;  %v6335_v36 = vmul.f32 %v7820_v43, %v7820_v43  ;;  %v7825_v43 = vld [vmem:[#allocation36_spill] sm:$0xff]  ;;  %7841 = vst [vmem:[#allocation31_spill] sm:$0xff] %v6398_v15  ;;  %v6417_v15 = vmul.f32 %v7849_v46, %v7849_v46 }
 0x240   : > { %v6354_v48 = vmul.f32 %v7825_v43, %v7825_v43  ;;  %v6372_v43 = vmul.f32 %v7829_v38, %v7829_v38  ;;  %v7838_v38 = vld [vmem:[#allocation47_spill] sm:$0xff] }
 0x241   : > { %v6287_v16 = vpop.xlane.xlu0 %1295  ;;  %7850 = vst [vmem:[#allocation38_spill] sm:$0xff] %v6417_v15  ;;  %v7859_v15 = vld [vmem:[#allocation59_spill] sm:$0xff] }
 0x242   : > { %7810 = vst [vmem:[#allocation97_spill] sm:$0xff] %v6287_v16  ;;  %v6294_v62 = vpop.xlane.xlu1 %1334  ;;  %2713 = vbcast.lane.b32.xlu1 %v2707_v37, 264  ;;  %2709 = vbcast.lane.b32.xlu0 %v2707_v37, 256  ;;  %v7813_v16 = vld [vmem:[#allocation23_spill] sm:$0xff]  ;;  %v2557_v37 = vmul.f32 %v2493_v1, %v5901_v9  ;;  %v7819_v9 = vld [vmem:[#allocation30_spill] sm:$0xff] }
 0x243   : > { %7811 = vst [vmem:[#allocation98_spill] sm:$0xff] %v6294_v62  ;;  %v6306_v25 = vmul.f32 %v7813_v16, %v7813_v16  ;;  %v2784_v62 = vrot.slane %v2549_v40, %v7773_v8  ;;  %v7817_v16 = vld [vmem:[#allocation29_spill] sm:$0xff]  ;;  %v6331_v1 = vmul.f32 %v7819_v9, %v7819_v9  ;;  %v7824_v9 = vld [vmem:[#allocation35_spill] sm:$0xff] }
 0x244   : > { %v6325_v22 = vmul.f32 %v7817_v16, %v7817_v16  ;;  %v6350_v49 = vmul.f32 %v7824_v9, %v7824_v9  ;;  %v7828_v16 = vld [vmem:[#allocation40_spill] sm:$0xff]  ;;  %v2872_v60 = vrot.slane %v2557_v37, %v7773_v8  ;;  %v2535_v9 = vmul.f32 %v2474_v35, %v5923_v47  ;;  %v7836_v37 = vld [vmem:[#allocation46_spill] sm:$0xff] }
 0x245   : > { %v6327_v40 = vpop.xlane.xlu0 %1337  ;;  %v6390_v47 = vmul.f32 %v7836_v37, %v7836_v37  ;;  %v6394_v35 = vmul.f32 %v7838_v38, %v7838_v38  ;;  %v7845_v37 = vld [vmem:[#allocation51_spill] sm:$0xff]  ;;  %v7847_v38 = vld [vmem:[#allocation52_spill] sm:$0xff] }
 0x246   : > { %7818 = vst [vmem:[#allocation24_spill] sm:$0xff] %v6327_v40  ;;  %v6341_v10 = vpop.xlane.xlu1 %1382  ;;  %2790 = vbcast.lane.b32.xlu1 %v2784_v62, 264  ;;  %2786 = vbcast.lane.b32.xlu0 %v2784_v62, 256  ;;  %v6346_v40 = vmul.f32 %v7823_v2, %v7823_v2  ;;  %v6366_v2 = vmul.f32 %v7828_v16, %v7828_v16 }
 0x247   : > { %7822 = vst [vmem:[#allocation23_spill] sm:$0xff] %v6341_v10  ;;  %v7827_v10 = vld [vmem:[#allocation39_spill] sm:$0xff]  ;;  %v6384_v16 = vmul.f32 %v7833_v13, %v7833_v13  ;;  %7837 = vst [vmem:[#allocation29_spill] sm:$0xff] %v6390_v47  ;;  %v6409_v47 = vmul.f32 %v7845_v37, %v7845_v37  ;;  %v2543_v37 = vmul.f32 %v2481_v28, %v5945_v56  ;;  %v7866_v28 = vld [vmem:[#allocation62_spill] sm:$0xff] }
 0x248   : > { %v6362_v62 = vmul.f32 %v7827_v10, %v7827_v10  ;;  %v6380_v10 = vmul.f32 %v7832_v7, %v7832_v7  ;;  %7839 = vst [vmem:[#allocation30_spill] sm:$0xff] %v6394_v35  ;;  %v6413_v35 = vmul.f32 %v7847_v38, %v7847_v38  ;;  %v7853_v13 = vld [vmem:[#allocation55_spill] sm:$0xff] }
 0x249   : > { %7834 = vst [vmem:[#allocation26_spill] sm:$0xff] %v6384_v16  ;;  %v6386_v50 = vpop.xlane.xlu0 %1385  ;;  %v7843_v16 = vld [vmem:[#allocation50_spill] sm:$0xff]  ;;  %7846 = vst [vmem:[#allocation35_spill] sm:$0xff] %v6409_v47  ;;  %v7855_v47 = vld [vmem:[#allocation56_spill] sm:$0xff] }
 0x24a   : > { %7835 = vst [vmem:[#allocation28_spill] sm:$0xff] %v6386_v50  ;;  %v6400_v7 = vpop.xlane.xlu1 %1250  ;;  %2878 = vbcast.lane.b32.xlu1 %v2872_v60, 264  ;;  %2874 = vbcast.lane.b32.xlu0 %v2872_v60, 256  ;;  %v6405_v50 = vmul.f32 %v7843_v16, %v7843_v16  ;;  %7848 = vst [vmem:[#allocation36_spill] sm:$0xff] %v6413_v35  ;;  %v6425_v16 = vmul.f32 %v7853_v13, %v7853_v13  ;;  %v7857_v35 = vld [vmem:[#allocation57_spill] sm:$0xff] }
 0x24b   : > { %7842 = vst [vmem:[#allocation32_spill] sm:$0xff] %v6400_v7  ;;  %v7851_v7 = vld [vmem:[#allocation54_spill] sm:$0xff]  ;;  %v6431_v38 = vmul.f32 %v7855_v47, %v7855_v47  ;;  %v6435_v46 = vmul.f32 %v7857_v35, %v7857_v35  ;;  %v6453_v47 = vmul.f32 %v7866_v28, %v7866_v28  ;;  %v7868_v35 = vld [vmem:[#allocation63_spill] sm:$0xff] }
 0x24c   : > { %7844 = vst [vmem:[#allocation33_spill] sm:$0xff] %v6405_v50  ;;  %v6421_v60 = vmul.f32 %v7851_v7, %v7851_v7  ;;  %7854 = vst [vmem:[#allocation40_spill] sm:$0xff] %v6425_v16  ;;  %v2630_v50 = vrot.slane %v2535_v9, %v7773_v8  ;;  %v6439_v7 = vmul.f32 %v7859_v15, %v7859_v15  ;;  %v7864_v9 = vld [vmem:[#allocation61_spill] sm:$0xff]  ;;  %v7875_v28 = vld [vmem:[#allocation66_spill] sm:$0xff] }
 0x24d   : > { %7856 = vst [vmem:[#allocation41_spill] sm:$0xff] %v6431_v38  ;;  %7858 = vst [vmem:[#allocation43_spill] sm:$0xff] %v6435_v46  ;;  %v6445_v16 = vpop.xlane.xlu0 %1253  ;;  %v6449_v56 = vmul.f32 %v7864_v9, %v7864_v9  ;;  %v6457_v46 = vmul.f32 %v7868_v35, %v7868_v35  ;;  %v7873_v9 = vld [vmem:[#allocation65_spill] sm:$0xff]  ;;  %v7877_v35 = vld [vmem:[#allocation68_spill] sm:$0xff] }
 0x24e   : > { %7852 = vst [vmem:[#allocation39_spill] sm:$0xff] %v6421_v60  ;;  %7860 = vst [vmem:[#allocation44_spill] sm:$0xff] %v6439_v7  ;;  %v7861_v60 = vld [vmem:[#allocation60_spill] sm:$0xff]  ;;  %v6459_v15 = vpop.xlane.xlu1 %1298  ;;  %2636 = vbcast.lane.b32.xlu1 %v2630_v50, 264  ;;  %2632 = vbcast.lane.b32.xlu0 %v2630_v50, 256  ;;  %v7881_v7 = vld [vmem:[#allocation70_spill] sm:$0xff] }
 0x24f   : > { %v6443_v13 = vmul.f32 %v7861_v60, %v7861_v60  ;;  %7863 = vst [vmem:[#allocation46_spill] sm:$0xff] %v6445_v16  ;;  %7865 = vst [vmem:[#allocation47_spill] sm:$0xff] %v6449_v56  ;;  %v2488_v60 = vrot.slane %v6179_v14, 6  ;;  %v6468_v56 = vmul.f32 %v7873_v9, %v7873_v9  ;;  %v7883_v9 = vrot.slane %v6179_v14, 5  ;;  %v7892_v38 = vld [vmem:[#allocation75_spill] sm:$0xff] }
 0x250   : > { %7867 = vst [vmem:[#allocation48_spill] sm:$0xff] %v6453_v47  ;;  %7869 = vst [vmem:[#allocation50_spill] sm:$0xff] %v6457_v46  ;;  %v6472_v47 = vmul.f32 %v7875_v28, %v7875_v28  ;;  %v6476_v46 = vmul.f32 %v7877_v35, %v7877_v35  ;;  %v7884_v28 = vld [vmem:[#allocation71_spill] sm:$0xff]  ;;  %v7885_v35 = vld [vmem:[#allocation72_spill] sm:$0xff] }
 0x251   : > { %7862 = vst [vmem:[#allocation45_spill] sm:$0xff] %v6443_v13  ;;  %7870 = vst [vmem:[#allocation51_spill] sm:$0xff] %v6459_v15  ;;  %v7871_v13 = vld [vmem:[#allocation64_spill] sm:$0xff]  ;;  %v7879_v15 = vld [vmem:[#allocation69_spill] sm:$0xff] }
 0x252   : > { %v6464_v16 = vmul.f32 %v7871_v13, %v7871_v13  ;;  %7874 = vst [vmem:[#allocation53_spill] sm:$0xff] %v6468_v56  ;;  %7876 = vst [vmem:[#allocation54_spill] sm:$0xff] %v6472_v47  ;;  %v6480_v50 = vmul.f32 %v7879_v15, %v7879_v15  ;;  %v6484_v13 = vmul.f32 %v7881_v7, %v7881_v7  ;;  %v7887_v15 = vld [vmem:[#allocation73_spill] sm:$0xff]  ;;  %v7889_v7 = vld [vmem:[#allocation74_spill] sm:$0xff] }
 0x253   : > { %7878 = vst [vmem:[#allocation55_spill] sm:$0xff] %v6476_v46  ;;  %v2550_v56 = vmul.f32 %v7883_v9, %v5970_v6  ;;  %v6492_v47 = vmul.f32 %v7884_v28, %v7884_v28  ;;  %v6496_v46 = vmul.f32 %v7885_v35, %v7885_v35  ;;  %v6510_v6 = vmul.f32 %v7892_v38, %v7892_v38  ;;  %v7894_v9 = vld [vmem:[#allocation77_spill] sm:$0xff]  ;;  %v7900_v38 = vld [vmem:[#allocation80_spill] sm:$0xff] }
 0x254   : > { %7872 = vst [vmem:[#allocation52_spill] sm:$0xff] %v6464_v16  ;;  %7880 = vst [vmem:[#allocation56_spill] sm:$0xff] %v6480_v50  ;;  %v2718_v16 = vrot.slane %v2543_v37, %v7773_v8  ;;  %v6500_v50 = vmul.f32 %v7887_v15, %v7887_v15  ;;  %v6506_v37 = vpop.xlane.xlu0 %1301  ;;  %v6514_v28 = vmul.f32 %v7894_v9, %v7894_v9  ;;  %v6520_v15 = vpop.xlane.xlu1 %1340  ;;  %v7902_v9 = vld [vmem:[#allocation81_spill] sm:$0xff] }
 0x255   : > { %7882 = vst [vmem:[#allocation57_spill] sm:$0xff] %v6484_v13  ;;  %7886 = vst [vmem:[#allocation59_spill] sm:$0xff] %v6496_v46  ;;  %v6504_v13 = vmul.f32 %v7889_v7, %v7889_v7  ;;  %v6518_v35 = vmul.f32 %v7731_v41, %v7731_v41  ;;  %v2495_v7 = vrot.slane %v6196_v58, 6  ;;  %v7904_v41 = vld [vmem:[#allocation82_spill] sm:$0xff] }
 0x256   : > { %7888 = vst [vmem:[#allocation60_spill] sm:$0xff] %v6500_v50  ;;  %7891 = vst [vmem:[#allocation62_spill] sm:$0xff] %v6506_v37  ;;  %2724 = vbcast.lane.b32.xlu1 %v2718_v16, 264  ;;  %2720 = vbcast.lane.b32.xlu0 %v2718_v16, 256  ;;  %v2795_v16 = vrot.slane %v2550_v56, %v7773_v8  ;;  %v6559_v56 = vmul.f32 %v7752_v5, %v7752_v5 }
 0x257   : > { %7890 = vst [vmem:[#allocation61_spill] sm:$0xff] %v6504_v13  ;;  %7893 = vst [vmem:[#allocation63_spill] sm:$0xff] %v6510_v6  ;;  %v7898_v13 = vld [vmem:[#allocation79_spill] sm:$0xff]  ;;  %v6529_v6 = vmul.f32 %v7900_v38, %v7900_v38  ;;  %v7908_v38 = vld [vmem:[#allocation17_spill] sm:$0xff] }
 0x258   : > { %7895 = vst [vmem:[#allocation64_spill] sm:$0xff] %v6514_v28  ;;  %7896 = vst [vmem:[#allocation65_spill] sm:$0xff] %v6518_v35  ;;  %v6525_v37 = vmul.f32 %v7898_v13, %v7898_v13  ;;  %v6533_v28 = vmul.f32 %v7902_v9, %v7902_v9  ;;  %v6537_v35 = vmul.f32 %v7904_v41, %v7904_v41  ;;  %v7907_v13 = vld [vmem:[#allocation84_spill] sm:$0xff]  ;;  %v6551_v9 = vpop.xlane.xlu0 %1343  ;;  %v6577_v5 = vpop.xlane.xlu1 %1388 }
 0x259   : > { %7897 = vst [vmem:[#allocation66_spill] sm:$0xff] %v6520_v15  ;;  %7901 = vst [vmem:[#allocation69_spill] sm:$0xff] %v6529_v6  ;;  %v7905_v15 = vld [vmem:[#allocation83_spill] sm:$0xff]  ;;  %v7909_v6 = vrot.slane %v6196_v58, 5 }
 0x25a   : > { %7899 = vst [vmem:[#allocation68_spill] sm:$0xff] %v6525_v37  ;;  %7903 = vst [vmem:[#allocation70_spill] sm:$0xff] %v6533_v28  ;;  %v6542_v50 = vmul.f32 %v7905_v15, %v7905_v15  ;;  %v6546_v37 = vmul.f32 %v7907_v13, %v7907_v13  ;;  %v7910_v28 = vld [vmem:[#allocation86_spill] sm:$0xff]  ;;  %v7912_v15 = vld [vmem:[#allocation88_spill] sm:$0xff]  ;;  %v6567_v13 = vmul.f32 %v7761_v17, %v7761_v17  ;;  %2801 = vbcast.lane.b32.xlu1 %v2795_v16, 264 }
 0x25b   : > { %v2558_v46 = vmul.f32 %v7909_v6, %v7908_v38  ;;  %v6555_v41 = vmul.f32 %v7910_v28, %v7910_v28  ;;  %7911 = vst [vmem:[#allocation72_spill] sm:$0xff] %v6559_v56  ;;  %v6571_v6 = vrot.slane %v6292_v30, %v7773_v8  ;;  %v1469_v28 = vsub.f32 %v6143_v39, %v6306_v25  ;;  %v7917_v56 = vld [vmem:[#allocation90_spill] sm:$0xff] }
 0x25c   : > { %7906 = vst [vmem:[#allocation71_spill] sm:$0xff] %v6542_v50  ;;  %v6563_v50 = vmul.f32 %v7912_v15, %v7912_v15  ;;  %7914 = vst [vmem:[#allocation74_spill] sm:$0xff] %v6567_v13  ;;  %v1471_v38 = vsub.f32 %v6146_v12, %v6313_v42  ;;  %2797 = vbcast.lane.b32.xlu0 %v2795_v16, 256  ;;  %v2489_v15 = vrot.slane %v6179_v14, 7  ;;  %v7916_v17 = vrot.slane %v6136_v11, 7  ;;  %v7921_v42 = vld [vmem:[#allocation19_spill] sm:$0xff] }
 0x25d   : > { %v6585_v30 = vmul.f32 %v7917_v56, %v7917_v56  ;;  %v6589_v39 = vmul.f32 %v7764_v52, %v7764_v52  ;;  %v6593_v12 = vmul.f32 %v7762_v24, %v7762_v24  ;;  %v1470_v25 = vsub.f32 %v6151_v20, %v6317_v26  ;;  %v6605_v56 = vpop.xlane.xlu0 %1391 }
 0x25e   : > { %7913 = vst [vmem:[#allocation73_spill] sm:$0xff] %v6563_v50  ;;  %v7915_v50 = vld [vmem:[#allocation18_spill] sm:$0xff]  ;;  %v2883_v14 = vrot.slane %v2558_v46, %v7773_v8  ;;  %v7922_v11 = vrot.slane %v6149_v45, 7  ;;  %v6603_v16 = vmul.f32 %v7766_v51, %v7766_v51  ;;  %v2551_v52 = vmul.f32 %v2488_v60, %v6063_v4  ;;  %v6624_v4 = vpop.xlane.xlu1 %1256 }
 0x25f   : > { %v2536_v13 = vmul.f32 %v7916_v17, %v7915_v50  ;;  %7918 = vst [vmem:[#allocation75_spill] sm:$0xff] %v6585_v30  ;;  %7919 = vst [vmem:[#allocation77_spill] sm:$0xff] %v6589_v39  ;;  %v6610_v24 = vmul.f32 %v7765_v59, %v7765_v59  ;;  %v6614_v20 = vmul.f32 %v7768_v44, %v7768_v44  ;;  %v2496_v59 = vrot.slane %v6196_v58, 7 }
 0x260   : > { %7920 = vst [vmem:[#allocation79_spill] sm:$0xff] %v6593_v12  ;;  %v2544_v50 = vmul.f32 %v7922_v11, %v7921_v42  ;;  %7923 = vst [vmem:[#allocation80_spill] sm:$0xff] %v6603_v16  ;;  %v6618_v45 = vmul.f32 %v7767_v23, %v7767_v23  ;;  %v1537_v26 = vmul.f32 %v6571_v6, %v1469_v28  ;;  %2889 = vbcast.lane.b32.xlu1 %v2883_v14, 264 }
 0x261   : > { %7924 = vst [vmem:[#allocation81_spill] sm:$0xff] %v6610_v24  ;;  %7925 = vst [vmem:[#allocation82_spill] sm:$0xff] %v6614_v20  ;;  %v1539_v51 = vmul.f32 %v6571_v6, %v1471_v38  ;;  %v1472_v46 = vsub.f32 %v6155_v27, %v6321_v3  ;;  %2885 = vbcast.lane.b32.xlu0 %v2883_v14, 256  ;;  %v1485_v44 = vsub.f32 %v6157_v0, %v6325_v22  ;;  %v7962_v20 = vld [vmem:[#allocation7_spill] sm:$0xff] }
 0x262   : > { %7926 = vst [vmem:[#allocation83_spill] sm:$0xff] %v6618_v45  ;;  %v1486_v23 = vsub.f32 %v6162_v21, %v6331_v1  ;;  %v2641_v60 = vrot.slane %v2536_v13, %v7773_v8  ;;  %v2559_v28 = vmul.f32 %v2495_v7, %v6076_v18  ;;  %v1538_v38 = vmul.f32 %v6571_v6, %v1470_v25  ;;  %v6642_v21 = vpop.xlane.xlu0 %1259  ;;  %v6647_v7 = vpop.xlane.xlu1 %1304  ;;  %v7960_v45 = vld [vmem:[#allocation21_spill] sm:$0xff]  ;;  %v7969_v24 = vld [vmem:[#allocation27_spill] sm:$0xff] }
 0x263   : > { %v1487_v27 = vsub.f32 %v6164_v34, %v6335_v36  ;;  %v2729_v3 = vrot.slane %v2544_v50, %v7773_v8  ;;  %v2552_v17 = vmul.f32 %v2489_v15, %v6093_v31  ;;  %v1488_v58 = vsub.f32 %v6169_v33, %v6339_v54  ;;  %7927 = vst [vmem:[#allocation84_spill] sm:$0xff] %v6647_v7  ;;  %v7952_v50 = vld [vmem:[#allocation93_spill] sm:$0xff] }
 0x264   : > { %v1473_v0 = vsub.f32 %v6171_v63, %v6346_v40  ;;  %v2806_v22 = vrot.slane %v2551_v52, %v7773_v8  ;;  %v2560_v18 = vmul.f32 %v2496_v59, %v6108_v32  ;;  %v1540_v1 = vmul.f32 %v6571_v6, %v1472_v46  ;;  %2647 = vbcast.lane.b32.xlu1 %v2641_v60, 264  ;;  %v7955_v59 = vld [vmem:[#allocation96_spill] sm:$0xff] }
 0x265   : > { %2643 = vbcast.lane.b32.xlu0 %v2641_v60, 256  ;;  %v6650_v31 = vadd.f32 %v6299_v61, %v1537_v26  ;;  %v6653_v34 = vadd.f32 %v6299_v61, %v1539_v51  ;;  %v1553_v33 = vmul.f32 %v6571_v6, %v1485_v44  ;;  %v1554_v63 = vmul.f32 %v6571_v6, %v1486_v23  ;;  %v7931_v51 = vld [vmem:[#allocation5_spill] sm:$0xff] }
 0x266   : > { %v1474_v54 = vsub.f32 %v6176_v19, %v6350_v49  ;;  %v2894_v32 = vrot.slane %v2559_v28, %v7773_v8  ;;  %v1555_v36 = vmul.f32 %v6571_v6, %v1487_v27  ;;  %v1489_v40 = vsub.f32 %v6181_v53, %v6354_v48  ;;  %v6673_v19 = vpop.xlane.xlu0 %1307  ;;  %v6680_v48 = vpop.xlane.xlu1 %1346  ;;  %v7932_v60 = vld [vmem:[#allocation25_spill] sm:$0xff] }
 0x267   : > { %v6664_v13 = vrot.slane %v2552_v17, %v7773_v8  ;;  %v6667_v15 = vadd.f32 %v6299_v61, %v1538_v38  ;;  %v1556_v25 = vmul.f32 %v6571_v6, %v1488_v58  ;;  %v1541_v14 = vmul.f32 %v6571_v6, %v1473_v0  ;;  %7928 = vst [vmem:[#allocation17_spill] sm:$0xff] %v6673_v19  ;;  %v7935_v17 = vld [vmem:[#allocation8_spill] sm:$0xff]  ;;  %v7936_v0 = vld [vmem:[#allocation26_spill] sm:$0xff] }
 0x268   : > { %v1490_v49 = vsub.f32 %v6186_v55, %v6358_v57  ;;  %v6676_v42 = vrot.slane %v2560_v18, %v7773_v8  ;;  %v1501_v53 = vsub.f32 %v6188_v29, %v6362_v62  ;;  %7929 = vst [vmem:[#allocation86_spill] sm:$0xff] %v6680_v48  ;;  %2735 = vbcast.lane.b32.xlu1 %v2729_v3, 264  ;;  %v7930_v55 = vld [vmem:[#allocation4_spill] sm:$0xff]  ;;  %v7937_v18 = vld [vmem:[#allocation9_spill] sm:$0xff] }
 0x269   : > { %2731 = vbcast.lane.b32.xlu0 %v2729_v3, 256  ;;  %v6685_v52 = vadd.f32 %v6299_v61, %v1540_v1  ;;  %v1542_v57 = vmul.f32 %v6571_v6, %v1474_v54  ;;  %v1502_v8 = vsub.f32 %v7930_v55, %v6366_v2  ;;  %v6691_v26 = vadd.f32 %v6299_v61, %v1553_v33  ;;  %v7933_v2 = vld [vmem:[#allocation6_spill] sm:$0xff]  ;;  %v7948_v55 = vld [vmem:[#allocation91_spill] sm:$0xff] }
 0x26a   : > { %v6694_v29 = vadd.f32 %v6299_v61, %v1554_v63  ;;  %v1557_v62 = vmul.f32 %v6571_v6, %v1489_v40  ;;  %v1503_v46 = vsub.f32 %v7931_v51, %v6372_v43  ;;  %v6701_v44 = vadd.f32 %v6299_v61, %v1555_v36  ;;  %v6706_v38 = vpop.xlane.xlu0 %1349  ;;  %v6719_v33 = vpop.xlane.xlu1 %1394  ;;  %v7949_v36 = vld [vmem:[#allocation35_spill] sm:$0xff] }
 0x26b   : > { %v1558_v23 = vmul.f32 %v6571_v6, %v1490_v49  ;;  %v1504_v28 = vsub.f32 %v7933_v2, %v7932_v60  ;;  %7934 = vst [vmem:[#allocation88_spill] sm:$0xff] %v6706_v38  ;;  %v6709_v27 = vadd.f32 %v6299_v61, %v1541_v14  ;;  %v6712_v3 = vadd.f32 %v6299_v61, %v1556_v25  ;;  %v7939_v14 = vld [vmem:[#allocation29_spill] sm:$0xff]  ;;  %v7940_v49 = vld [vmem:[#allocation87_spill] sm:$0xff] }
 0x26c   : > { %v1569_v43 = vmul.f32 %v6571_v6, %v1501_v53  ;;  %v1517_v58 = vsub.f32 %v7935_v17, %v6380_v10  ;;  %v1518_v1 = vsub.f32 %v7937_v18, %v7936_v0  ;;  %7938 = vst [vmem:[#allocation18_spill] sm:$0xff] %v6719_v33  ;;  %2812 = vbcast.lane.b32.xlu1 %v2806_v22, 264  ;;  %v7942_v60 = vld [vmem:[#allocation89_spill] sm:$0xff] }
 0x26d   : > { %2808 = vbcast.lane.b32.xlu0 %v2806_v22, 256  ;;  %v1570_v54 = vmul.f32 %v6571_v6, %v1502_v8  ;;  %v6726_v25 = vadd.f32 %v6299_v61, %v1542_v57  ;;  %v1571_v10 = vmul.f32 %v6571_v6, %v1503_v46  ;;  %v1519_v53 = vsub.f32 %v7940_v49, %v7939_v14  ;;  %v7941_v8 = vld [vmem:[#allocation30_spill] sm:$0xff]  ;;  %v7945_v49 = vld [vmem:[#allocation31_spill] sm:$0xff]  ;;  %v7947_v57 = vld [vmem:[#allocation33_spill] sm:$0xff] }
 0x26e   : > { %v6733_v22 = vadd.f32 %v6299_v61, %v1557_v62  ;;  %v1572_v51 = vmul.f32 %v6571_v6, %v1504_v28  ;;  %v1520_v2 = vsub.f32 %v7942_v60, %v7941_v8  ;;  %v6738_v17 = vpop.xlane.xlu0 %1397  ;;  %v6742_v0 = vadd.f32 %v6299_v61, %v1558_v23  ;;  %v6746_v14 = vpop.xlane.xlu1 %1352  ;;  %v7946_v8 = vld [vmem:[#allocation92_spill] sm:$0xff] }
 0x26f   : > { %7943 = vst [vmem:[#allocation90_spill] sm:$0xff] %v6738_v17  ;;  %v1585_v46 = vmul.f32 %v6571_v6, %v1517_v58  ;;  %v1586_v18 = vmul.f32 %v6571_v6, %v1518_v1  ;;  %7944 = vst [vmem:[#allocation19_spill] sm:$0xff] %v6746_v14  ;;  %v6750_v28 = vadd.f32 %v6299_v61, %v1569_v43  ;;  %v7970_v14 = vld [vmem:[#allocation47_spill] sm:$0xff] }
 0x270   : > { %2900 = vbcast.lane.b32.xlu1 %v2894_v32, 264  ;;  %v1475_v60 = vsub.f32 %v7946_v8, %v7945_v49  ;;  %v1476_v23 = vsub.f32 %v7948_v55, %v7947_v57  ;;  %v6758_v58 = vadd.f32 %v6299_v61, %v1570_v54  ;;  %v1587_v1 = vmul.f32 %v6571_v6, %v1519_v53  ;;  %v7951_v8 = vld [vmem:[#allocation36_spill] sm:$0xff]  ;;  %v7954_v53 = vld [vmem:[#allocation38_spill] sm:$0xff]  ;;  %v7957_v54 = vld [vmem:[#allocation39_spill] sm:$0xff] }
 0x271   : > { %2896 = vbcast.lane.b32.xlu0 %v2894_v32, 256  ;;  %v7950_v32 = vld [vmem:[#allocation94_spill] sm:$0xff]  ;;  %v6765_v43 = vadd.f32 %v6299_v61, %v1571_v10  ;;  %v1588_v49 = vmul.f32 %v6571_v6, %v1520_v2  ;;  %v1492_v55 = vsub.f32 %v7952_v50, %v7951_v8  ;;  %v6774_v40 = vadd.f32 %v6299_v61, %v1572_v51 }
 0x272   : > { %v1491_v63 = vsub.f32 %v7950_v32, %v7949_v36  ;;  %v6770_v57 = vpop.xlane.xlu0 %1355  ;;  %v1505_v36 = vsub.f32 %v7955_v59, %v7954_v53  ;;  %v6778_v32 = vpop.xlane.xlu1 %1400  ;;  %v6784_v50 = vadd.f32 %v6299_v61, %v1585_v46  ;;  %v6787_v2 = vadd.f32 %v6299_v61, %v1586_v18  ;;  %v7958_v59 = vld [vmem:[#allocation95_spill] sm:$0xff] }
 0x273   : > { %7953 = vst [vmem:[#allocation4_spill] sm:$0xff] %v6770_v57  ;;  %7956 = vst [vmem:[#allocation5_spill] sm:$0xff] %v6778_v32  ;;  %v1543_v51 = vmul.f32 %v6571_v6, %v1475_v60  ;;  %v1544_v8 = vmul.f32 %v6571_v6, %v1476_v23  ;;  %v1506_v53 = vsub.f32 %v7958_v59, %v7957_v54  ;;  %v7961_v60 = vld [vmem:[#allocation41_spill] sm:$0xff]  ;;  %v7967_v54 = vld [vmem:[#allocation10_spill] sm:$0xff] }
 0x274   : > { %2823 = vbcast.lane.b32.xlu1 %v6664_v13, 264  ;;  %v1559_v11 = vmul.f32 %v6571_v6, %v1491_v63  ;;  %v6799_v32 = vadd.f32 %v6299_v61, %v1587_v1  ;;  %v1560_v18 = vmul.f32 %v6571_v6, %v1492_v55  ;;  %v1522_v23 = vsub.f32 %v7962_v20, %v7961_v60  ;;  %v7966_v60 = vld [vmem:[#allocation44_spill] sm:$0xff] }
 0x275   : > { %2819 = vbcast.lane.b32.xlu0 %v6664_v13, 256  ;;  %v7959_v13 = vld [vmem:[#allocation40_spill] sm:$0xff]  ;;  %v6808_v59 = vadd.f32 %v6299_v61, %v1588_v49  ;;  %v1573_v63 = vmul.f32 %v6571_v6, %v1505_v36  ;;  %v1574_v55 = vmul.f32 %v6571_v6, %v1506_v53  ;;  %v1478_v49 = vsub.f32 %v7967_v54, %v7966_v60  ;;  %v7971_v54 = vld [vmem:[#allocation37_spill] sm:$0xff] }
 0x276   : > { %v1521_v10 = vsub.f32 %v7960_v45, %v7959_v13  ;;  %v6804_v57 = vpop.xlane.xlu0 %1403  ;;  %v7964_v45 = vld [vmem:[#allocation43_spill] sm:$0xff]  ;;  %v7965_v13 = vld [vmem:[#allocation22_spill] sm:$0xff]  ;;  %v2567_v62 = vpop.permute.xlu1 %2566  ;;  %v6824_v36 = vadd.f32 %v6299_v61, %v1544_v8  ;;  %v6831_v20 = vadd.f32 %v6299_v61, %v1559_v11  ;;  %v1590_v53 = vmul.f32 %v6571_v6, %v1522_v23 }
 0x277   : > { %7963 = vst [vmem:[#allocation25_spill] sm:$0xff] %v6804_v57  ;;  %v1477_v46 = vsub.f32 %v7965_v13, %v7964_v45  ;;  %v6821_v57 = vadd.f32 %v6299_v61, %v1543_v51  ;;  %v7968_v13 = vld [vmem:[#allocation45_spill] sm:$0xff]  ;;  %v1494_v60 = vsub.f32 %v7971_v54, %v7970_v14  ;;  %v6838_v8 = vadd.f32 %v6299_v61, %v1560_v18  ;;  %v4494_v14 = vld [vmem:[%s7458_s3] sm:$0xff]  }
 0x278   : > { %2911 = vbcast.lane.b32.xlu1 %v6676_v42, 264  ;;  %v1589_v45 = vmul.f32 %v6571_v6, %v1521_v10  ;;  %v7973_v1 = vmax.f32 %v6667_v15, 0.0  ;;  %v6846_v23 = vadd.f32 %v6299_v61, %v1573_v63  ;;  %v1546_v54 = vmul.f32 %v6571_v6, %v1478_v49  ;;  %4372 = vmatprep.subr.bf16.mxu0 %v4494_v14  ;;  %v7975_v49 = vld [vmem:[#allocation11_spill] sm:$0xff] }
 0x279   : > { %2907 = vbcast.lane.b32.xlu0 %v6676_v42, 256  ;;  %v1493_v42 = vsub.f32 %v7969_v24, %v7968_v13  ;;  %v1545_v10 = vmul.f32 %v6571_v6, %v1477_v46  ;;  %v7972_v24 = vmax.f32 %v6650_v31, 0.0  ;;  %v6855_v31 = vadd.f32 %v6299_v61, %v1574_v55  ;;  %4373 = vmatpush3.bf16.msra.mxu0 %v4494_v14 }
 0x27a   : > { %v2571_v51 = vpop.permute.xlu0 %2570  ;;  %v2578_v17 = vpop.permute.xlu1 %2577  ;;  %v6860_v63 = vadd.f32 %v6299_v61, %v1589_v45  ;;  %v6867_v55 = vadd.f32 %v6299_v61, %v1590_v53  ;;  %v7980_v53 = vmax.f32 %v6685_v52, 0.0  ;;  %v7983_v45 = vld [vmem:[#allocation42_spill] sm:$0xff] }
 0x27b   : > { %v2913_v13 = vmul.f32 %v2567_v62, %v7972_v24  ;;  %v2914_v11 = vmul.f32 %v2571_v51, %v7973_v1  ;;  %v1561_v15 = vmul.f32 %v6571_v6, %v1493_v42  ;;  %v1562_v51 = vmul.f32 %v6571_v6, %v1494_v60  ;;  %v7974_v24 = vld [vmem:[#allocation48_spill] sm:$0xff]  ;;  %v7976_v42 = vld [vmem:[#allocation50_spill] sm:$0xff]  ;;  %v4495_v60 = vld [vmem:[%s7458_s3 + $0x8] sm:$0xff]  }
 0x27c   : > { %v1507_v16 = vsub.f32 %v7975_v49, %v7974_v24  ;;  %v6873_v33 = vadd.f32 %v6299_v61, %v1545_v10  ;;  %v7979_v24 = vmax.f32 %v6653_v34, 0.0  ;;  %4374 = vmatprep.subr.bf16.mxu0 %v4495_v60 }
 0x27d   : > { %v2977_v62 = vadd.f32 %v2914_v11, %v2913_v13  ;;  %v7977_v13 = vld [vmem:[#allocation12_spill] sm:$0xff]  ;;  %v6890_v30 = vadd.f32 %v6299_v61, %v1561_v15  ;;  %4375 = vmatpush3.bf16.msra.mxu0 %v4495_v60 }
 0x27e   : > { %v2655_v18 = vpop.permute.xlu0 %2654  ;;  %v1508_v11 = vsub.f32 %v7977_v13, %v7976_v42  ;;  %v2582_v12 = vpop.permute.xlu1 %2581  ;;  %7978 = vst [vmem:[#allocation6_spill] sm:$0xff] %v6873_v33  ;;  %v2915_v49 = vmul.f32 %v2578_v17, %v7979_v24  ;;  %v6884_v42 = vadd.f32 %v6299_v61, %v1546_v54  ;;  %v7982_v13 = vld [vmem:[#allocation52_spill] sm:$0xff]  ;;  %v1575_v34 = vmul.f32 %v6571_v6, %v1507_v16 }
 0x27f   : > { %v2978_v1 = vrot.slane %v2977_v62, 4  ;;  %v2916_v14 = vmul.f32 %v2582_v12, %v7980_v53  ;;  %v1523_v39 = vsub.f32 %v7983_v45, %v7982_v13  ;;  %v6895_v24 = vadd.f32 %v6299_v61, %v1562_v51  ;;  %v7984_v45 = vld [vmem:[#allocation53_spill] sm:$0xff]  ;;  %v4496_v16 = vld [vmem:[%s7458_s3 + $0x10] sm:$0xff]  }
 0x280   : > { %7981 = vst [vmem:[#allocation8_spill] sm:$0xff] %v6884_v42  ;;  %v1576_v54 = vmul.f32 %v6571_v6, %v1508_v11  ;;  %v7987_v51 = vmax.f32 %v6694_v29, 0.0  ;;  %4376 = vmatprep.subr.bf16.mxu0 %v4496_v16 }
 0x281   : > { %v2979_v10 = vadd.f32 %v2978_v1, %v2977_v62  ;;  %v2984_v17 = vadd.f32 %v2916_v14, %v2915_v49  ;;  %v7985_v62 = vld [vmem:[#allocation13_spill] sm:$0xff]  ;;  %v7986_v49 = vmax.f32 %v6691_v26, 0.0  ;;  %v1591_v38 = vmul.f32 %v6571_v6, %v1523_v39  ;;  %4377 = vmatpush3.bf16.msra.mxu0 %v4496_v16  ;;  %v7991_v39 = vld [vmem:[#allocation15_spill] sm:$0xff] }
 0x282   : > { %v2666_v52 = vpop.permute.xlu0 %2665  ;;  %v1524_v1 = vsub.f32 %v7985_v62, %v7984_v45  ;;  %v2659_v13 = vpop.permute.xlu1 %2658  ;;  %v7988_v45 = vld [vmem:[#allocation54_spill] sm:$0xff]  ;;  %v6914_v26 = vadd.f32 %v6299_v61, %v1575_v34  ;;  %v7993_v34 = vmax.f32 %v6701_v44, 0.0  ;;  %v7994_v16 = vmax.f32 %v6712_v3, 0.0  ;;  %v8001_v3 = vld [vmem:[#allocation97_spill] sm:$0xff] }
 0x283   : > { %v2980_v53 = vrot.slane %v2979_v10, 2  ;;  %v2929_v14 = vmul.f32 %v2655_v18, %v7986_v49  ;;  %v2985_v12 = vrot.slane %v2984_v17, 4  ;;  %v2930_v60 = vmul.f32 %v2659_v13, %v7987_v51  ;;  %v7989_v62 = vld [vmem:[#allocation14_spill] sm:$0xff]  ;;  %v7990_v13 = vld [vmem:[#allocation55_spill] sm:$0xff] }
 0x284   : > { %v1479_v46 = vsub.f32 %v7989_v62, %v7988_v45  ;;  %v1592_v18 = vmul.f32 %v6571_v6, %v1524_v1  ;;  %v1480_v49 = vsub.f32 %v7991_v39, %v7990_v13  ;;  %v7996_v13 = vld [vmem:[#allocation16_spill] sm:$0xff]  ;;  %v6937_v29 = vadd.f32 %v6299_v61, %v1591_v38 }
 0x285   : > { %v2981_v48 = vadd.f32 %v2980_v53, %v2979_v10  ;;  %v2986_v33 = vadd.f32 %v2985_v12, %v2984_v17  ;;  %v3033_v19 = vadd.f32 %v2930_v60, %v2929_v14  ;;  %v6921_v10 = vadd.f32 %v6299_v61, %v1576_v54  ;;  %v4497_v17 = vld [vmem:[%s7458_s3 + $0x18] sm:$0xff]   ;;  %v4498_v60 = vld [vmem:[%s7458_s3 + $0x20] sm:$0xff]   ;;  %v7995_v54 = vld [vmem:[#allocation56_spill] sm:$0xff] }
 0x286   : > { %v2589_v7 = vpop.permute.xlu0 %2588  ;;  %v2670_v45 = vpop.permute.xlu1 %2669  ;;  %v2931_v53 = vmul.f32 %v2666_v52, %v7993_v34  ;;  %v1547_v62 = vmul.f32 %v6571_v6, %v1479_v46  ;;  %v1495_v39 = vsub.f32 %v7996_v13, %v7995_v54  ;;  %4378 = vmatprep.subr.bf16.mxu0 %v4497_v17  ;;  %v8000_v54 = vld [vmem:[#allocation57_spill] sm:$0xff] }
 0x287   : > { %v2982_v51 = vrot.slane %v2981_v48, 1  ;;  %7992 = vst [vmem:[#allocation26_spill] sm:$0xff] %v6921_v10  ;;  %v2987_v12 = vrot.slane %v2986_v33, 2  ;;  %v3034_v14 = vrot.slane %v3033_v19, 4  ;;  %v2932_v1 = vmul.f32 %v2670_v45, %v7994_v16  ;;  %4379 = vmatpush3.bf16.msra.mxu0 %v4497_v17 }
 0x288   : > { %v1548_v45 = vmul.f32 %v6571_v6, %v1480_v49  ;;  %v7997_v16 = vmax.f32 %v6709_v27, 0.0  ;;  %4380 = vmatprep.subr.bf16.mxu0 %v4498_v60  ;;  %v7999_v17 = vmax.f32 %v6726_v25, 0.0  ;;  %v1563_v27 = vmul.f32 %v6571_v6, %v1495_v39  ;;  %v8002_v25 = vld [vmem:[#allocation98_spill] sm:$0xff] }
 0x289   : > { %v2983_v11 = vadd.f32 %v2982_v51, %v2981_v48  ;;  %v2988_v44 = vadd.f32 %v2987_v12, %v2986_v33  ;;  %v3035_v52 = vadd.f32 %v3034_v14, %v3033_v19  ;;  %v3040_v34 = vadd.f32 %v2932_v1, %v2931_v53  ;;  %v4499_v19 = vld [vmem:[%s7458_s3 + $0x28] sm:$0xff]  }
 0x28a   : > { %v2677_v15 = vpop.permute.xlu0 %2676  ;;  %v2917_v46 = vmul.f32 %v2589_v7, %v7997_v16  ;;  %v2593_v42 = vpop.permute.xlu1 %2592  ;;  %v6945_v48 = vadd.f32 %v6299_v61, %v1592_v18  ;;  %v6955_v53 = vadd.f32 %v6299_v61, %v1547_v62  ;;  %v1496_v10 = vsub.f32 %v8001_v3, %v8000_v54  ;;  %v4500_v62 = vld [vmem:[%s7458_s3 + $0x30] sm:$0xff]  }
 0x28b   : > { %v2989_v38 = vrot.slane %v2988_v44, 1  ;;  %v3036_v33 = vrot.slane %v3035_v52, 2  ;;  %v3041_v51 = vrot.slane %v3040_v34, 4  ;;  %v2918_v49 = vmul.f32 %v2593_v42, %v7999_v17  ;;  %4381 = vmatpush3.bf16.msra.mxu0 %v4498_v60 }
 0x28c   : > { %7998 = vst [vmem:[#allocation9_spill] sm:$0xff] %v6945_v48  ;;  %v3217_v7 = vpack.c.bf16 %v2983_v11, %v2983_v11  ;;  %v1509_v42 = vsub.f32 %v8002_v25, %v6492_v47  ;;  %v6963_v39 = vadd.f32 %v6299_v61, %v1548_v45  ;;  %4382 = vmatprep.subr.bf16.mxu0 %v4499_v19  ;;  %v8004_v3 = vmax.f32 %v6733_v22, 0.0 }
 0x28d   : > { %v2990_v18 = vadd.f32 %v2989_v38, %v2988_v44  ;;  %v3037_v14 = vadd.f32 %v3036_v33, %v3035_v52  ;;  %v3042_v1 = vadd.f32 %v3041_v51, %v3040_v34  ;;  %v2991_v13 = vadd.f32 %v2918_v49, %v2917_v46 }
 0x28e   : > { %v2743_v16 = vpop.permute.xlu0 %2742  ;;  %v2681_v17 = vpop.permute.xlu1 %2680  ;;  %8003 = vst [vmem:[#allocation29_spill] sm:$0xff] %v6963_v39  ;;  %v3285_v46 = vunpack.c.l.b16 %v3217_v7  ;;  %v2933_v54 = vmul.f32 %v2677_v15, %v8004_v3  ;;  %v8005_v47 = vmax.f32 %v6742_v0, 0.0  ;;  %v6973_v33 = vadd.f32 %v6299_v61, %v1563_v27  ;;  %v4501_v0 = vld [vmem:[%s7458_s3 + $0x38] sm:$0xff]  }
 0x28f   : > { %v3218_v44 = vpack.c.bf16 %v2990_v18, %v2990_v18  ;;  %v3038_v52 = vrot.slane %v3037_v14, 1  ;;  %v3043_v60 = vrot.slane %v3042_v1, 2  ;;  %v2992_v34 = vrot.slane %v2991_v13, 4  ;;  %4383 = vmatpush3.bf16.msra.mxu0 %v4499_v19  ;;  %v8006_v19 = vld [vmem:[#allocation59_spill] sm:$0xff] }
 0x290   : > { %v2934_v38 = vmul.f32 %v2681_v17, %v8005_v47  ;;  %v1564_v18 = vmul.f32 %v6571_v6, %v1496_v10  ;;  %4384 = vmatprep.subr.bf16.mxu0 %v4500_v62  ;;  %v1577_v15 = vmul.f32 %v6571_v6, %v1509_v42  ;;  %v8008_v17 = vmax.f32 %v6750_v28, 0.0 }
 0x291   : > { %v3286_v45 = vunpack.c.l.b16 %v3218_v44  ;;  %v3039_v51 = vadd.f32 %v3038_v52, %v3037_v14  ;;  %v3044_v49 = vadd.f32 %v3043_v60, %v3042_v1  ;;  %v2993_v25 = vadd.f32 %v2992_v34, %v2991_v13  ;;  %v8007_v13 = vld [vmem:[#allocation24_spill] sm:$0xff] }
 0x292   : > { %v2754_v11 = vpop.permute.xlu0 %2753  ;;  %v3047_v12 = vadd.f32 %v2934_v38, %v2933_v54  ;;  %v2747_v48 = vpop.permute.xlu1 %2746  ;;  %v1510_v10 = vsub.f32 %v8007_v13, %v8006_v19  ;;  %v2945_v44 = vmul.f32 %v2743_v16, %v8008_v17  ;;  %v8009_v60 = vmax.f32 %v6758_v58, 0.0 }
 0x293   : > { %v3317_v27 = vsel %vm918_vm8, %v3286_v45, %v3285_v46  ;;  %v3045_v14 = vrot.slane %v3044_v49, 1  ;;  %v2994_v1 = vrot.slane %v2993_v25, 2  ;;  %v3225_v3 = vpack.c.bf16 %v3039_v51, %v3039_v51  ;;  %4385 = vmatpush3.bf16.msra.mxu0 %v4500_v62  ;;  %v8010_v46 = vld [vmem:[#allocation60_spill] sm:$0xff]  ;;  %v8011_v45 = vld [vmem:[#allocation23_spill] sm:$0xff] }
 0x294   : > { %v3048_v52 = vrot.slane %v3047_v12, 4  ;;  %v2946_v34 = vmul.f32 %v2747_v48, %v8009_v60  ;;  %v1695_v42 = vmax.f32 %v6973_v33, 0.0  ;;  %v1525_v22 = vsub.f32 %v8011_v45, %v8010_v46  ;;  %4386 = vmatprep.subr.bf16.mxu0 %v4501_v0 }
 0x295   : > { %v3046_v54 = vadd.f32 %v3045_v14, %v3044_v49  ;;  %v2995_v47 = vadd.f32 %v2994_v1, %v2993_v25  ;;  %v6993_v28 = vadd.f32 %v6299_v61, %v1564_v18  ;;  %v8012_v48 = vmax.f32 %v6765_v43, 0.0 }
 0x296   : > { %v2831_v38 = vpop.permute.xlu0 %2830  ;;  %v3049_v7 = vadd.f32 %v3048_v52, %v3047_v12  ;;  %v3089_v39 = vadd.f32 %v2946_v34, %v2945_v44  ;;  %v2758_v19 = vpop.permute.xlu1 %2757  ;;  %v8013_v49 = vmax.f32 %v6774_v40, 0.0  ;;  %v1578_v62 = vmul.f32 %v6571_v6, %v1510_v10 }
 0x297   : > { %v3226_v16 = vpack.c.bf16 %v3046_v54, %v3046_v54  ;;  %v2996_v58 = vrot.slane %v2995_v47, 1  ;;  %v2947_v51 = vmul.f32 %v2754_v11, %v8012_v48  ;;  %v7001_v12 = vadd.f32 %v6299_v61, %v1577_v15  ;;  %4387 = vmatpush3.bf16.msra.mxu0 %v4501_v0 }
 0x298   : > { %v2948_v25 = vmul.f32 %v2758_v19, %v8013_v49  ;;  %v3050_v14 = vrot.slane %v3049_v7, 2  ;;  %v3090_v1 = vrot.slane %v3089_v39, 4  ;;  %v3293_v13 = vunpack.c.l.b16 %v3225_v3  ;;  %v8016_v19 = vld [vmem:[#allocation61_spill] sm:$0xff] }
 0x299   : > { %v3294_v17 = vunpack.c.l.b16 %v3226_v16  ;;  %v2997_v18 = vadd.f32 %v2996_v58, %v2995_v47  ;;  %v8014_v43 = vmax.f32 %v6784_v50, 0.0  ;;  %v1696_v54 = vmax.f32 %v6993_v28, 0.0  ;;  %v8017_v16 = vld [vmem:[#allocation28_spill] sm:$0xff]  ;;  %v8018_v58 = vld [vmem:[#allocation63_spill] sm:$0xff]  ;;  %v8066_v28 = vld [vmem:[#allocation90_spill] sm:$0xff] }
 0x29a   : > { %v3096_v44 = vadd.f32 %v2948_v25, %v2947_v51  ;;  %v2842_v52 = vpop.permute.xlu0 %2841  ;;  %v3051_v60 = vadd.f32 %v3050_v14, %v3049_v7  ;;  %v3091_v34 = vadd.f32 %v3090_v1, %v3089_v39  ;;  %v2835_v40 = vpop.permute.xlu1 %2834  ;;  %v8015_v15 = vmax.f32 %v6787_v2, 0.0  ;;  %v8019_v50 = vld [vmem:[#allocation32_spill] sm:$0xff] }
 0x29b   : > { %v2961_v11 = vmul.f32 %v2831_v38, %v8014_v43  ;;  %v3324_v10 = vsel %vm918_vm8, %v3294_v17, %v3293_v13  ;;  %v3219_v46 = vpack.c.bf16 %v2997_v18, %v2997_v18  ;;  %v1593_v47 = vmul.f32 %v6571_v6, %v1525_v22 }
 0x29c   : > { %v3097_v45 = vrot.slane %v3096_v44, 4  ;;  %v2962_v3 = vmul.f32 %v2835_v40, %v8015_v15  ;;  %v1526_v0 = vsub.f32 %v8017_v16, %v8016_v19  ;;  %v3052_v7 = vrot.slane %v3051_v60, 1  ;;  %v8023_v16 = vld [vmem:[#allocation46_spill] sm:$0xff] }
 0x29d   : > { %v3092_v39 = vrot.slane %v3091_v34, 2  ;;  %v1481_v38 = vsub.f32 %v8019_v50, %v8018_v58  ;;  %v3287_v48 = vunpack.c.l.b16 %v3219_v46  ;;  %v8020_v13 = vmax.f32 %v6799_v32, 0.0 }
 0x29e   : > { %v3098_v51 = vadd.f32 %v3097_v45, %v3096_v44  ;;  %v3145_v49 = vadd.f32 %v2962_v3, %v2961_v11  ;;  %v2600_v25 = vpop.permute.xlu0 %2599  ;;  %v3053_v14 = vadd.f32 %v3052_v7, %v3051_v60  ;;  %v2846_v17 = vpop.permute.xlu1 %2845  ;;  %v7017_v22 = vadd.f32 %v6299_v61, %v1578_v62  ;;  %v8022_v3 = vld [vmem:[#allocation64_spill] sm:$0xff] }
 0x29f   : > { %v3093_v1 = vadd.f32 %v3092_v39, %v3091_v34  ;;  %v2963_v2 = vmul.f32 %v2842_v52, %v8020_v13  ;;  %v8021_v40 = vmax.f32 %v6808_v59, 0.0  ;;  %v7022_v19 = vsel %vm919_vm9, %v3287_v48, %v3317_v27 }
 0x2a0   : > { %v3099_v18 = vrot.slane %v3098_v51, 2  ;;  %v3146_v43 = vrot.slane %v3145_v49, 4  ;;  %v1594_v44 = vmul.f32 %v6571_v6, %v1526_v0  ;;  %v3227_v11 = vpack.c.bf16 %v3053_v14, %v3053_v14 }
 0x2a1   : > { %v2964_v15 = vmul.f32 %v2846_v17, %v8021_v40  ;;  %v3094_v60 = vrot.slane %v3093_v1, 1  ;;  %v7026_v34 = vadd.f32 %v6299_v61, %v1593_v47  ;;  %v1549_v32 = vmul.f32 %v6571_v6, %v1481_v38  ;;  %v8026_v38 = vld [vmem:[#allocation65_spill] sm:$0xff] }
 0x2a2   : > { %v3100_v52 = vadd.f32 %v3099_v18, %v3098_v51  ;;  %v3147_v62 = vadd.f32 %v3146_v43, %v3145_v49  ;;  %v2688_v45 = vpop.permute.xlu0 %2687  ;;  %v1482_v59 = vsub.f32 %v8023_v16, %v8022_v3  ;;  %v3295_v7 = vunpack.c.l.b16 %v3227_v11  ;;  %v2604_v0 = vpop.permute.xlu1 %2603  ;;  %v8027_v51 = vld [vmem:[#allocation51_spill] sm:$0xff] }
 0x2a3   : > { %v3152_v46 = vadd.f32 %v2964_v15, %v2963_v2  ;;  %v3095_v39 = vadd.f32 %v3094_v60, %v3093_v1  ;;  %v8024_v27 = vmax.f32 %v6821_v57, 0.0  ;;  %v8025_v47 = vmax.f32 %v6824_v36, 0.0 }
 0x2a4   : > { %v3101_v50 = vrot.slane %v3100_v52, 1  ;;  %v3148_v48 = vrot.slane %v3147_v62, 2  ;;  %v1497_v49 = vsub.f32 %v8027_v51, %v8026_v38  ;;  %v7038_v17 = vadd.f32 %v6299_v61, %v1594_v44 }
 0x2a5   : > { %v2919_v58 = vmul.f32 %v2600_v25, %v8024_v27  ;;  %v3153_v14 = vrot.slane %v3152_v46, 4  ;;  %v2920_v13 = vmul.f32 %v2604_v0, %v8025_v47  ;;  %v3233_v2 = vpack.c.bf16 %v3095_v39, %v3095_v39  ;;  %v8030_v47 = vld [vmem:[#allocation69_spill] sm:$0xff] }
 0x2a6   : > { %v7041_v18 = vsel %vm919_vm9, %v3295_v7, %v3324_v10  ;;  %v3102_v1 = vadd.f32 %v3101_v50, %v3100_v52  ;;  %v3149_v57 = vadd.f32 %v3148_v48, %v3147_v62  ;;  %v2765_v40 = vpop.permute.xlu0 %2764  ;;  %v1550_v15 = vmul.f32 %v6571_v6, %v1482_v59  ;;  %v2692_v11 = vpop.permute.xlu1 %2691  ;;  %v8028_v48 = vld [vmem:[#allocation68_spill] sm:$0xff] }
 0x2a7   : > { %v3154_v25 = vadd.f32 %v3153_v14, %v3152_v46  ;;  %v2998_v43 = vadd.f32 %v2920_v13, %v2919_v58  ;;  %v1709_v36 = vmax.f32 %v7001_v12, 0.0  ;;  %v1710_v60 = vmax.f32 %v7017_v22, 0.0  ;;  %v8029_v14 = vld [vmem:[#allocation62_spill] sm:$0xff] }
 0x2a8   : > { %v7047_v3 = vadd.f32 %v6299_v61, %v1549_v32  ;;  %v3234_v44 = vpack.c.bf16 %v3102_v1, %v3102_v1  ;;  %v3150_v16 = vrot.slane %v3149_v57, 1  ;;  %v1565_v52 = vmul.f32 %v6571_v6, %v1497_v49  ;;  %v8031_v13 = vld [vmem:[#allocation66_spill] sm:$0xff] }
 0x2a9   : > { %v3155_v39 = vrot.slane %v3154_v25, 2  ;;  %v2999_v10 = vrot.slane %v2998_v43, 4  ;;  %v3301_v62 = vunpack.c.l.b16 %v3233_v2  ;;  %v1725_v46 = vmax.f32 %v7026_v34, 0.0  ;;  %v8032_v2 = vld [vmem:[#allocation70_spill] sm:$0xff] }
 0x2aa   : > { %v3302_v59 = vunpack.c.l.b16 %v3234_v44  ;;  %v3151_v27 = vadd.f32 %v3150_v16, %v3149_v57  ;;  %v2853_v50 = vpop.permute.xlu0 %2852  ;;  %v1498_v32 = vsub.f32 %v8029_v14, %v8028_v48  ;;  %v1511_v38 = vsub.f32 %v8031_v13, %v8030_v47  ;;  %v2769_v51 = vpop.permute.xlu1 %2768 }
 0x2ab   : > { %v3156_v58 = vadd.f32 %v3155_v39, %v3154_v25  ;;  %v3000_v0 = vadd.f32 %v2999_v10, %v2998_v43  ;;  %v1681_v1 = vmax.f32 %v7047_v3, 0.0  ;;  %v7058_v49 = vadd.f32 %v6299_v61, %v1550_v15 }
 0x2ac   : > { %v1512_v7 = vsub.f32 %v6551_v9, %v8032_v2  ;;  %v7063_v57 = vsel %vm918_vm8, %v3302_v59, %v3301_v62  ;;  %v1527_v44 = vsub.f32 %v6577_v5, %v6537_v35  ;;  %v8033_v16 = vmax.f32 %v6846_v23, 0.0 }
 0x2ad   : > { %v3157_v25 = vrot.slane %v3156_v58, 1  ;;  %v3001_v43 = vrot.slane %v3000_v0, 2  ;;  %v8034_v10 = vmax.f32 %v6838_v8, 0.0  ;;  %v8035_v15 = vmax.f32 %v6855_v31, 0.0 }
 0x2ae   : > { %v2949_v39 = vmul.f32 %v2765_v40, %v8033_v16  ;;  %v3241_v47 = vpack.c.bf16 %v3151_v27, %v3151_v27  ;;  %v7073_v2 = vpop.permute.xlu0 %2610  ;;  %v7076_v62 = vadd.f32 %v6299_v61, %v1565_v52  ;;  %v1566_v59 = vmul.f32 %v6571_v6, %v1498_v32  ;;  %v2857_v40 = vpop.permute.xlu1 %2856 }
 0x2af   : > { %v2936_v48 = vmul.f32 %v2692_v11, %v8034_v10  ;;  %v2950_v14 = vmul.f32 %v2769_v51, %v8035_v15  ;;  %v3158_v13 = vadd.f32 %v3157_v25, %v3156_v58  ;;  %v3002_v9 = vadd.f32 %v3001_v43, %v3000_v0  ;;  %v8039_v10 = vld [vmem:[#allocation71_spill] sm:$0xff] }
 0x2b0   : > { %v1579_v35 = vmul.f32 %v6571_v6, %v1511_v38  ;;  %v8036_v5 = vmax.f32 %v6831_v20, 0.0  ;;  %v8037_v27 = vmax.f32 %v6860_v63, 0.0  ;;  %v8038_v0 = vmax.f32 %v6867_v55, 0.0 }
 0x2b1   : > { %v3103_v8 = vadd.f32 %v2950_v14, %v2949_v39  ;;  %v3242_v11 = vpack.c.bf16 %v3158_v13, %v3158_v13  ;;  %v3003_v31 = vrot.slane %v3002_v9, 1  ;;  %v1580_v52 = vmul.f32 %v6571_v6, %v1512_v7 }
 0x2b2   : > { %v2935_v23 = vmul.f32 %v2688_v45, %v8036_v5  ;;  %v2965_v58 = vmul.f32 %v2853_v50, %v8037_v27  ;;  %v2966_v51 = vmul.f32 %v2857_v40, %v8038_v0  ;;  %v1595_v25 = vmul.f32 %v6571_v6, %v1527_v44  ;;  %v2699_v39 = vpop.permute.xlu0 %2698  ;;  %v2615_v63 = vpop.permute.xlu1 %2614 }
 0x2b3   : > { %v3104_v43 = vrot.slane %v3103_v8, 4  ;;  %v3309_v38 = vunpack.c.l.b16 %v3241_v47  ;;  %v3310_v16 = vunpack.c.l.b16 %v3242_v11  ;;  %v3004_v20 = vadd.f32 %v3003_v31, %v3002_v9 }
 0x2b4   : > { %v3054_v32 = vadd.f32 %v2936_v48, %v2935_v23  ;;  %v3159_v45 = vadd.f32 %v2966_v51, %v2965_v58  ;;  %v1528_v15 = vsub.f32 %v6605_v56, %v8039_v10  ;;  %v7091_v50 = vadd.f32 %v6299_v61, %v1579_v35 }
 0x2b5   : > { %v3105_v14 = vadd.f32 %v3104_v43, %v3103_v8  ;;  %v7094_v55 = vadd.f32 %v6299_v61, %v1566_v59  ;;  %v7097_v7 = vsel %vm918_vm8, %v3310_v16, %v3309_v38  ;;  %v3220_v44 = vpack.c.bf16 %v3004_v20, %v3004_v20 }
 0x2b6   : > { %v3160_v48 = vrot.slane %v3159_v45, 4  ;;  %v1682_v47 = vmax.f32 %v7058_v49, 0.0  ;;  %v1483_v13 = vsub.f32 %v6624_v4, %v6546_v37  ;;  %v7103_v56 = vadd.f32 %v6299_v61, %v1595_v25  ;;  %v2776_v8 = vpop.permute.xlu0 %2775  ;;  %v2703_v27 = vpop.permute.xlu1 %2702 }
 0x2b7   : > { %v3106_v9 = vrot.slane %v3105_v14, 2  ;;  %v7106_v35 = vadd.f32 %v6299_v61, %v1580_v52  ;;  %v3288_v5 = vunpack.c.l.b16 %v3220_v44  ;;  %v3055_v59 = vrot.slane %v3054_v32, 4  ;;  %v8043_v44 = vld [vmem:[#allocation84_spill] sm:$0xff] }
 0x2b8   : > { %v3161_v23 = vadd.f32 %v3160_v48, %v3159_v45  ;;  %v1697_v40 = vmax.f32 %v7076_v62, 0.0  ;;  %v1596_v11 = vmul.f32 %v6571_v6, %v1528_v15  ;;  %v1711_v58 = vmax.f32 %v7091_v50, 0.0 }
 0x2b9   : > { %v3107_v31 = vadd.f32 %v3106_v9, %v3105_v14  ;;  %v1698_v37 = vmax.f32 %v7094_v55, 0.0  ;;  %v8040_v0 = vmax.f32 %v6890_v30, 0.0  ;;  %v8041_v52 = vmax.f32 %v6895_v24, 0.0  ;;  %v8042_v24 = vld [vmem:[#allocation72_spill] sm:$0xff] }
 0x2ba   : > { %v3162_v4 = vrot.slane %v3161_v23, 2  ;;  %v7118_v43 = vsel %vm921_vm10, %v3288_v5, %v7022_v19  ;;  %v1551_v38 = vmul.f32 %v6571_v6, %v1483_v13  ;;  %v1484_v10 = vsub.f32 %v6642_v21, %v6555_v41  ;;  %v2864_v14 = vpop.permute.xlu0 %2863  ;;  %v8044_v19 = vld [vmem:[#allocation8_spill] sm:$0xff]  ;;  %v2780_v13 = vpop.permute.xlu1 %2779  ;;  %v8047_v21 = vld [vmem:[#allocation26_spill] sm:$0xff] }
 0x2bb   : > { %v2937_v51 = vmul.f32 %v2699_v39, %v8040_v0  ;;  %v2938_v25 = vmul.f32 %v2703_v27, %v8041_v52  ;;  %v3108_v16 = vrot.slane %v3107_v31, 1  ;;  %v3056_v15 = vadd.f32 %v3055_v59, %v3054_v32 }
 0x2bc   : > { %v3163_v30 = vadd.f32 %v3162_v4, %v3161_v23  ;;  %v1499_v48 = vsub.f32 %v8043_v44, %v8042_v24  ;;  %v8045_v5 = vmax.f32 %v8044_v19, 0.0  ;;  %v7130_v0 = vadd.f32 %v6299_v61, %v1596_v11  ;;  %v8049_v23 = vld [vmem:[#allocation73_spill] sm:$0xff] }
 0x2bd   : > { %v3061_v39 = vadd.f32 %v2938_v25, %v2937_v51  ;;  %v3109_v9 = vadd.f32 %v3108_v16, %v3107_v31  ;;  %v8046_v20 = vmax.f32 %v6914_v26, 0.0  ;;  %v8048_v32 = vmax.f32 %v8047_v21, 0.0  ;;  %v8050_v4 = vld [vmem:[#allocation17_spill] sm:$0xff]  ;;  %v8051_v31 = vld [vmem:[#allocation6_spill] sm:$0xff] }
 0x2be   : > { %v2922_v27 = vmul.f32 %v2615_v63, %v8045_v5  ;;  %v3164_v52 = vrot.slane %v3163_v30, 1  ;;  %v1500_v51 = vsub.f32 %v8050_v4, %v8049_v23  ;;  %v8052_v16 = vmax.f32 %v8051_v31, 0.0  ;;  %v8054_v23 = vld [vmem:[#allocation86_spill] sm:$0xff] }
 0x2bf   : > { %v2951_v45 = vmul.f32 %v2776_v8, %v8046_v20  ;;  %v3062_v41 = vrot.slane %v3061_v39, 4  ;;  %v2952_v59 = vmul.f32 %v2780_v13, %v8048_v32  ;;  %v3235_v25 = vpack.c.bf16 %v3109_v9, %v3109_v9  ;;  %v2622_v8 = vpop.permute.xlu0 %2621  ;;  %v2868_v32 = vpop.permute.xlu1 %2867  ;;  %v8053_v9 = vld [vmem:[#allocation74_spill] sm:$0xff] }
 0x2c0   : > { %v2921_v63 = vmul.f32 %v7073_v2, %v8052_v16  ;;  %v7142_v24 = vadd.f32 %v6299_v61, %v1551_v38  ;;  %v3057_v11 = vrot.slane %v3056_v15, 2  ;;  %v3165_v44 = vadd.f32 %v3164_v52, %v3163_v30  ;;  %v8056_v52 = vld [vmem:[#allocation9_spill] sm:$0xff] }
 0x2c1   : > { %v3063_v19 = vadd.f32 %v3062_v41, %v3061_v39  ;;  %v3110_v26 = vadd.f32 %v2952_v59, %v2951_v45  ;;  %v1552_v20 = vmul.f32 %v6571_v6, %v1484_v10  ;;  %v1567_v5 = vmul.f32 %v6571_v6, %v1499_v48 }
 0x2c2   : > { %v3303_v13 = vunpack.c.l.b16 %v3235_v25  ;;  %v3005_v21 = vadd.f32 %v2922_v27, %v2921_v63  ;;  %v1513_v4 = vsub.f32 %v8054_v23, %v8053_v9  ;;  %v3243_v31 = vpack.c.bf16 %v3165_v44, %v3165_v44 }
 0x2c3   : > { %v3111_v2 = vrot.slane %v3110_v26, 4  ;;  %v3064_v45 = vrot.slane %v3063_v19, 2  ;;  %v8055_v39 = vmax.f32 %v6937_v29, 0.0  ;;  %v8057_v48 = vmax.f32 %v8056_v52, 0.0  ;;  %v2710_v63 = vpop.permute.xlu0 %2709  ;;  %v2626_v23 = vpop.permute.xlu1 %2625  ;;  %v8064_v52 = vld [vmem:[#allocation18_spill] sm:$0xff] }
 0x2c4   : > { %v7151_v30 = vsel %vm919_vm9, %v3303_v13, %v7063_v57  ;;  %v1568_v27 = vmul.f32 %v6571_v6, %v1500_v51  ;;  %v3058_v59 = vadd.f32 %v3057_v11, %v3056_v15  ;;  %v3311_v25 = vunpack.c.l.b16 %v3243_v31  ;;  %v8059_v13 = vld [vmem:[#allocation88_spill] sm:$0xff] }
 0x2c5   : > { %v2967_v10 = vmul.f32 %v2864_v14, %v8055_v39  ;;  %v2968_v41 = vmul.f32 %v2868_v32, %v8057_v48  ;;  %v3112_v16 = vadd.f32 %v3111_v2, %v3110_v26  ;;  %v3006_v44 = vrot.slane %v3005_v21, 4  ;;  %v8058_v14 = vld [vmem:[#allocation75_spill] sm:$0xff] }
 0x2c6   : > { %v7159_v38 = vadd.f32 %v6299_v61, %v1567_v5  ;;  %v7162_v57 = vadd.f32 %v6299_v61, %v1552_v20  ;;  %v1581_v29 = vmul.f32 %v6571_v6, %v1513_v4  ;;  %v1514_v32 = vsub.f32 %v8059_v13, %v8058_v14  ;;  %v8061_v5 = vld [vmem:[#allocation29_spill] sm:$0xff] }
 0x2c7   : > { %v3166_v9 = vadd.f32 %v2968_v41, %v2967_v10  ;;  %v7169_v15 = vsel %vm919_vm9, %v3311_v25, %v7097_v7  ;;  %v8060_v51 = vmax.f32 %v6955_v53, 0.0  ;;  %v3065_v26 = vadd.f32 %v3064_v45, %v3063_v19  ;;  %v8063_v20 = vld [vmem:[#allocation77_spill] sm:$0xff]  ;;  %v2787_v41 = vpop.permute.xlu0 %2786 }
 0x2c8   : > { %v3113_v31 = vrot.slane %v3112_v16, 2  ;;  %v8062_v39 = vmax.f32 %v8061_v5, 0.0  ;;  %v1529_v48 = vsub.f32 %v8064_v52, %v8063_v20  ;;  %v3059_v4 = vrot.slane %v3058_v59, 1 }
 0x2c9   : > { %v2923_v11 = vmul.f32 %v2622_v8, %v8060_v51  ;;  %v3167_v2 = vrot.slane %v3166_v9, 4  ;;  %v1683_v14 = vmax.f32 %v7142_v24, 0.0  ;;  %v7179_v13 = vadd.f32 %v6299_v61, %v1568_v27  ;;  %v2714_v8 = vpop.permute.xlu1 %2713 }
 0x2ca   : > { %v2924_v10 = vmul.f32 %v2626_v23, %v8062_v39  ;;  %v3007_v7 = vadd.f32 %v3006_v44, %v3005_v21  ;;  %v1684_v19 = vmax.f32 %v7162_v57, 0.0  ;;  %v2939_v45 = vmul.f32 %v2710_v63, %v1695_v42  ;;  %v8065_v42 = vld [vmem:[#allocation79_spill] sm:$0xff] }
 0x2cb   : > { %v3168_v25 = vadd.f32 %v3167_v2, %v3166_v9  ;;  %v2940_v23 = vmul.f32 %v2714_v8, %v1696_v54  ;;  %v1699_v51 = vmax.f32 %v7159_v38, 0.0  ;;  %v7188_v5 = vadd.f32 %v6299_v61, %v1581_v29 }
 0x2cc   : > { %v3012_v53 = vadd.f32 %v2924_v10, %v2923_v11  ;;  %v1582_v27 = vmul.f32 %v6571_v6, %v1514_v32  ;;  %v3066_v39 = vrot.slane %v3065_v26, 1  ;;  %v3114_v21 = vadd.f32 %v3113_v31, %v3112_v16  ;;  %v2875_v10 = vpop.permute.xlu0 %2874  ;;  %v8067_v31 = vld [vmem:[#allocation80_spill] sm:$0xff] }
 0x2cd   : > { %v1597_v9 = vmul.f32 %v6571_v6, %v1529_v48  ;;  %v3060_v11 = vadd.f32 %v3059_v4, %v3058_v59  ;;  %v3068_v2 = vadd.f32 %v2940_v23, %v2939_v45  ;;  %v1530_v54 = vsub.f32 %v8066_v28, %v8065_v42  ;;  %v2791_v29 = vpop.permute.xlu1 %2790  ;;  %v8068_v48 = vld [vmem:[#allocation19_spill] sm:$0xff] }
 0x2ce   : > { %v3013_v44 = vrot.slane %v3012_v53, 4  ;;  %v3008_v63 = vrot.slane %v3007_v7, 2  ;;  %v3169_v20 = vrot.slane %v3168_v25, 2  ;;  %v2953_v32 = vmul.f32 %v2787_v41, %v1709_v36 }
 0x2cf   : > { %v3069_v8 = vrot.slane %v3068_v2, 4  ;;  %v2954_v16 = vmul.f32 %v2791_v29, %v1710_v60  ;;  %v1515_v4 = vsub.f32 %v8068_v48, %v8067_v31  ;;  %v3067_v45 = vadd.f32 %v3066_v39, %v3065_v26 }
 0x2d0   : > { %v3014_v52 = vadd.f32 %v3013_v44, %v3012_v53  ;;  %v3115_v23 = vrot.slane %v3114_v21, 1  ;;  %v7203_v42 = vadd.f32 %v6299_v61, %v1582_v27  ;;  %v3228_v28 = vpack.c.bf16 %v3060_v11, %v3060_v11  ;;  %v2633_v33 = vpop.permute.xlu0 %2632 }
 0x2d1   : > { %v3070_v53 = vadd.f32 %v3069_v8, %v3068_v2  ;;  %v3117_v44 = vadd.f32 %v2954_v16, %v2953_v32  ;;  %v7206_v12 = vadd.f32 %v6299_v61, %v1597_v9  ;;  %v7209_v22 = vmul.f32 %v6571_v6, %v1530_v54  ;;  %v2879_v29 = vpop.permute.xlu1 %2878 }
 0x2d2   : > { %v3009_v36 = vadd.f32 %v3008_v63, %v3007_v7  ;;  %v3170_v60 = vadd.f32 %v3169_v20, %v3168_v25  ;;  %v3015_v41 = vrot.slane %v3014_v52, 2  ;;  %v2969_v26 = vmul.f32 %v2875_v10, %v1725_v46 }
 0x2d3   : > { %v3071_v31 = vrot.slane %v3070_v53, 2  ;;  %v3118_v27 = vrot.slane %v3117_v44, 4  ;;  %v8069_v39 = vmax.f32 %v7038_v17, 0.0  ;;  %v7216_v2 = vmul.f32 %v6571_v6, %v1515_v4 }
 0x2d4   : > { %v3229_v9 = vpack.c.bf16 %v3067_v45, %v3067_v45  ;;  %v3116_v32 = vadd.f32 %v3115_v23, %v3114_v21  ;;  %v3296_v8 = vunpack.c.l.b16 %v3228_v28  ;;  %v2721_v20 = vpop.permute.xlu0 %2720  ;;  %v3010_v16 = vrot.slane %v3009_v36, 1  ;;  %v8070_v45 = vld [vmem:[#allocation81_spill] sm:$0xff]  ;;  %v8071_v23 = vld [vmem:[#allocation4_spill] sm:$0xff] }
 0x2d5   : > { %v2970_v11 = vmul.f32 %v2879_v29, %v8069_v39  ;;  %v3072_v7 = vadd.f32 %v3071_v31, %v3070_v53  ;;  %v3119_v25 = vadd.f32 %v3118_v27, %v3117_v44  ;;  %v3171_v48 = vrot.slane %v3170_v60, 1  ;;  %v2637_v17 = vpop.permute.xlu1 %2636 }
 0x2d6   : > { %v3016_v34 = vadd.f32 %v3015_v41, %v3014_v52  ;;  %v2925_v46 = vmul.f32 %v2633_v33, %v1681_v1  ;;  %v2926_v21 = vmul.f32 %v2637_v17, %v1682_v47  ;;  %v1516_v28 = vsub.f32 %v8071_v23, %v8070_v45 }
 0x2d7   : > { %v3173_v63 = vadd.f32 %v2970_v11, %v2969_v26  ;;  %v3073_v10 = vrot.slane %v3072_v7, 1  ;;  %v3120_v29 = vrot.slane %v3119_v25, 2  ;;  %v3297_v53 = vunpack.c.l.b16 %v3229_v9 }
 0x2d8   : > { %v3236_v44 = vpack.c.bf16 %v3116_v32, %v3116_v32  ;;  %v1729_v31 = vmax.f32 %v7206_v12, 0.0  ;;  %v3019_v41 = vadd.f32 %v2926_v21, %v2925_v46  ;;  %v2798_v3 = vpop.permute.xlu0 %2797  ;;  %v3011_v1 = vadd.f32 %v3010_v16, %v3009_v36 }
 0x2d9   : > { %v3174_v4 = vrot.slane %v3173_v63, 4  ;;  %v3074_v26 = vadd.f32 %v3073_v10, %v3072_v7  ;;  %v3121_v27 = vadd.f32 %v3120_v29, %v3119_v25  ;;  %v3172_v33 = vadd.f32 %v3171_v48, %v3170_v60  ;;  %v2725_v11 = vpop.permute.xlu1 %2724 }
 0x2da   : > { %v3017_v39 = vrot.slane %v3016_v34, 1  ;;  %v3326_v49 = vsel %vm921_vm10, %v3296_v8, %v7041_v18  ;;  %v3020_v59 = vrot.slane %v3019_v41, 4  ;;  %v3304_v9 = vunpack.c.l.b16 %v3236_v44 }
 0x2db   : > { %v3175_v52 = vadd.f32 %v3174_v4, %v3173_v63  ;;  %v3230_v47 = vpack.c.bf16 %v3074_v26, %v3074_v26  ;;  %v3122_v17 = vrot.slane %v3121_v27, 1  ;;  %v2941_v32 = vmul.f32 %v2721_v20, %v1697_v40 }
 0x2dc   : > { %v2942_v7 = vmul.f32 %v2725_v11, %v1698_v37  ;;  %v3327_v25 = vsel %vm923_vm11, %v3297_v53, %v3326_v49  ;;  %v3021_v16 = vadd.f32 %v3020_v59, %v3019_v41  ;;  %v2886_v48 = vpop.permute.xlu0 %2885  ;;  %v3244_v46 = vpack.c.bf16 %v3172_v33, %v3172_v33 }
 0x2dd   : > { %v3176_v54 = vrot.slane %v3175_v52, 2  ;;  %v3298_v36 = vunpack.c.l.b16 %v3230_v47  ;;  %v3123_v60 = vadd.f32 %v3122_v17, %v3121_v27  ;;  %v3018_v18 = vadd.f32 %v3017_v39, %v3016_v34  ;;  %v2802_v29 = vpop.permute.xlu1 %2801 }
 0x2de   : > { %v2955_v8 = vmul.f32 %v2798_v3, %v1711_v58  ;;  %v3075_v10 = vadd.f32 %v2942_v7, %v2941_v32  ;;  %v3022_v40 = vrot.slane %v3021_v16, 2  ;;  %v8072_v55 = vmax.f32 %v7106_v35, 0.0 }
 0x2df   : > { %v3177_v63 = vadd.f32 %v3176_v54, %v3175_v52  ;;  %v3237_v4 = vpack.c.bf16 %v3123_v60, %v3123_v60  ;;  %v3221_v20 = vpack.c.bf16 %v3011_v1, %v3011_v1  ;;  %v7238_v53 = vsel %vm925_vm12, %v3298_v36, %v3327_v25 }
 0x2e0   : > { %v2956_v37 = vmul.f32 %v2802_v29, %v8072_v55  ;;  %v3076_v21 = vrot.slane %v3075_v10, 4  ;;  %v3333_v59 = vsel %vm921_vm10, %v3304_v9, %v7151_v30  ;;  %v3023_v50 = vadd.f32 %v3022_v40, %v3021_v16  ;;  %v2644_v44 = vpop.permute.xlu0 %2643  ;;  %v8076_v29 = vld [vmem:[#allocation5_spill] sm:$0xff] }
 0x2e1   : > { %v3178_v62 = vrot.slane %v3177_v63, 1  ;;  %v3305_v54 = vunpack.c.l.b16 %v3237_v4  ;;  %v3312_v26 = vunpack.c.l.b16 %v3244_v46  ;;  %v3222_v27 = vpack.c.bf16 %v3018_v18, %v3018_v18  ;;  %v2890_v3 = vpop.permute.xlu1 %2889 }
 0x2e2   : > { %v3124_v58 = vadd.f32 %v2956_v37, %v2955_v8  ;;  %v3077_v52 = vadd.f32 %v3076_v21, %v3075_v10  ;;  %v8073_v41 = vmax.f32 %v7103_v56, 0.0  ;;  %v3024_v33 = vrot.slane %v3023_v50, 1  ;;  %v8075_v10 = vld [vmem:[#allocation82_spill] sm:$0xff] }
 0x2e3   : > { %v3179_v34 = vadd.f32 %v3178_v62, %v3177_v63  ;;  %v8074_v11 = vmax.f32 %v7130_v0, 0.0  ;;  %v3289_v47 = vunpack.c.l.b16 %v3221_v20  ;;  %v7248_v17 = vadd.f32 %v6299_v61, %v7209_v22 }
 0x2e4   : > { %v2971_v35 = vmul.f32 %v2886_v48, %v8073_v41  ;;  %v3125_v39 = vrot.slane %v3124_v58, 4  ;;  %v3078_v30 = vrot.slane %v3077_v52, 2  ;;  %v7251_v9 = vsel %vm923_vm11, %v3305_v54, %v3333_v59  ;;  %v2732_v36 = vpop.permute.xlu0 %2731 }
 0x2e5   : > { %v3245_v1 = vpack.c.bf16 %v3179_v34, %v3179_v34  ;;  %v2972_v49 = vmul.f32 %v2890_v3, %v8074_v11  ;;  %v3025_v7 = vadd.f32 %v3024_v33, %v3023_v50  ;;  %v3290_v60 = vunpack.c.l.b16 %v3222_v27  ;;  %v2648_v16 = vpop.permute.xlu1 %2647  ;;  %v8079_v27 = vld [vmem:[#allocation25_spill] sm:$0xff] }
 0x2e6   : > { %v3126_v56 = vadd.f32 %v3125_v39, %v3124_v58  ;;  %v3079_v63 = vadd.f32 %v3078_v30, %v3077_v52  ;;  %v2927_v0 = vmul.f32 %v2644_v44, %v1683_v14  ;;  %v3340_v48 = vsel %vm921_vm10, %v3312_v26, %v7169_v15  ;;  %v8078_v26 = vld [vmem:[#allocation83_spill] sm:$0xff] }
 0x2e7   : > { %v3313_v32 = vunpack.c.l.b16 %v3245_v1  ;;  %v3180_v25 = vadd.f32 %v2972_v49, %v2971_v35  ;;  %v2928_v18 = vmul.f32 %v2648_v16, %v1684_v19  ;;  %v3223_v8 = vpack.c.bf16 %v3025_v7, %v3025_v7 }
 0x2e8   : > { %v3127_v46 = vrot.slane %v3126_v56, 2  ;;  %v1531_v4 = vsub.f32 %v8076_v29, %v8075_v10  ;;  %v3080_v62 = vrot.slane %v3079_v63, 1  ;;  %v3320_v40 = vsel %vm923_vm11, %v3289_v47, %v7118_v43  ;;  %v2809_v15 = vpop.permute.xlu0 %2808 }
 0x2e9   : > { %v3181_v22 = vrot.slane %v3180_v25, 4  ;;  %v7264_v24 = vsel %vm923_vm11, %v3313_v32, %v3340_v48  ;;  %v3026_v37 = vadd.f32 %v2928_v18, %v2927_v0  ;;  %v3291_v20 = vunpack.c.l.b16 %v3223_v8  ;;  %v2736_v59 = vpop.permute.xlu1 %2735 }
 0x2ea   : > { %v3128_v14 = vadd.f32 %v3127_v46, %v3126_v56  ;;  %v1584_v57 = vmul.f32 %v6571_v6, %v1516_v28  ;;  %v3081_v19 = vadd.f32 %v3080_v62, %v3079_v63  ;;  %v2943_v21 = vmul.f32 %v2732_v36, %v1699_v51 }
 0x2eb   : > { %v3182_v55 = vadd.f32 %v3181_v22, %v3180_v25  ;;  %v3321_v43 = vsel %vm925_vm12, %v3290_v60, %v3320_v40  ;;  %v3027_v50 = vrot.slane %v3026_v37, 4  ;;  %v8077_v58 = vmax.f32 %v7179_v13, 0.0 }
 0x2ec   : > { %v3129_v54 = vrot.slane %v3128_v14, 1  ;;  %v1532_v52 = vsub.f32 %v8079_v27, %v8078_v26  ;;  %v1651_v45 = vadd.f32 %v6299_v61, %v7216_v2  ;;  %v3231_v23 = vpack.c.bf16 %v3081_v19, %v3081_v19  ;;  %v2897_v3 = vpop.permute.xlu0 %2896 }
 0x2ed   : > { %v3183_v34 = vrot.slane %v3182_v55, 2  ;;  %v2944_v44 = vmul.f32 %v2736_v59, %v8077_v58  ;;  %v7280_v28 = vsel %vm927_vm13, %v3291_v20, %v3321_v43  ;;  %v3028_v41 = vadd.f32 %v3027_v50, %v3026_v37  ;;  %v2813_v33 = vpop.permute.xlu1 %2812 }
 0x2ee   : > { %v3130_v38 = vadd.f32 %v3129_v54, %v3128_v14  ;;  %v1599_v1 = vmul.f32 %v6571_v6, %v1531_v4  ;;  %v1730_v13 = vmax.f32 %v7248_v17, 0.0  ;;  %v1652_v39 = vadd.f32 %v6299_v61, %v1584_v57 }
 0x2ef   : > { %v3184_v51 = vadd.f32 %v3183_v34, %v3182_v55  ;;  %v3082_v35 = vadd.f32 %v2944_v44, %v2943_v21  ;;  %v3299_v11 = vunpack.c.l.b16 %v3231_v23  ;;  %v3029_v2 = vrot.slane %v3028_v41, 2 }
 0x2f0   : > { %v3238_v49 = vpack.c.bf16 %v3130_v38, %v3130_v38  ;;  %v1600_v32 = vmul.f32 %v6571_v6, %v1532_v52  ;;  %v8080_v7 = vmax.f32 %v7188_v5, 0.0  ;;  %v8081_v25 = vmax.f32 %v7203_v42, 0.0  ;;  %v2820_v48 = vpop.permute.xlu0 %2819 }
 0x2f1   : > { %v3185_v47 = vrot.slane %v3184_v51, 1  ;;  %v3083_v30 = vrot.slane %v3082_v35, 4  ;;  %v3329_v60 = vsel %vm927_vm13, %v3299_v11, %v7238_v53  ;;  %v3030_v0 = vadd.f32 %v3029_v2, %v3028_v41  ;;  %v2901_v6 = vpop.permute.xlu1 %2900 }
 0x2f2   : > { %v2957_v56 = vmul.f32 %v2809_v15, %v8080_v7  ;;  %v2958_v36 = vmul.f32 %v2813_v33, %v8081_v25  ;;  %v3306_v63 = vunpack.c.l.b16 %v3238_v49  ;;  %v2973_v46 = vmul.f32 %v2897_v3, %v1729_v31 }
 0x2f3   : > { %v3186_v17 = vadd.f32 %v3185_v47, %v3184_v51  ;;  %v3084_v16 = vadd.f32 %v3083_v30, %v3082_v35  ;;  %v1715_v18 = vmax.f32 %v1651_v45, 0.0  ;;  %v1667_v5 = vadd.f32 %v6299_v61, %v1599_v1 }
 0x2f4   : > { %v3131_v22 = vadd.f32 %v2958_v36, %v2957_v56  ;;  %v2974_v42 = vmul.f32 %v2901_v6, %v1730_v13  ;;  %v3031_v29 = vrot.slane %v3030_v0, 1  ;;  %v1716_v62 = vmax.f32 %v1652_v39, 0.0  ;;  %v2908_v19 = vpop.permute.xlu0 %2907 }
 0x2f5   : > { %v3246_v8 = vpack.c.bf16 %v3186_v17, %v3186_v17  ;;  %v3085_v10 = vrot.slane %v3084_v16, 2  ;;  %v1668_v53 = vadd.f32 %v6299_v61, %v1600_v32  ;;  %v3335_v40 = vsel %vm925_vm12, %v3306_v63, %v7251_v9  ;;  %v2824_v20 = vpop.permute.xlu1 %2823 }
 0x2f6   : > { %v3132_v4 = vrot.slane %v3131_v22, 4  ;;  %v3187_v12 = vadd.f32 %v2974_v42, %v2973_v46  ;;  %v3032_v31 = vadd.f32 %v3031_v29, %v3030_v0  ;;  %v2959_v15 = vmul.f32 %v2820_v48, %v1715_v18 }
 0x2f7   : > { %v3314_v14 = vunpack.c.l.b16 %v3246_v8  ;;  %v3086_v55 = vadd.f32 %v3085_v10, %v3084_v16  ;;  %v2960_v21 = vmul.f32 %v2824_v20, %v1716_v62  ;;  %v1731_v34 = vmax.f32 %v1667_v5, 0.0  ;;  %v7310_v62 = vld [vmem:[%s7457_s2] sm:$0xff] }
 0x2f8   : > { %v3133_v37 = vadd.f32 %v3132_v4, %v3131_v22  ;;  %v3188_v57 = vrot.slane %v3187_v12, 4  ;;  %v3224_v43 = vpack.c.bf16 %v3032_v31, %v3032_v31  ;;  %v1732_v50 = vmax.f32 %v1668_v53, 0.0  ;;  %v8082_v53 = vld [vmem:[#allocation34_spill] sm:$0xff]  ;;  %v8083_v31 = vld [vmem:[#allocation85_spill] sm:$0xff] }
 0x2f9   : > { %v3087_v59 = vrot.slane %v3086_v55, 1  ;;  %v3342_v61 = vsel %vm925_vm12, %v3314_v14, %v7264_v24  ;;  %v3138_v9 = vadd.f32 %v2960_v21, %v2959_v15  ;;  %v2975_v52 = vmul.f32 %v2908_v19, %v1731_v34  ;;  %v2912_v45 = vpop.permute.xlu1 %2911 }
 0x2fa   : > { %v3134_v54 = vrot.slane %v3133_v37, 2  ;;  %v3189_v58 = vadd.f32 %v3188_v57, %v3187_v12  ;;  %v3292_v26 = vunpack.c.l.b16 %v3224_v43  ;;  %v2976_v51 = vmul.f32 %v2912_v45, %v1732_v50 }
 0x2fb   : > { %v3088_v44 = vadd.f32 %v3087_v59, %v3086_v55  ;;  %v3139_v38 = vrot.slane %v3138_v9, 4 }
 0x2fc   : > { %v3135_v27 = vadd.f32 %v3134_v54, %v3133_v37  ;;  %v3190_v23 = vrot.slane %v3189_v58, 2  ;;  %v3323_v3 = vsel %vm929_vm14, %v3292_v26, %v7280_v28  ;;  %v3194_v13 = vadd.f32 %v2976_v51, %v2975_v52  ;;  %v4503_v26 = vld [vmem:[%s7458_s3 + $0x50] sm:$0xff]  }
 0x2fd   : > { %v3232_v41 = vpack.c.bf16 %v3088_v44, %v3088_v44  ;;  %v3140_v33 = vadd.f32 %v3139_v38, %v3138_v9  ;;  %v3453_v37 = vrot.slane %v7310_v62, %v8083_v31  ;;  %v4502_v44 = vld [vmem:[%s7458_s3 + $0x48] sm:$0xff]  }
 0x2fe   : > { %v3136_v35 = vrot.slane %v3135_v27, 1  ;;  %v3191_v1 = vadd.f32 %v3190_v23, %v3189_v58  ;;  %v3195_v47 = vrot.slane %v3194_v13, 4  ;;  %4392 = vmatprep.subr.bf16.mxu1 %v4502_v44 }
 0x2ff   : > { %v3300_v39 = vunpack.c.l.b16 %v3232_v41  ;;  %v3141_v49 = vrot.slane %v3140_v33, 2  ;;  %4393 = vmatpush3.bf16.msra.mxu1 %v4502_v44  ;;  %v8090_v44 = vld [vmem:[#allocation49_spill] sm:$0xff] }
 0x300   : > { %v3137_v24 = vadd.f32 %v3136_v35, %v3135_v27  ;;  %v3192_v11 = vrot.slane %v3191_v1, 1  ;;  %v3196_v25 = vadd.f32 %v3195_v47, %v3194_v13  ;;  %4394 = vmatprep.subr.bf16.mxu1 %v4503_v26  ;;  %v4504_v47 = vld [vmem:[%s7458_s3 + $0x58] sm:$0xff]  }
 0x301   : > { %v3330_v2 = vsel %vm929_vm14, %v3300_v39, %v3329_v60  ;;  %v3142_v56 = vadd.f32 %v3141_v49, %v3140_v33 }
 0x302   : > { %v3239_v30 = vpack.c.bf16 %v3137_v24, %v3137_v24  ;;  %v3345_v32 = vpack.c.b16 %v3330_v2, %v3323_v3  ;;  %v3193_v7 = vadd.f32 %v3192_v11, %v3191_v1  ;;  %v3197_v28 = vrot.slane %v3196_v25, 2  ;;  %v4505_v2 = vld [vmem:[%s7458_s3 + $0x60] sm:$0xff]  }
 0x303   : > { %v3143_v17 = vrot.slane %v3142_v56, 1  ;;  %4395 = vmatpush3.bf16.msra.mxu1 %v4503_v26  ;;  %v3805_v26 = vrot.slane %v7310_v62, %v8090_v44 }
 0x304   : > { %v3307_v36 = vunpack.c.l.b16 %v3239_v30  ;;  %4388 = vmatprep.mubr.bf16.mxu0 %v3345_v32  ;;  %v3247_v63 = vpack.c.bf16 %v3193_v7, %v3193_v7  ;;  %v3198_v46 = vadd.f32 %v3197_v28, %v3196_v25  ;;  %4396 = vmatprep.subr.bf16.mxu1 %v4504_v47  ;;  %v4506_v30 = vld [vmem:[%s7458_s3 + $0x68] sm:$0xff]   ;;  %v4507_v32 = vld [vmem:[%s7458_s3 + $0x70] sm:$0xff]   ;;  %v4508_v7 = vld [vmem:[%s7458_s3 + $0x78] sm:$0xff]  }
 0x305   : > { %v3144_v48 = vadd.f32 %v3143_v17, %v3142_v56  ;;  %v4509_v56 = vld [vmem:[%s7458_s3 + $0x80] sm:$0xff]   ;;  %v4513_v17 = vld [vmem:[%s7458_s3 + $0x98] sm:$0xff]  }
 0x306   : > { %v3336_v0 = vsel %vm927_vm13, %v3307_v36, %v3335_v40  ;;  %v3315_v16 = vunpack.c.l.b16 %v3247_v63  ;;  %v3199_v18 = vrot.slane %v3198_v46, 1  ;;  %v3252_v40 = vrot.slane %v7310_v62, %v8082_v53  ;;  %v4510_v25 = vld [vmem:[%s7458_s3 + $0x40] sm:$0xff]   ;;  %v4511_v36 = vld [vmem:[%s7458_s3 + $0x88] sm:$0xff]   ;;  %v4512_v63 = vld [vmem:[%s7458_s3 + $0x90] sm:$0xff]  }
 0x307   : > { %v3240_v22 = vpack.c.bf16 %v3144_v48, %v3144_v48  ;;  %4397 = vmatpush3.bf16.msra.mxu1 %v4504_v47  ;;  %4418 = vmatprep.subr.bf16.mxu0 %v4511_v36  ;;  %v4514_v28 = vld [vmem:[%s7458_s3 + $0xa0] sm:$0xff]   ;;  %v4527_v47 = vld [vmem:[%s7458_s3 + $0x108] sm:$0xff]  }
 0x308   : > { %v3343_v6 = vsel %vm927_vm13, %v3315_v16, %v3342_v61  ;;  %v3200_v60 = vadd.f32 %v3199_v18, %v3198_v46  ;;  %4398 = vmatprep.subr.bf16.mxu1 %v4505_v2  ;;  %v4516_v16 = vld [vmem:[%s7458_s3 + $0xb0] sm:$0xff]  }
 0x309   : > { %v3308_v5 = vunpack.c.l.b16 %v3240_v22 }
 0x30a   : > { %v3248_v8 = vpack.c.bf16 %v3200_v60, %v3200_v60 }
 0x30b   : > { %v3337_v10 = vsel %vm929_vm14, %v3308_v5, %v3336_v0  ;;  %4399 = vmatpush3.bf16.msra.mxu1 %v4505_v2  ;;  %v4515_v0 = vld [vmem:[%s7458_s3 + $0xa8] sm:$0xff]   ;;  %v4528_v2 = vld [vmem:[%s7458_s3 + $0x110] sm:$0xff]  }
 0x30c   : > { %v3316_v42 = vunpack.c.l.b16 %v3248_v8  ;;  %4400 = vmatprep.subr.bf16.mxu1 %v4506_v30 }
 0x30e   : > { %v3344_v29 = vsel %vm929_vm14, %v3316_v42, %v3343_v6 }
 0x30f   : > { %v3346_v4 = vpack.c.b16 %v3344_v29, %v3337_v10  ;;  %4401 = vmatpush3.bf16.msra.mxu1 %v4506_v30  ;;  %v4529_v30 = vld [vmem:[%s7458_s3 + $0x118] sm:$0xff]  }
 0x310   : > { %4402 = vmatprep.subr.bf16.mxu1 %v4507_v32 }
 0x311   : > { %4389 = vmatmul.mubr.bf16.vlgmr.msra.gmra.mrb[0].mxu0 %v3346_v4 }
 0x312   : > { %4419 = vmatpush3.bf16.msra.mxu0 %v4511_v36 }
 0x313   : > { %4403 = vmatpush3.bf16.msra.mxu1 %v4507_v32  ;;  %4420 = vmatprep.subr.bf16.mxu0 %v4512_v63  ;;  %v4530_v32 = vld [vmem:[%s7458_s3 + $0x120] sm:$0xff]  }
 0x314   : > { %4404 = vmatprep.subr.bf16.mxu1 %v4508_v7 }
 0x316   : > { %4421 = vmatpush3.bf16.msra.mxu0 %v4512_v63 }
 0x317   : > { %4405 = vmatpush3.bf16.msra.mxu1 %v4508_v7  ;;  %4422 = vmatprep.subr.bf16.mxu0 %v4513_v17  ;;  %v4531_v7 = vld [vmem:[%s7458_s3 + $0x128] sm:$0xff]  }
 0x318   : > { %4406 = vmatprep.subr.bf16.mxu1 %v4509_v56 }
 0x31a   : > { %4423 = vmatpush3.bf16.msra.mxu0 %v4513_v17 }
 0x31b   : > { %4407 = vmatpush3.bf16.msra.mxu1 %v4509_v56  ;;  %4424 = vmatprep.subr.bf16.mxu0 %v4514_v28  ;;  %v4532_v56 = vld [vmem:[%s7458_s3 + $0x130] sm:$0xff]  }
 0x31c   : > { %4412 = vmatprep.subr.bf16.mxu1 %v4510_v25 }
 0x31e   : > { %4425 = vmatpush3.bf16.msra.mxu0 %v4514_v28 }
 0x31f   : > { %4426 = vmatprep.subr.bf16.mxu0 %v4515_v0 }
 0x322   : > { %4427 = vmatpush3.bf16.msra.mxu0 %v4515_v0 }
 0x323   : > { %4428 = vmatprep.subr.bf16.mxu0 %v4516_v16 }
 0x326   : > { %4429 = vmatpush3.bf16.msra.mxu0 %v4516_v16 }
 0x3e4   : > { %v4390_v14 = vpop.f32.mrb[0].mxu0 }
 0x3e5   : > { %v3431_v55 = vpop.f32.mrb[1].mxu0  ;;  %v3440_v12 = vadd.f32 %v4390_v14, %v3252_v40 }
 0x3e6   : > { %v3432_v15 = vadd.f32 %v3431_v55, %v3252_v40  ;;  %v4391_v20 = vpop.f32.mrb[2].mxu0 }
 0x3e7   : > { %v3434_v57 = vpop.f32.mrb[3].mxu0  ;;  %v3448_v59 = vmax.f32 %v3440_v12, 0.0  ;;  %v3443_v54 = vadd.f32 %v4391_v20, %v3252_v40 }
 0x3e8   : > { %v3446_v19 = vmax.f32 %v3432_v15, 0.0  ;;  %v3435_v21 = vadd.f32 %v3434_v57, %v3252_v40  ;;  %v8085_v15 = vld [vmem:[#allocation20_spill] sm:$0xff]  ;;  %v8087_v57 = vld [vmem:[#allocation3_spill] sm:$0xff] }
 0x3e9   : > { %v3456_v61 = vadd.f32 %v3453_v37, %v3448_v59  ;;  %v3449_v58 = vmax.f32 %v3443_v54, 0.0  ;;  %v4517_v59 = vld [vmem:[%s7458_s3 + $0xb8] sm:$0xff]   ;;  %v4519_v54 = vld [vmem:[%s7458_s3 + $0xc8] sm:$0xff]  }
 0x3ea   : > { %v3454_v43 = vadd.f32 %v3453_v37, %v3446_v19  ;;  %v3447_v34 = vmax.f32 %v3435_v21, 0.0  ;;  %v8088_v19 = vld [vmem:[#allocation2_spill] sm:$0xff]  ;;  %4430 = vmatprep.subr.bf16.mxu0 %v4517_v59 }
 0x3eb   : > { %v3457_v9 = vadd.f32 %v3453_v37, %v3449_v58  ;;  %v8089_v21 = vpack.c.b16 %v8087_v57, %v8088_v19  ;;  %4431 = vmatpush3.bf16.msra.mxu0 %v4517_v59  ;;  %v4523_v58 = vld [vmem:[%s7458_s3 + $0xe8] sm:$0xff]  }
 0x3ec   : > { %v3455_v50 = vadd.f32 %v3453_v37, %v3447_v34  ;;  %3458 = vmax.xlane.f32.xlu0 %v3454_v43  ;;  %v8084_v37 = vld [vmem:[#allocation78_spill] sm:$0xff]  ;;  %v4520_v34 = vld [vmem:[%s7458_s3 + $0xd0] sm:$0xff]  }
 0x3ed   : > { %v8086_v20 = vpack.c.b16 %v8084_v37, %v8085_v15 }
 0x3ee   : > { %3460 = vmax.xlane.f32.xlu1 %v3455_v50 }
 0x3f0   : > { %3462 = vmax.xlane.f32.xlu0 %v3456_v61 }
 0x3f4   : > { %3464 = vmax.xlane.f32.xlu0 %v3457_v9 }
 0x479   : > { %v3459_v27 = vpop.xlane.xlu0 %3458 }
 0x47a   : > { %v7322_v52 = vsub.f32 %v3454_v43, %v3459_v27  ;;  %v4518_v43 = vld [vmem:[%s7458_s3 + $0xc0] sm:$0xff]  }
 0x47b   : > { %v3461_v45 = vpop.xlane.xlu1 %3460  ;;  %4432 = vmatprep.subr.bf16.mxu0 %v4518_v43 }
 0x47c   : > { %v3470_v23 = vmul.f32 1.442695, %v7322_v52  ;;  %v7325_v38 = vsub.f32 %v3455_v50, %v3461_v45  ;;  %4433 = vmatpush3.bf16.msra.mxu0 %v4518_v43  ;;  %v4521_v50 = vld [vmem:[%s7458_s3 + $0xd8] sm:$0xff]  }
 0x47d   : > { %v3463_v51 = vpop.xlane.xlu0 %3462  ;;  %4458 = vmatprep.subr.bf16.mxu0 %v4527_v47 }
 0x47e   : > { %4535 = vpow2.f32 %v3470_v23  ;;  %v3472_v41 = vmul.f32 1.442695, %v7325_v38  ;;  %v7328_v35 = vsub.f32 %v3456_v61, %v3463_v51  ;;  %v4522_v61 = vld [vmem:[%s7458_s3 + $0xe0] sm:$0xff]  }
 0x480   : > { %4537 = vpow2.f32 %v3472_v41  ;;  %v3474_v3 = vmul.f32 1.442695, %v7328_v35 }
 0x481   : > { %v3465_v1 = vpop.xlane.xlu0 %3464 }
 0x482   : > { %4539 = vpow2.f32 %v3474_v3  ;;  %v7331_v33 = vsub.f32 %v3457_v9, %v3465_v1  ;;  %v4524_v9 = vld [vmem:[%s7458_s3 + $0xf0] sm:$0xff]  }
 0x484   : > { %v3476_v13 = vmul.f32 1.442695, %v7331_v33 }
 0x486   : > { %4541 = vpow2.f32 %v3476_v13 }
 0x488   : > { %v4536_v39 = vpop.eup %4535 }
 0x489   : > { %3478 = vadd.xlane.f32.xlu1 %v4536_v39 }
 0x48a   : > { %v4538_v24 = vpop.eup %4537 }
 0x48b   : > { %3480 = vadd.xlane.f32.xlu0 %v4538_v24 }
 0x48c   : > { %v4540_v11 = vpop.eup %4539 }
 0x48d   : > { %3482 = vadd.xlane.f32.xlu1 %v4540_v11  ;;  %v4525_v11 = vld [vmem:[%s7458_s3 + $0xf8] sm:$0xff]  }
 0x490   : > { %v4542_v49 = vpop.eup %4541 }
 0x491   : > { %3484 = vadd.xlane.f32.xlu0 %v4542_v49  ;;  %v4526_v49 = vld [vmem:[%s7458_s3 + $0x100] sm:$0xff]  }
 0x516   : > { %v3479_v48 = vpop.xlane.xlu1 %3478 }
 0x517   : > { %4543 = vlog2.f32 %v3479_v48 }
 0x518   : > { %v3481_v46 = vpop.xlane.xlu0 %3480 }
 0x519   : > { %4545 = vlog2.f32 %v3481_v46 }
 0x51a   : > { %v3483_v22 = vpop.xlane.xlu1 %3482 }
 0x51b   : > { %4547 = vlog2.f32 %v3483_v22 }
 0x51e   : > { %v3485_v18 = vpop.xlane.xlu0 %3484 }
 0x51f   : > { %4549 = vlog2.f32 %v3485_v18 }
 0x521   : > { %v4544_v6 = vpop.eup %4543 }
 0x522   : > { %v3487_v60 = vmul.f32 0.6931472, %v4544_v6 }
 0x523   : > { %v4546_v5 = vpop.eup %4545 }
 0x524   : > { %v3489_v8 = vmul.f32 0.6931472, %v4546_v5  ;;  %v3494_v42 = vsub.f32 %v7322_v52, %v3487_v60 }
 0x525   : > { %v4548_v10 = vpop.eup %4547 }
 0x526   : > { %v3495_v29 = vsub.f32 %v7325_v38, %v3489_v8  ;;  %v3491_v4 = vmul.f32 0.6931472, %v4548_v10 }
 0x528   : > { %v3548_v53 = vpack.c.bf16 %v3495_v29, %v3494_v42  ;;  %v3496_v55 = vsub.f32 %v7328_v35, %v3491_v4  ;;  %v4533_v42 = vld [vmem:[%s7458_s3 + $0x138] sm:$0xff]   ;;  %v4534_v29 = vld [vmem:[%s7458_s3 + $0x140] sm:$0xff]   ;;  %v8092_v4 = vld [vmem:[#allocation67_spill] sm:$0xff] }
 0x529   : > { %v4550_v40 = vpop.eup %4549 }
 0x52a   : > { %v3493_v14 = vmul.f32 0.6931472, %v4550_v40  ;;  %4408 = vmatprep.mubr.bf16.mxu1 %v3548_v53  ;;  %v3958_v53 = vrot.slane %v7310_v62, %v8092_v4 }
 0x52c   : > { %v3497_v12 = vsub.f32 %v7331_v33, %v3493_v14 }
 0x52e   : > { %v3549_v31 = vpack.c.bf16 %v3497_v12, %v3496_v55 }
 0x530   : > { %4409 = vmatmul.mubr.bf16.vlgmr.msra.gmra.mrb[0].mxu1 %v3549_v31 }
 0x531   : > { %4413 = vmatpush3.bf16.msra.mxu1 %v4510_v25  ;;  %4414 = vmatprep.mubr.msk.bf16.mxu1 %vm371_vm2, %v8086_v20  ;;  %v8091_v25 = vld [vmem:[#allocation58_spill] sm:$0xff] }
 0x532   : > { %4438 = vmatprep.subr.bf16.mxu1 %v4519_v54  ;;  %v3835_v36 = vrot.slane %v7310_v62, %v8091_v25 }
 0x53c   : > { %4415 = vmatmul.mubr.msk.bf16.vlgmr.msra.gmra.mrb[0].mxu1 %vm371_vm2, %v8089_v21 }
 0x53d   : > { %4439 = vmatpush3.bf16.msra.mxu1 %v4519_v54 }
 0x53e   : > { %4440 = vmatprep.subr.bf16.mxu1 %v4520_v34 }
 0x541   : > { %4441 = vmatpush3.bf16.msra.mxu1 %v4520_v34  ;;  %v8093_v34 = vld [vmem:[#allocation76_spill] sm:$0xff] }
 0x542   : > { %4442 = vmatprep.subr.bf16.mxu1 %v4521_v50 }
 0x545   : > { %4443 = vmatpush3.bf16.msra.mxu1 %v4521_v50  ;;  %v4081_v50 = vrot.slane %v7310_v62, %v8093_v34 }
 0x546   : > { %4444 = vmatprep.subr.bf16.mxu1 %v4522_v61 }
 0x549   : > { %4445 = vmatpush3.bf16.msra.mxu1 %v4522_v61 }
 0x54a   : > { %4446 = vmatprep.subr.bf16.mxu1 %v4523_v58 }
 0x54d   : > { %4447 = vmatpush3.bf16.msra.mxu1 %v4523_v58 }
 0x54e   : > { %4448 = vmatprep.subr.bf16.mxu1 %v4524_v9 }
 0x551   : > { %4449 = vmatpush3.bf16.msra.mxu1 %v4524_v9 }
 0x552   : > { %4450 = vmatprep.subr.bf16.mxu1 %v4525_v11 }
 0x555   : > { %4451 = vmatpush3.bf16.msra.mxu1 %v4525_v11 }
 0x556   : > { %4452 = vmatprep.subr.bf16.mxu1 %v4526_v49 }
 0x559   : > { %4453 = vmatpush3.bf16.msra.mxu1 %v4526_v49 }
 0x60f   : > { %v4416_v27 = vpop.f32.mrb[0].mxu1 }
 0x610   : > { %v3808_v52 = vadd.f32 %v4416_v27, %v3805_v26  ;;  %v3787_v45 = vpop.f32.mrb[1].mxu1 }
 0x611   : > { %v3806_v23 = vadd.f32 %v3805_v26, %v3787_v45  ;;  %v4417_v38 = vpop.f32.mrb[2].mxu1 }
 0x612   : > { %v3809_v51 = vadd.f32 %v4417_v38, %v3805_v26  ;;  %v3790_v41 = vpop.f32.mrb[3].mxu1  ;;  %v3812_v3 = vmax.f32 %v3808_v52, 0.0 }
 0x613   : > { %v3807_v35 = vadd.f32 %v3805_v26, %v3790_v41  ;;  %v3810_v33 = vmax.f32 %v3806_v23, 0.0 }
 0x614   : > { %v3813_v1 = vmax.f32 %v3809_v51, 0.0 }
 0x615   : > { %v3811_v13 = vmax.f32 %v3807_v35, 0.0 }
 0x616   : > { %v3831_v39 = vpack.c.bf16 %v3813_v1, %v3812_v3 }
 0x617   : > { %v3830_v24 = vpack.c.bf16 %v3811_v13, %v3810_v33 }
 0x619   : > { %4434 = vmatprep.mubr.bf16.mxu0 %v3830_v24 }
 0x61a   : > { %4435 = vmatmul.mubr.bf16.vlgmr.msra.gmra.mrb[4].mxu0 %v3831_v39 }
 0x61b   : > { %4459 = vmatpush3.bf16.msra.mxu0 %v4527_v47 }
 0x61c   : > { %4460 = vmatprep.subr.bf16.mxu0 %v4528_v2 }
 0x61f   : > { %4461 = vmatpush3.bf16.msra.mxu0 %v4528_v2 }
 0x620   : > { %4462 = vmatprep.subr.bf16.mxu0 %v4529_v30 }
 0x623   : > { %4463 = vmatpush3.bf16.msra.mxu0 %v4529_v30 }
 0x624   : > { %4464 = vmatprep.subr.bf16.mxu0 %v4530_v32 }
 0x627   : > { %4465 = vmatpush3.bf16.msra.mxu0 %v4530_v32 }
 0x628   : > { %4466 = vmatprep.subr.bf16.mxu0 %v4531_v7 }
 0x62b   : > { %4467 = vmatpush3.bf16.msra.mxu0 %v4531_v7 }
 0x62c   : > { %4468 = vmatprep.subr.bf16.mxu0 %v4532_v56 }
 0x62f   : > { %4469 = vmatpush3.bf16.msra.mxu0 %v4532_v56 }
 0x630   : > { %4470 = vmatprep.subr.bf16.mxu0 %v4533_v42 }
 0x633   : > { %4471 = vmatpush3.bf16.msra.mxu0 %v4533_v42 }
 0x634   : > { %4472 = vmatprep.subr.bf16.mxu0 %v4534_v29 }
 0x637   : > { %4473 = vmatpush3.bf16.msra.mxu0 %v4534_v29 }
 0x6ed   : > { %v4436_v63 = vpop.f32.mrb[4].mxu0 }
 0x6ee   : > { %v3927_v17 = vadd.f32 %v4436_v63, %v3835_v36  ;;  %v3918_v28 = vpop.f32.mrb[5].mxu0 }
 0x6ef   : > { %v3919_v0 = vadd.f32 %v3918_v28, %v3835_v36  ;;  %v4437_v16 = vpop.f32.mrb[6].mxu0 }
 0x6f0   : > { %v3930_v48 = vadd.f32 %v4437_v16, %v3835_v36  ;;  %v3921_v46 = vpop.f32.mrb[7].mxu0  ;;  %v3935_v18 = vmax.f32 %v3927_v17, 0.0 }
 0x6f1   : > { %v3922_v22 = vadd.f32 %v3921_v46, %v3835_v36  ;;  %v3933_v60 = vmax.f32 %v3919_v0, 0.0 }
 0x6f2   : > { %v3936_v6 = vmax.f32 %v3930_v48, 0.0 }
 0x6f3   : > { %v3934_v5 = vmax.f32 %v3922_v22, 0.0 }
 0x6f4   : > { %v3954_v8 = vpack.c.bf16 %v3936_v6, %v3935_v18 }
 0x6f5   : > { %v3953_v10 = vpack.c.bf16 %v3934_v5, %v3933_v60 }
 0x6f7   : > { %4454 = vmatprep.mubr.bf16.mxu1 %v3953_v10 }
 0x6f8   : > { %4455 = vmatmul.mubr.bf16.vlgmr.msra.gmra.mrb[4].mxu1 %v3954_v8 }
 0x7cb   : > { %v4456_v40 = vpop.f32.mrb[4].mxu1 }
 0x7cc   : > { %v4050_v14 = vadd.f32 %v4456_v40, %v3958_v53  ;;  %v4041_v55 = vpop.f32.mrb[5].mxu1 }
 0x7cd   : > { %v4042_v12 = vadd.f32 %v4041_v55, %v3958_v53  ;;  %v4457_v31 = vpop.f32.mrb[6].mxu1 }
 0x7ce   : > { %v4053_v37 = vadd.f32 %v4457_v31, %v3958_v53  ;;  %v4044_v15 = vpop.f32.mrb[7].mxu1  ;;  %v4058_v57 = vmax.f32 %v4050_v14, 0.0 }
 0x7cf   : > { %v4045_v20 = vadd.f32 %v4044_v15, %v3958_v53  ;;  %v4056_v21 = vmax.f32 %v4042_v12, 0.0 }
 0x7d0   : > { %v4059_v19 = vmax.f32 %v4053_v37, 0.0 }
 0x7d1   : > { %v4057_v59 = vmax.f32 %v4045_v20, 0.0 }
 0x7d2   : > { %v4077_v43 = vpack.c.bf16 %v4059_v19, %v4058_v57 }
 0x7d3   : > { %v4076_v54 = vpack.c.bf16 %v4057_v59, %v4056_v21 }
 0x7d5   : > { %4474 = vmatprep.mubr.bf16.mxu0 %v4076_v54 }
 0x7d6   : > { %4475 = vmatmul.mubr.bf16.vlgmr.msra.gmra.mrb[8].mxu0 %v4077_v43 }
 0x8a9   : > { %v4476_v61 = vpop.f32.mrb[8].mxu0 }
 0x8aa   : > { %v4164_v58 = vpop.f32.mrb[9].mxu0  ;;  %v4173_v26 = vadd.f32 %v4476_v61, %v4081_v50 }
 0x8ab   : > { %v4165_v9 = vadd.f32 %v4164_v58, %v4081_v50  ;;  %v4477_v44 = vpop.f32.mrb[10].mxu0 }
 0x8ac   : > { %v4167_v27 = vpop.f32.mrb[11].mxu0  ;;  %v4176_v45 = vadd.f32 %v4477_v44, %v4081_v50  ;;  %v4181_v51 = vmax.f32 %v4173_v26, 0.0 }
 0x8ad   : > { %v4179_v52 = vmax.f32 %v4165_v9, 0.0  ;;  %v4168_v23 = vadd.f32 %v4167_v27, %v4081_v50 }
 0x8ae   : > { %v4182_v41 = vmax.f32 %v4176_v45, 0.0  ;;  %4185 = vst [vmem:[%s224_s23 + $0x10] sm:$0xff] %v4181_v51 }
 0x8af   : > { %4183 = vst [vmem:[%s224_s23] sm:$0xff] %v4179_v52  ;;  %v4180_v38 = vmax.f32 %v4168_v23, 0.0 }
 0x8b0   : > { %4186 = vst [vmem:[%s224_s23 + $0x18] sm:$0xff] %v4182_v41 }
 0x8b1   : > { %4184 = vst [vmem:[%s224_s23 + $0x8] sm:$0xff] %v4180_v38 }
 0x8b2 PF: > { %s14_s15 = sadd.s32 1, %s4622_s15  }
 0x8b3   : > { %p11_p5 = scmp.ge.s32.totalorder %s14_s15, 4  }
 0x8b5   :  { %13 = sbr.rel (!%p11_p5) target bundleno = 1 (0x1), region = 69 }

</bundles_post_ra>
